<compile_context>
chip_gen: v6e
topology: v6e:2x2x1
jax: 0.10.0
libtpu: 0.0.40
codegen_flags: <defaults>
</compile_context>

<pallas_src>
import functools

import jax
import jax.numpy as jnp
from jax.experimental import pallas as pl
from jax.experimental.pallas import tpu as pltpu


# -----------------------------------------------------------------------------
# global knobs
# -----------------------------------------------------------------------------
def _default_vmem_limit():
    try:
        cap = int(pltpu.get_tpu_info().vmem_capacity_bytes)
    except Exception:
        cap = 64 * 1024 * 1024          # conservative (v7x-sized) fallback
    return max(32 * 1024 * 1024, min(cap * 3 // 4, 96 * 1024 * 1024))


_VMEM_LIMIT = _default_vmem_limit()
_TILE_BUDGET = _VMEM_LIMIT // 2          # leave headroom for Mosaic scratch
_EW_TILE = 2048                          # rows per elementwise grid step
_SMALL_M = 32                            # below this, bypass Pallas (overhead)


# -----------------------------------------------------------------------------
# small shape helpers
# -----------------------------------------------------------------------------
def _round_up(x, m):
    return (x + m - 1) // m * m


def _pad2(a, rows, cols):
    pr, pc = rows - a.shape[0], cols - a.shape[1]
    if pr == 0 and pc == 0:
        return a
    return jnp.pad(a, ((0, pr), (0, pc)))


def _pick_divisor_tile(total, cap, quantum):
    """Largest multiple of `quantum` dividing `total` (a multiple of quantum), <= cap."""
    best = quantum
    t = quantum
    while t <= min(total, cap):
        if total % t == 0:
            best = t
        t += quantum
    return best


def _ew_tiles(m):
    mp = _round_up(m, 16)
    if mp <= _EW_TILE:
        return mp, mp
    mp = _round_up(m, _EW_TILE)
    return mp, _EW_TILE


def _gemm_footprint(tm, tk, tn):
    lhs = 2 * tm * tk * 2            # bf16 LHS, double-buffered
    rhs = 2 * tk * tn * 2            # bf16 RHS, double-buffered
    acc = tm * tn * 4                # f32 accumulator
    out = 2 * tm * tn * 2            # bf16 output, double-buffered
    stats = 2 * 2 * 8 * tn * 4       # two f32 stats outputs
    bias = 2 * tn * 4
    return lhs + rhs + acc + out + stats + bias


def _plan_gemm(m, k, n):
    """Pick padded dims and tile sizes under the VMEM budget."""
    np_ = max(128, _round_up(n, 128))            # lane-dense stores (>=128)
    kp = _round_up(k, 128)
    tn = _pick_divisor_tile(np_, 512, 128)
    max_m = 1024 if np_ <= 128 else 512

    def m_tiles(cap):
        mp16 = _round_up(m, 16)
        if mp16 <= cap:
            return mp16, mp16
        return _round_up(m, cap), cap

    mp, tm = m_tiles(max_m)
    tk = kp if kp <= 4096 else _pick_divisor_tile(kp, 2048, 128)

    while _gemm_footprint(tm, tk, tn) > _TILE_BUDGET and tk > 128:
        tk = _pick_divisor_tile(kp, max(128, tk // 2), 128)
    while _gemm_footprint(tm, tk, tn) > _TILE_BUDGET and tm > 256:
        mp, tm = m_tiles(max(256, tm // 2))
    while _gemm_footprint(tm, tk, tn) > _TILE_BUDGET and tn > 128:
        tn = _pick_divisor_tile(np_, max(128, tn // 2), 128)
    return mp, tm, kp, tk, np_, tn


# -----------------------------------------------------------------------------
# Tiled GEMM with fused bias, post-activation and (optional) BN batch stats
# -----------------------------------------------------------------------------
def _gemm_kernel(x_ref, w_ref, b_ref, *rest, post_slope, want_stats):
    if want_stats:
        o_ref, s_ref, q_ref, acc_ref = rest
    else:
        o_ref, acc_ref = rest
    l = pl.program_id(2)

    @pl.when(l == 0)
    def _init():
        acc_ref[...] = jnp.zeros_like(acc_ref)

    acc_ref[...] += jnp.dot(x_ref[...], w_ref[...],
                            preferred_element_type=jnp.float32)

    @pl.when(l == pl.num_programs(2) - 1)
    def _finalize():
        y = acc_ref[...] + b_ref[...]
        if post_slope is not None:
            # LeakyReLU(post_slope); post_slope == 0.0 -> ReLU (f32 math).
            y = jnp.where(y >= 0, y, post_slope * y)
        o_ref[...] = y.astype(o_ref.dtype)
        if want_stats:
            s_ref[...] = jnp.broadcast_to(
                jnp.sum(y, axis=0, keepdims=True), s_ref.shape)
            q_ref[...] = jnp.broadcast_to(
                jnp.sum(y * y, axis=0, keepdims=True), q_ref.shape)


def gemm_fused(x, w, b, post_slope=None, want_stats=False):
    """y = act(x @ w + b) (bf16); optionally also per-column sum / sumsq of y.

    x: (M, K), w: (K, N), b: (N,).  MXU operands bf16, accumulation f32.
    """
    m, k = x.shape
    k2, n = w.shape
    assert k == k2
    xb = x.astype(jnp.bfloat16)
    wb = w.astype(jnp.bfloat16)
    bf = b.astype(jnp.float32)

    if m < _SMALL_M:
        # deep UNet levels (a few rows): plain XLA dot beats pallas_call overhead
        y = jnp.dot(xb, wb, preferred_element_type=jnp.float32) + bf[None, :]
        if post_slope is not None:
            y = jnp.where(y >= 0, y, post_slope * y)
        yb = y.astype(jnp.bfloat16)
        if want_stats:
            return yb, jnp.sum(y, axis=0), jnp.sum(y * y, axis=0)
        return yb

    mp, tm, kp, tk, np_, tn = _plan_gemm(m, k, n)
    xb = _pad2(xb, mp, kp)
    wb = _pad2(wb, kp, np_)
    bp = _pad2(bf.reshape(1, n), 1, np_)
    ni = mp // tm

    if want_stats:
        out_shape = (jax.ShapeDtypeStruct((mp, np_), jnp.bfloat16),
                     jax.ShapeDtypeStruct((ni * 8, np_), jnp.float32),
                     jax.ShapeDtypeStruct((ni * 8, np_), jnp.float32))
        out_specs = (pl.BlockSpec((tm, tn), lambda i, j, l: (i, j)),
                     pl.BlockSpec((8, tn), lambda i, j, l: (i, j)),
                     pl.BlockSpec((8, tn), lambda i, j, l: (i, j)))
    else:
        out_shape = jax.ShapeDtypeStruct((mp, np_), jnp.bfloat16)
        out_specs = pl.BlockSpec((tm, tn), lambda i, j, l: (i, j))

    kernel = functools.partial(_gemm_kernel, post_slope=post_slope,
                               want_stats=want_stats)
    res = pl.pallas_call(
        kernel,
        out_shape=out_shape,
        grid_spec=pltpu.PrefetchScalarGridSpec(
            num_scalar_prefetch=0,
            grid=(mp // tm, np_ // tn, kp // tk),
            in_specs=[
                pl.BlockSpec((tm, tk), lambda i, j, l: (i, l)),
                pl.BlockSpec((tk, tn), lambda i, j, l: (l, j)),
                pl.BlockSpec((1, tn), lambda i, j, l: (0, j)),
            ],
            out_specs=out_specs,
            scratch_shapes=[pltpu.VMEM((tm, tn), jnp.float32)],
        ),
        compiler_params=pltpu.CompilerParams(
            dimension_semantics=("parallel", "parallel", "arbitrary"),
            vmem_limit_bytes=_VMEM_LIMIT,
        ),
    )(xb, wb, bp)

    if want_stats:
        y, s_raw, q_raw = res
        s = s_raw.reshape(ni, 8, np_)[:, 0, :].sum(axis=0)
        q = q_raw.reshape(ni, 8, np_)[:, 0, :].sum(axis=0)
        pad_rows = mp - m
        if pad_rows:
            # padded LHS rows contribute act(bias) per row; remove them
            bpad = bp[0]
            if post_slope is not None:
                bpad = jnp.where(bpad >= 0, bpad, post_slope * bpad)
            s = s - pad_rows * bpad
            q = q - pad_rows * bpad * bpad
        return y[:m, :n], s[:n], q[:n]
    return res[:m, :n]


# -----------------------------------------------------------------------------
# BatchNorm (training-mode batch statistics) helpers / fused apply kernels
# -----------------------------------------------------------------------------
def _bn_coeffs(s, q, count, gamma, beta):
    """Per-channel (scale, shift) so BN(h) == h*scale + shift (biased var, eps=1e-5)."""
    mean = s / count
    var = jnp.maximum(q / count - mean * mean, 0.0)
    scale = gamma * jax.lax.rsqrt(var + 1e-5)
    shift = beta - mean * scale
    return scale, shift


def _bn_act_kernel(h_ref, s_ref, t_ref, o_ref, *, slope):
    y = h_ref[...].astype(jnp.float32) * s_ref[...] + t_ref[...]
    y = jnp.where(y >= 0, y, slope * y)
    o_ref[...] = y.astype(o_ref.dtype)


def bn_leaky(h, scale, shift, slope=0.2):
    """BN scale/shift + LeakyReLU(slope) over an NHWC bf16 tensor (one pass)."""
    shp = h.shape
    c = shp[-1]
    h2 = h.reshape(-1, c)
    m = h2.shape[0]
    if m < _SMALL_M:
        y = h2.astype(jnp.float32) * scale + shift
        y = jnp.where(y >= 0, y, slope * y)
        return y.astype(jnp.bfloat16).reshape(shp)
    mp, tm = _ew_tiles(m)
    h2p = _pad2(h2, mp, c)
    out = pl.pallas_call(
        functools.partial(_bn_act_kernel, slope=slope),
        out_shape=jax.ShapeDtypeStruct((mp, c), jnp.bfloat16),
        grid_spec=pltpu.PrefetchScalarGridSpec(
            num_scalar_prefetch=0,
            grid=(mp // tm,),
            in_specs=[pl.BlockSpec((tm, c), lambda i: (i, 0)),
                      pl.BlockSpec((1, c), lambda i: (0, 0)),
                      pl.BlockSpec((1, c), lambda i: (0, 0))],
            out_specs=pl.BlockSpec((tm, c), lambda i: (i, 0)),
        ),
        compiler_params=pltpu.CompilerParams(
            dimension_semantics=("parallel",), vmem_limit_bytes=_VMEM_LIMIT),
    )(h2p, scale.reshape(1, c).astype(jnp.float32),
      shift.reshape(1, c).astype(jnp.float32))
    return out[:m].reshape(shp)


def _bn_relu_pair_kernel(x_ref, h_ref, s_ref, t_ref, xo_ref, ho_ref):
    xo_ref[...] = jnp.maximum(x_ref[...].astype(jnp.float32), 0.0).astype(xo_ref.dtype)
    y = h_ref[...].astype(jnp.float32) * s_ref[...] + t_ref[...]
    ho_ref[...] = jnp.maximum(y, 0.0).astype(ho_ref.dtype)


def bn_relu_pair(x, h, scale, shift):
    """(ReLU(x), ReLU(h*scale+shift)): the two halves of ReLU(cat([x, BN(h)])),
    kept as separate lane-dense tensors (the cat is folded into the consumer's
    per-tap patch build)."""
    shp_x, shp_h = x.shape, h.shape
    cx, ch = shp_x[-1], shp_h[-1]
    x2 = x.reshape(-1, cx)
    h2 = h.reshape(-1, ch)
    m = x2.shape[0]
    if m < _SMALL_M:
        xr = jnp.maximum(x2.astype(jnp.float32), 0.0).astype(jnp.bfloat16)
        hr = jnp.maximum(h2.astype(jnp.float32) * scale + shift, 0.0).astype(jnp.bfloat16)
        return xr.reshape(shp_x), hr.reshape(shp_h)
    mp, tm = _ew_tiles(m)
    x2p = _pad2(x2, mp, cx)
    h2p = _pad2(h2, mp, ch)
    xo, ho = pl.pallas_call(
        _bn_relu_pair_kernel,
        out_shape=(jax.ShapeDtypeStruct((mp, cx), jnp.bfloat16),
                   jax.ShapeDtypeStruct((mp, ch), jnp.bfloat16)),
        grid_spec=pltpu.PrefetchScalarGridSpec(
            num_scalar_prefetch=0,
            grid=(mp // tm,),
            in_specs=[pl.BlockSpec((tm, cx), lambda i: (i, 0)),
                      pl.BlockSpec((tm, ch), lambda i: (i, 0)),
                      pl.BlockSpec((1, ch), lambda i: (0, 0)),
                      pl.BlockSpec((1, ch), lambda i: (0, 0))],
            out_specs=(pl.BlockSpec((tm, cx), lambda i: (i, 0)),
                       pl.BlockSpec((tm, ch), lambda i: (i, 0))),
        ),
        compiler_params=pltpu.CompilerParams(
            dimension_semantics=("parallel",), vmem_limit_bytes=_VMEM_LIMIT),
    )(x2p, h2p, scale.reshape(1, ch).astype(jnp.float32),
      shift.reshape(1, ch).astype(jnp.float32))
    return xo[:m].reshape(shp_x), ho[:m].reshape(shp_h)


# -----------------------------------------------------------------------------
# Conv2d(4,2,1) and ConvTranspose2d(4,2,1) as Pallas GEMMs
# -----------------------------------------------------------------------------
def conv_down(x, w, b, post_slope=None, want_stats=False):
    """Conv2d(k=4, s=2, p=1). x: NHWC bf16 (already pre-activated), w: (Cout, Cin, 4, 4)."""
    n, hh, ww, cin = x.shape
    cout = w.shape[0]
    ho, wo = hh // 2, ww // 2
    xp = jnp.pad(x.astype(jnp.bfloat16), ((0, 0), (1, 1), (1, 1), (0, 0)))
    cols = []
    for kh in range(4):
        for kw in range(4):
            cols.append(xp[:, kh:kh + 2 * ho - 1:2, kw:kw + 2 * wo - 1:2, :])
    # TODO(synk): this im2col is still materialized by XLA (~4x input bytes).
    patches = jnp.concatenate(cols, axis=-1).reshape(n * ho * wo, 16 * cin)
    # (Cout, Cin, kh, kw) -> (kh, kw, Cin, Cout) -> (16*Cin, Cout)
    w2 = jnp.transpose(w, (2, 3, 1, 0)).reshape(16 * cin, cout)
    res = gemm_fused(patches, w2, b, post_slope=post_slope, want_stats=want_stats)
    if want_stats:
        y, s, q = res
        return y.reshape(n, ho, wo, cout), s, q, n * ho * wo
    return res.reshape(n, ho, wo, cout)


# (window row offset dr, transposed-conv kernel index kh) pairs per output phase
_PHASE_TAPS = {0: ((0, 3), (1, 1)),    # even output rows/cols
               1: ((1, 2), (2, 0))}    # odd  output rows/cols


def _upconv_phase_weight(w_t):
    """(Cin, Cout, 4, 4) ConvTranspose weight -> (9*Cin, 4*Cout) phase-combined
    forward-conv weight over a 3x3 window of the zero-padded input."""
    cin, cout = w_t.shape[0], w_t.shape[1]
    wc = jnp.zeros((3, 3, cin, 2, 2, cout), jnp.float32)
    for pr in (0, 1):
        for dr, kh in _PHASE_TAPS[pr]:
            for pc in (0, 1):
                for dc, kw in _PHASE_TAPS[pc]:
                    wc = wc.at[dr, dc, :, pr, pc, :].set(w_t[:, :, kh, kw])
    return wc.reshape(9 * cin, 4 * cout)


def conv_up(xs, w_t, b, post_slope=None, want_stats=False):
    """ConvTranspose2d(k=4, s=2, p=1) via 4-phase decomposition.

    xs: list of NHWC bf16 tensors whose channel concatenation is the conv input
    (the torch.cat([skip, up]) is folded into the per-tap patch build rather
    than materialized).  w_t: (Cin_total, Cout, 4, 4).
    """
    if not isinstance(xs, (list, tuple)):
        xs = [xs]
    n, hh, ww = xs[0].shape[:3]
    cin = sum(a.shape[-1] for a in xs)
    assert w_t.shape[0] == cin
    cout = w_t.shape[1]
    xps = [jnp.pad(a.astype(jnp.bfloat16), ((0, 0), (1, 1), (1, 1), (0, 0)))
           for a in xs]
    cols = []
    for dr in range(3):
        for dc in range(3):
            for xp in xps:
                cols.append(xp[:, dr:dr + hh, dc:dc + ww, :])
    # TODO(synk): 9-tap patch slab still materialized by XLA (halo-DMA conv TODO).
    patches = jnp.concatenate(cols, axis=-1).reshape(n * hh * ww, 9 * cin)
    w_c = _upconv_phase_weight(w_t)
    b4 = jnp.tile(b, 4)
    res = gemm_fused(patches, w_c, b4, post_slope=post_slope, want_stats=want_stats)
    if want_stats:
        y4, s4, q4 = res
    else:
        y4 = res
    y4 = y4.reshape(n, hh, ww, 2, 2, cout)
    y = jnp.transpose(y4, (0, 1, 3, 2, 4, 5)).reshape(n, 2 * hh, 2 * ww, cout)
    if want_stats:
        s = s4.reshape(2, 2, cout).sum(axis=(0, 1))
        q = q4.reshape(2, 2, cout).sum(axis=(0, 1))
        return y, s, q, n * (2 * hh) * (2 * ww)
    return y


# -----------------------------------------------------------------------------
# Parameter construction (deterministic synthetic init, BatchNorm norm layer)
# -----------------------------------------------------------------------------
def _normal(key, shape, scale=0.05):
    return scale * jax.random.normal(key, shape, dtype=jnp.float32)


def make_block(key, outer_nc, inner_nc, input_nc=None, submodule=None,
               outermost=False, innermost=False):
    if input_nc is None:
        input_nc = outer_nc
    k0, k1, k2 = jax.random.split(key, 3)
    # norm_layer == BatchNorm2d  =>  use_bias == False for the gated convs
    p = {
        "outermost": outermost,
        "innermost": innermost,
        "submodule": submodule,
        "downconv_w": _normal(k0, (inner_nc, input_nc, 4, 4)),
        "downconv_b": jnp.zeros((inner_nc,), jnp.float32),
    }
    if outermost:
        p["upconv_w"] = _normal(k1, (inner_nc * 2, outer_nc, 4, 4))
        p["upconv_b"] = _normal(k2, (outer_nc,))  # bias=True (default)
    elif innermost:
        p["upconv_w"] = _normal(k1, (inner_nc, outer_nc, 4, 4))
        p["upconv_b"] = jnp.zeros((outer_nc,), jnp.float32)
        p["up_bn_g"] = jnp.ones((outer_nc,), jnp.float32)
        p["up_bn_b"] = jnp.zeros((outer_nc,), jnp.float32)
    else:
        p["upconv_w"] = _normal(k1, (inner_nc * 2, outer_nc, 4, 4))
        p["upconv_b"] = jnp.zeros((outer_nc,), jnp.float32)
        p["down_bn_g"] = jnp.ones((inner_nc,), jnp.float32)
        p["down_bn_b"] = jnp.zeros((inner_nc,), jnp.float32)
        p["up_bn_g"] = jnp.ones((outer_nc,), jnp.float32)
        p["up_bn_b"] = jnp.zeros((outer_nc,), jnp.float32)
    return p


def make_unet_params(key, input_nc, output_nc, num_downs, ngf):
    keys = jax.random.split(key, num_downs + 1)
    ki = 0
    block = make_block(keys[ki], ngf * 8, ngf * 8, innermost=True); ki += 1
    for _ in range(num_downs - 5):
        block = make_block(keys[ki], ngf * 8, ngf * 8, submodule=block); ki += 1
    block = make_block(keys[ki], ngf * 4, ngf * 8, submodule=block); ki += 1
    block = make_block(keys[ki], ngf * 2, ngf * 4, submodule=block); ki += 1
    block = make_block(keys[ki], ngf, ngf * 2, submodule=block); ki += 1
    block = make_block(keys[ki], output_nc, ngf, input_nc=input_nc,
                       submodule=block, outermost=True)
    return block


# -----------------------------------------------------------------------------
# Forward pass (mirrors UnetSkipConnectionBlock.forward semantics)
#
# Activation placement: every block's leading LeakyReLU(0.2, inplace) is fused
# into the *producer* of its input (parent downconv epilogue or BN-apply
# kernel), and every parent's ReLU before its upconv is fused into the child's
# BN+skip pair kernel.  Because the activations are applied in place in
# PyTorch, the skip concatenated by torch.cat is the activated tensor — which
# is exactly what this placement reproduces.
# -----------------------------------------------------------------------------
def block_forward(p, x):
    """x: NHWC bf16, already pre-activated by its producer (network input for
    the outermost block).  Non-outermost blocks return the (skip, up) pair that
    represents ReLU(cat([x, BN(up)]))."""
    if p["outermost"]:
        # [downconv] + submodule + [ReLU, upconv]
        # child's LeakyReLU(0.2) fused into the downconv epilogue
        h = conv_down(x, p["downconv_w"], p["downconv_b"], post_slope=0.2)
        skips = block_forward(p["submodule"], h)          # already ReLU'd pair
        return conv_up(list(skips), p["upconv_w"], p["upconv_b"])
    if p["innermost"]:
        # [LeakyReLU (done by producer), downconv, ReLU, upconv, BN]; then cat
        h = conv_down(x, p["downconv_w"], p["downconv_b"], post_slope=0.0)
        u, s, q, cnt = conv_up([h], p["upconv_w"], p["upconv_b"], want_stats=True)
        scale, shift = _bn_coeffs(s, q, cnt, p["up_bn_g"], p["up_bn_b"])
        return bn_relu_pair(x, u, scale, shift)
    # middle: [LeakyReLU (producer), downconv, BN] + submodule + [ReLU, upconv, BN]; cat
    h, s, q, cnt = conv_down(x, p["downconv_w"], p["downconv_b"], want_stats=True)
    sc, sh = _bn_coeffs(s, q, cnt, p["down_bn_g"], p["down_bn_b"])
    h = bn_leaky(h, sc, sh, slope=0.2)                    # BN + child's LeakyReLU
    skips = block_forward(p["submodule"], h)
    u, s2, q2, cnt2 = conv_up(list(skips), p["upconv_w"], p["upconv_b"],
                              want_stats=True)
    sc2, sh2 = _bn_coeffs(s2, q2, cnt2, p["up_bn_g"], p["up_bn_b"])
    return bn_relu_pair(x, u, sc2, sh2)


def unet_forward(params, x_nchw):
    """x_nchw: (N, C, H, W) float32 -> (N, output_nc, H, W) float32."""
    x = jnp.transpose(x_nchw, (0, 2, 3, 1)).astype(jnp.bfloat16)  # -> NHWC bf16
    y = block_forward(params, x)
    return jnp.transpose(y.astype(jnp.float32), (0, 3, 1, 2))     # -> NCHW f32


# -----------------------------------------------------------------------------
# Main
# -----------------------------------------------------------------------------
if __name__ == "__main__":
    # Small config: input_nc=1, output_nc=1, num_downs=5 (needs H = W >= 2^5),
    # ngf=8, batch=2.
    input_nc, output_nc, num_downs, ngf = 1, 1, 5, 8
    N, H, W = 2, 32, 32

    key = jax.random.PRNGKey(0)
    kp, kx = jax.random.split(key)
    params = make_unet_params(kp, input_nc, output_nc, num_downs, ngf)
    x = jax.random.normal(kx, (N, input_nc, H, W), dtype=jnp.float32)

    # Close over params so the block-structure flags stay Python values.
    fwd = jax.jit(lambda inp: unet_forward(params, inp))
    out = jax.block_until_ready(fwd(x))

    assert out.shape == (N, output_nc, H, W), out.shape
    assert out.dtype == jnp.float32
    assert bool(jnp.all(jnp.isfinite(out)))
    print("KERNEL_OK")
</pallas_src>

<mosaic_0001>
module attributes {stable_mosaic.version = 11 : i64} {
  func.func @_gemm_kernel(%arg0: i32, %arg1: i32, %arg2: i32, %arg3: memref<512x128xbf16, #tpu.memory_space<vmem>>, %arg4: memref<128x128xbf16, #tpu.memory_space<vmem>>, %arg5: memref<1x128xf32, #tpu.memory_space<vmem>>, %arg6: memref<512x128xbf16, #tpu.memory_space<vmem>>, %arg7: memref<512x128xf32, #tpu.memory_space<vmem>>) attributes {dimension_semantics = [#tpu.dimension_semantics<parallel>, #tpu.dimension_semantics<parallel>, #tpu.dimension_semantics<arbitrary>], iteration_bounds = array<i64: 1, 1, 1>, scalar_prefetch = 0 : i64, scratch_operands = 1 : i64, tpu.core_type = #tpu.core_type<tc>, window_params = [{transform_indices = @transform_0, window_bounds = array<i64: 512, 128>}, {transform_indices = @transform_1, window_bounds = array<i64: 128, 128>}, {transform_indices = @transform_2, window_bounds = array<i64: 1, 128>}, {transform_indices = @transform_3, window_bounds = array<i64: 512, 128>}]} {
    %c0_i32 = arith.constant 0 : i32
    %0 = arith.cmpi eq, %arg2, %c0_i32 : i32
    %1 = arith.extui %0 : i1 to i32
    %c0_i32_0 = arith.constant 0 : i32
    %2 = arith.cmpi ne, %1, %c0_i32_0 : i32
    scf.if %2 {
      %cst_10 = arith.constant 0.000000e+00 : f32
      %12 = vector.broadcast %cst_10 : f32 to vector<512x128xf32>
      %c0_11 = arith.constant 0 : index
      %c0_12 = arith.constant 0 : index
      %13 = vector.load %arg7[%c0_11, %c0_12] : memref<512x128xf32, #tpu.memory_space<vmem>>, vector<512x128xf32>
      tpu.vector_store %arg7[%c0_11, %c0_12], %12 {strides = array<i32>} : memref<512x128xf32, #tpu.memory_space<vmem>>, vector<512x128xf32>,
    } else {
    }
    %c0 = arith.constant 0 : index
    %c0_1 = arith.constant 0 : index
    %3 = vector.load %arg7[%c0, %c0_1] : memref<512x128xf32, #tpu.memory_space<vmem>>, vector<512x128xf32>
    %c0_2 = arith.constant 0 : index
    %c0_3 = arith.constant 0 : index
    %4 = vector.load %arg3[%c0_2, %c0_3] : memref<512x128xbf16, #tpu.memory_space<vmem>>, vector<512x128xbf16>
    %c0_4 = arith.constant 0 : index
    %c0_5 = arith.constant 0 : index
    %5 = vector.load %arg4[%c0_4, %c0_5] : memref<128x128xbf16, #tpu.memory_space<vmem>>, vector<128x128xbf16>
    %cst = arith.constant dense<0.000000e+00> : vector<512x128xf32>
    %6 = tpu.matmul %4, %5, %cst {dimension_numbers = #tpu.dot_dimension_numbers<[1], [0], [0], [1], [0, 0, 1, 1], [], []>} : vector<512x128xbf16>, vector<128x128xbf16>, vector<512x128xf32> -> vector<512x128xf32>
    %7 = arith.addf %3, %6 : vector<512x128xf32>
    %c0_6 = arith.constant 0 : index
    %c0_7 = arith.constant 0 : index
    %8 = vector.load %arg7[%c0_6, %c0_7] : memref<512x128xf32, #tpu.memory_space<vmem>>, vector<512x128xf32>
    tpu.vector_store %arg7[%c0_6, %c0_7], %7 {strides = array<i32>} : memref<512x128xf32, #tpu.memory_space<vmem>>, vector<512x128xf32>,
    %c0_i32_8 = arith.constant 0 : i32
    %9 = arith.cmpi eq, %arg2, %c0_i32_8 : i32
    %10 = arith.extui %9 : i1 to i32
    %c0_i32_9 = arith.constant 0 : i32
    %11 = arith.cmpi ne, %10, %c0_i32_9 : i32
    scf.if %11 {
      %c0_10 = arith.constant 0 : index
      %c0_11 = arith.constant 0 : index
      %12 = vector.load %arg7[%c0_10, %c0_11] : memref<512x128xf32, #tpu.memory_space<vmem>>, vector<512x128xf32>
      %c0_12 = arith.constant 0 : index
      %c0_13 = arith.constant 0 : index
      %13 = vector.load %arg5[%c0_12, %c0_13] : memref<1x128xf32, #tpu.memory_space<vmem>>, vector<1x128xf32>
      %14 = vector.broadcast %13 : vector<1x128xf32> to vector<512x128xf32>
      %15 = arith.addf %12, %14 : vector<512x128xf32>
      %cst_14 = arith.constant 0.000000e+00 : f32
      %16 = vector.broadcast %cst_14 : f32 to vector<512x128xf32>
      %17 = arith.cmpf oge, %15, %16 : vector<512x128xf32>
      %cst_15 = arith.constant 2.000000e-01 : f32
      %18 = vector.broadcast %cst_15 : f32 to vector<512x128xf32>
      %19 = arith.mulf %18, %15 : vector<512x128xf32>
      %20 = arith.select %17, %15, %19 : vector<512x128xi1>, vector<512x128xf32>
      %21 = arith.truncf %20 : vector<512x128xf32> to vector<512x128xbf16>
      %c0_16 = arith.constant 0 : index
      %c0_17 = arith.constant 0 : index
      %22 = vector.load %arg6[%c0_16, %c0_17] : memref<512x128xbf16, #tpu.memory_space<vmem>>, vector<512x128xbf16>
      tpu.vector_store %arg6[%c0_16, %c0_17], %21 {strides = array<i32>} : memref<512x128xbf16, #tpu.memory_space<vmem>>, vector<512x128xbf16>,
    } else {
    }
    return
  }
  func.func @transform_0(%arg0: i32, %arg1: i32, %arg2: i32) -> (i32, i32) {
    %c0_i32 = arith.constant 0 : i32
    return %arg0, %arg2 : i32, i32
  }
  func.func @transform_1(%arg0: i32, %arg1: i32, %arg2: i32) -> (i32, i32) {
    %c0_i32 = arith.constant 0 : i32
    return %arg2, %arg1 : i32, i32
  }
  func.func @transform_2(%arg0: i32, %arg1: i32, %arg2: i32) -> (i32, i32) {
    %c0_i32 = arith.constant 0 : i32
    %c0_i32_0 = arith.constant 0 : i32
    return %c0_i32, %arg1 : i32, i32
  }
  func.func @transform_3(%arg0: i32, %arg1: i32, %arg2: i32) -> (i32, i32) {
    %c0_i32 = arith.constant 0 : i32
    return %arg0, %arg1 : i32, i32
  }
}

module attributes {stable_mosaic.version = 11 : i64} {
  func.func @_bn_act_kernel(%arg0: i32, %arg1: memref<128x16xbf16, #tpu.memory_space<vmem>>, %arg2: memref<1x16xf32, #tpu.memory_space<vmem>>, %arg3: memref<1x16xf32, #tpu.memory_space<vmem>>, %arg4: memref<128x16xbf16, #tpu.memory_space<vmem>>) attributes {dimension_semantics = [#tpu.dimension_semantics<parallel>], iteration_bounds = array<i64: 1>, scalar_prefetch = 0 : i64, scratch_operands = 0 : i64, tpu.core_type = #tpu.core_type<tc>, window_params = [{transform_indices = @transform_0, window_bounds = array<i64: 128, 16>}, {pipeline_mode = #tpu.pipeline_mode<synchronous>, transform_indices = @transform_1, window_bounds = array<i64: 1, 16>}, {pipeline_mode = #tpu.pipeline_mode<synchronous>, transform_indices = @transform_2, window_bounds = array<i64: 1, 16>}, {transform_indices = @transform_3, window_bounds = array<i64: 128, 16>}]} {
    %c0 = arith.constant 0 : index
    %c0_0 = arith.constant 0 : index
    %0 = vector.load %arg1[%c0, %c0_0] : memref<128x16xbf16, #tpu.memory_space<vmem>>, vector<128x16xbf16>
    %1 = arith.extf %0 : vector<128x16xbf16> to vector<128x16xf32>
    %c0_1 = arith.constant 0 : index
    %c0_2 = arith.constant 0 : index
    %2 = vector.load %arg2[%c0_1, %c0_2] : memref<1x16xf32, #tpu.memory_space<vmem>>, vector<1x16xf32>
    %3 = vector.broadcast %2 : vector<1x16xf32> to vector<128x16xf32>
    %4 = arith.mulf %1, %3 : vector<128x16xf32>
    %c0_3 = arith.constant 0 : index
    %c0_4 = arith.constant 0 : index
    %5 = vector.load %arg3[%c0_3, %c0_4] : memref<1x16xf32, #tpu.memory_space<vmem>>, vector<1x16xf32>
    %6 = vector.broadcast %5 : vector<1x16xf32> to vector<128x16xf32>
    %7 = arith.addf %4, %6 : vector<128x16xf32>
    %cst = arith.constant 0.000000e+00 : f32
    %8 = vector.broadcast %cst : f32 to vector<128x16xf32>
    %9 = arith.cmpf oge, %7, %8 : vector<128x16xf32>
    %cst_5 = arith.constant 2.000000e-01 : f32
    %10 = vector.broadcast %cst_5 : f32 to vector<128x16xf32>
    %11 = arith.mulf %10, %7 : vector<128x16xf32>
    %12 = arith.select %9, %7, %11 : vector<128x16xi1>, vector<128x16xf32>
    %13 = arith.truncf %12 : vector<128x16xf32> to vector<128x16xbf16>
    %c0_6 = arith.constant 0 : index
    %c0_7 = arith.constant 0 : index
    %14 = vector.load %arg4[%c0_6, %c0_7] : memref<128x16xbf16, #tpu.memory_space<vmem>>, vector<128x16xbf16>
    tpu.vector_store %arg4[%c0_6, %c0_7], %13 {strides = array<i32>} : memref<128x16xbf16, #tpu.memory_space<vmem>>, vector<128x16xbf16>,
    return
  }
  func.func @transform_0(%arg0: i32) -> (i32, i32) {
    %c0_i32 = arith.constant 0 : i32
    %c0_i32_0 = arith.constant 0 : i32
    return %arg0, %c0_i32 : i32, i32
  }
  func.func @transform_1(%arg0: i32) -> (i32, i32) {
    %c0_i32 = arith.constant 0 : i32
    %c0_i32_0 = arith.constant 0 : i32
    %c0_i32_1 = arith.constant 0 : i32
    return %c0_i32, %c0_i32_0 : i32, i32
  }
  func.func @transform_2(%arg0: i32) -> (i32, i32) {
    %c0_i32 = arith.constant 0 : i32
    %c0_i32_0 = arith.constant 0 : i32
    %c0_i32_1 = arith.constant 0 : i32
    return %c0_i32, %c0_i32_0 : i32, i32
  }
  func.func @transform_3(%arg0: i32) -> (i32, i32) {
    %c0_i32 = arith.constant 0 : i32
    %c0_i32_0 = arith.constant 0 : i32
    return %arg0, %c0_i32 : i32, i32
  }
}

module attributes {stable_mosaic.version = 11 : i64} {
  func.func @_gemm_kernel(%arg0: i32, %arg1: i32, %arg2: i32, %arg3: memref<128x128xbf16, #tpu.memory_space<vmem>>, %arg4: memref<128x128xbf16, #tpu.memory_space<vmem>>, %arg5: memref<1x128xf32, #tpu.memory_space<vmem>>, %arg6: memref<128x128xbf16, #tpu.memory_space<vmem>>, %arg7: memref<8x128xf32, #tpu.memory_space<vmem>>, %arg8: memref<8x128xf32, #tpu.memory_space<vmem>>, %arg9: memref<128x128xf32, #tpu.memory_space<vmem>>) attributes {dimension_semantics = [#tpu.dimension_semantics<parallel>, #tpu.dimension_semantics<parallel>, #tpu.dimension_semantics<arbitrary>], iteration_bounds = array<i64: 1, 1, 1>, scalar_prefetch = 0 : i64, scratch_operands = 1 : i64, tpu.core_type = #tpu.core_type<tc>, window_params = [{transform_indices = @transform_0, window_bounds = array<i64: 128, 128>}, {transform_indices = @transform_1, window_bounds = array<i64: 128, 128>}, {transform_indices = @transform_2, window_bounds = array<i64: 1, 128>}, {transform_indices = @transform_3, window_bounds = array<i64: 128, 128>}, {transform_indices = @transform_4, window_bounds = array<i64: 8, 128>}, {transform_indices = @transform_5, window_bounds = array<i64: 8, 128>}]} {
    %c0_i32 = arith.constant 0 : i32
    %0 = arith.cmpi eq, %arg2, %c0_i32 : i32
    %1 = arith.extui %0 : i1 to i32
    %c0_i32_0 = arith.constant 0 : i32
    %2 = arith.cmpi ne, %1, %c0_i32_0 : i32
    scf.if %2 {
      %cst_10 = arith.constant 0.000000e+00 : f32
      %12 = vector.broadcast %cst_10 : f32 to vector<128x128xf32>
      %c0_11 = arith.constant 0 : index
      %c0_12 = arith.constant 0 : index
      %13 = vector.load %arg9[%c0_11, %c0_12] : memref<128x128xf32, #tpu.memory_space<vmem>>, vector<128x128xf32>
      tpu.vector_store %arg9[%c0_11, %c0_12], %12 {strides = array<i32>} : memref<128x128xf32, #tpu.memory_space<vmem>>, vector<128x128xf32>,
    } else {
    }
    %c0 = arith.constant 0 : index
    %c0_1 = arith.constant 0 : index
    %3 = vector.load %arg9[%c0, %c0_1] : memref<128x128xf32, #tpu.memory_space<vmem>>, vector<128x128xf32>
    %c0_2 = arith.constant 0 : index
    %c0_3 = arith.constant 0 : index
    %4 = vector.load %arg3[%c0_2, %c0_3] : memref<128x128xbf16, #tpu.memory_space<vmem>>, vector<128x128xbf16>
    %c0_4 = arith.constant 0 : index
    %c0_5 = arith.constant 0 : index
    %5 = vector.load %arg4[%c0_4, %c0_5] : memref<128x128xbf16, #tpu.memory_space<vmem>>, vector<128x128xbf16>
    %cst = arith.constant dense<0.000000e+00> : vector<128x128xf32>
    %6 = tpu.matmul %4, %5, %cst {dimension_numbers = #tpu.dot_dimension_numbers<[1], [0], [0], [1], [0, 0, 1, 1], [], []>} : vector<128x128xbf16>, vector<128x128xbf16>, vector<128x128xf32> -> vector<128x128xf32>
    %7 = arith.addf %3, %6 : vector<128x128xf32>
    %c0_6 = arith.constant 0 : index
    %c0_7 = arith.constant 0 : index
    %8 = vector.load %arg9[%c0_6, %c0_7] : memref<128x128xf32, #tpu.memory_space<vmem>>, vector<128x128xf32>
    tpu.vector_store %arg9[%c0_6, %c0_7], %7 {strides = array<i32>} : memref<128x128xf32, #tpu.memory_space<vmem>>, vector<128x128xf32>,
    %c0_i32_8 = arith.constant 0 : i32
    %9 = arith.cmpi eq, %arg2, %c0_i32_8 : i32
    %10 = arith.extui %9 : i1 to i32
    %c0_i32_9 = arith.constant 0 : i32
    %11 = arith.cmpi ne, %10, %c0_i32_9 : i32
    scf.if %11 {
      %c0_10 = arith.constant 0 : index
      %c0_11 = arith.constant 0 : index
      %12 = vector.load %arg9[%c0_10, %c0_11] : memref<128x128xf32, #tpu.memory_space<vmem>>, vector<128x128xf32>
      %c0_12 = arith.constant 0 : index
      %c0_13 = arith.constant 0 : index
      %13 = vector.load %arg5[%c0_12, %c0_13] : memref<1x128xf32, #tpu.memory_space<vmem>>, vector<1x128xf32>
      %14 = vector.broadcast %13 : vector<1x128xf32> to vector<128x128xf32>
      %15 = arith.addf %12, %14 : vector<128x128xf32>
      %16 = arith.truncf %15 : vector<128x128xf32> to vector<128x128xbf16>
      %c0_14 = arith.constant 0 : index
      %c0_15 = arith.constant 0 : index
      %17 = vector.load %arg6[%c0_14, %c0_15] : memref<128x128xbf16, #tpu.memory_space<vmem>>, vector<128x128xbf16>
      tpu.vector_store %arg6[%c0_14, %c0_15], %16 {strides = array<i32>} : memref<128x128xbf16, #tpu.memory_space<vmem>>, vector<128x128xbf16>,
      %cst_16 = arith.constant dense<0.000000e+00> : vector<128xf32>
      %18 = vector.multi_reduction <add>, %15, %cst_16 [0] : vector<128x128xf32> to vector<128xf32>
      %19 = vector.shape_cast %18 : vector<128xf32> to vector<1x128xf32>
      %20 = vector.shape_cast %19 : vector<1x128xf32> to vector<1x128xf32>
      %21 = vector.broadcast %20 : vector<1x128xf32> to vector<8x128xf32>
      %c0_17 = arith.constant 0 : index
      %c0_18 = arith.constant 0 : index
      %22 = vector.load %arg7[%c0_17, %c0_18] : memref<8x128xf32, #tpu.memory_space<vmem>>, vector<8x128xf32>
      tpu.vector_store %arg7[%c0_17, %c0_18], %21 {strides = array<i32>} : memref<8x128xf32, #tpu.memory_space<vmem>>, vector<8x128xf32>,
      %23 = arith.mulf %15, %15 : vector<128x128xf32>
      %cst_19 = arith.constant dense<0.000000e+00> : vector<128xf32>
      %24 = vector.multi_reduction <add>, %23, %cst_19 [0] : vector<128x128xf32> to vector<128xf32>
      %25 = vector.shape_cast %24 : vector<128xf32> to vector<1x128xf32>
      %26 = vector.shape_cast %25 : vector<1x128xf32> to vector<1x128xf32>
      %27 = vector.broadcast %26 : vector<1x128xf32> to vector<8x128xf32>
      %c0_20 = arith.constant 0 : index
      %c0_21 = arith.constant 0 : index
      %28 = vector.load %arg8[%c0_20, %c0_21] : memref<8x128xf32, #tpu.memory_space<vmem>>, vector<8x128xf32>
      tpu.vector_store %arg8[%c0_20, %c0_21], %27 {strides = array<i32>} : memref<8x128xf32, #tpu.memory_space<vmem>>, vector<8x128xf32>,
    } else {
    }
    return
  }
  func.func @transform_0(%arg0: i32, %arg1: i32, %arg2: i32) -> (i32, i32) {
    %c0_i32 = arith.constant 0 : i32
    return %arg0, %arg2 : i32, i32
  }
  func.func @transform_1(%arg0: i32, %arg1: i32, %arg2: i32) -> (i32, i32) {
    %c0_i32 = arith.constant 0 : i32
    return %arg2, %arg1 : i32, i32
  }
  func.func @transform_2(%arg0: i32, %arg1: i32, %arg2: i32) -> (i32, i32) {
    %c0_i32 = arith.constant 0 : i32
    %c0_i32_0 = arith.constant 0 : i32
    return %c0_i32, %arg1 : i32, i32
  }
  func.func @transform_3(%arg0: i32, %arg1: i32, %arg2: i32) -> (i32, i32) {
    %c0_i32 = arith.constant 0 : i32
    return %arg0, %arg1 : i32, i32
  }
  func.func @transform_4(%arg0: i32, %arg1: i32, %arg2: i32) -> (i32, i32) {
    %c0_i32 = arith.constant 0 : i32
    return %arg0, %arg1 : i32, i32
  }
  func.func @transform_5(%arg0: i32, %arg1: i32, %arg2: i32) -> (i32, i32) {
    %c0_i32 = arith.constant 0 : i32
    return %arg0, %arg1 : i32, i32
  }
}

module attributes {stable_mosaic.version = 11 : i64} {
  func.func @_gemm_kernel(%arg0: i32, %arg1: i32, %arg2: i32, %arg3: memref<32x256xbf16, #tpu.memory_space<vmem>>, %arg4: memref<256x128xbf16, #tpu.memory_space<vmem>>, %arg5: memref<1x128xf32, #tpu.memory_space<vmem>>, %arg6: memref<32x128xbf16, #tpu.memory_space<vmem>>, %arg7: memref<8x128xf32, #tpu.memory_space<vmem>>, %arg8: memref<8x128xf32, #tpu.memory_space<vmem>>, %arg9: memref<32x128xf32, #tpu.memory_space<vmem>>) attributes {dimension_semantics = [#tpu.dimension_semantics<parallel>, #tpu.dimension_semantics<parallel>, #tpu.dimension_semantics<arbitrary>], iteration_bounds = array<i64: 1, 1, 1>, scalar_prefetch = 0 : i64, scratch_operands = 1 : i64, tpu.core_type = #tpu.core_type<tc>, window_params = [{transform_indices = @transform_0, window_bounds = array<i64: 32, 256>}, {transform_indices = @transform_1, window_bounds = array<i64: 256, 128>}, {transform_indices = @transform_2, window_bounds = array<i64: 1, 128>}, {transform_indices = @transform_3, window_bounds = array<i64: 32, 128>}, {transform_indices = @transform_4, window_bounds = array<i64: 8, 128>}, {transform_indices = @transform_5, window_bounds = array<i64: 8, 128>}]} {
    %c0_i32 = arith.constant 0 : i32
    %0 = arith.cmpi eq, %arg2, %c0_i32 : i32
    %1 = arith.extui %0 : i1 to i32
    %c0_i32_0 = arith.constant 0 : i32
    %2 = arith.cmpi ne, %1, %c0_i32_0 : i32
    scf.if %2 {
      %cst_10 = arith.constant 0.000000e+00 : f32
      %12 = vector.broadcast %cst_10 : f32 to vector<32x128xf32>
      %c0_11 = arith.constant 0 : index
      %c0_12 = arith.constant 0 : index
      %13 = vector.load %arg9[%c0_11, %c0_12] : memref<32x128xf32, #tpu.memory_space<vmem>>, vector<32x128xf32>
      tpu.vector_store %arg9[%c0_11, %c0_12], %12 {strides = array<i32>} : memref<32x128xf32, #tpu.memory_space<vmem>>, vector<32x128xf32>,
    } else {
    }
    %c0 = arith.constant 0 : index
    %c0_1 = arith.constant 0 : index
    %3 = vector.load %arg9[%c0, %c0_1] : memref<32x128xf32, #tpu.memory_space<vmem>>, vector<32x128xf32>
    %c0_2 = arith.constant 0 : index
    %c0_3 = arith.constant 0 : index
    %4 = vector.load %arg3[%c0_2, %c0_3] : memref<32x256xbf16, #tpu.memory_space<vmem>>, vector<32x256xbf16>
    %c0_4 = arith.constant 0 : index
    %c0_5 = arith.constant 0 : index
    %5 = vector.load %arg4[%c0_4, %c0_5] : memref<256x128xbf16, #tpu.memory_space<vmem>>, vector<256x128xbf16>
    %cst = arith.constant dense<0.000000e+00> : vector<32x128xf32>
    %6 = tpu.matmul %4, %5, %cst {dimension_numbers = #tpu.dot_dimension_numbers<[1], [0], [0], [1], [0, 0, 1, 1], [], []>} : vector<32x256xbf16>, vector<256x128xbf16>, vector<32x128xf32> -> vector<32x128xf32>
    %7 = arith.addf %3, %6 : vector<32x128xf32>
    %c0_6 = arith.constant 0 : index
    %c0_7 = arith.constant 0 : index
    %8 = vector.load %arg9[%c0_6, %c0_7] : memref<32x128xf32, #tpu.memory_space<vmem>>, vector<32x128xf32>
    tpu.vector_store %arg9[%c0_6, %c0_7], %7 {strides = array<i32>} : memref<32x128xf32, #tpu.memory_space<vmem>>, vector<32x128xf32>,
    %c0_i32_8 = arith.constant 0 : i32
    %9 = arith.cmpi eq, %arg2, %c0_i32_8 : i32
    %10 = arith.extui %9 : i1 to i32
    %c0_i32_9 = arith.constant 0 : i32
    %11 = arith.cmpi ne, %10, %c0_i32_9 : i32
    scf.if %11 {
      %c0_10 = arith.constant 0 : index
      %c0_11 = arith.constant 0 : index
      %12 = vector.load %arg9[%c0_10, %c0_11] : memref<32x128xf32, #tpu.memory_space<vmem>>, vector<32x128xf32>
      %c0_12 = arith.constant 0 : index
      %c0_13 = arith.constant 0 : index
      %13 = vector.load %arg5[%c0_12, %c0_13] : memref<1x128xf32, #tpu.memory_space<vmem>>, vector<1x128xf32>
      %14 = vector.broadcast %13 : vector<1x128xf32> to vector<32x128xf32>
      %15 = arith.addf %12, %14 : vector<32x128xf32>
      %16 = arith.truncf %15 : vector<32x128xf32> to vector<32x128xbf16>
      %c0_14 = arith.constant 0 : index
      %c0_15 = arith.constant 0 : index
      %17 = vector.load %arg6[%c0_14, %c0_15] : memref<32x128xbf16, #tpu.memory_space<vmem>>, vector<32x128xbf16>
      tpu.vector_store %arg6[%c0_14, %c0_15], %16 {strides = array<i32>} : memref<32x128xbf16, #tpu.memory_space<vmem>>, vector<32x128xbf16>,
      %cst_16 = arith.constant dense<0.000000e+00> : vector<128xf32>
      %18 = vector.multi_reduction <add>, %15, %cst_16 [0] : vector<32x128xf32> to vector<128xf32>
      %19 = vector.shape_cast %18 : vector<128xf32> to vector<1x128xf32>
      %20 = vector.shape_cast %19 : vector<1x128xf32> to vector<1x128xf32>
      %21 = vector.broadcast %20 : vector<1x128xf32> to vector<8x128xf32>
      %c0_17 = arith.constant 0 : index
      %c0_18 = arith.constant 0 : index
      %22 = vector.load %arg7[%c0_17, %c0_18] : memref<8x128xf32, #tpu.memory_space<vmem>>, vector<8x128xf32>
      tpu.vector_store %arg7[%c0_17, %c0_18], %21 {strides = array<i32>} : memref<8x128xf32, #tpu.memory_space<vmem>>, vector<8x128xf32>,
      %23 = arith.mulf %15, %15 : vector<32x128xf32>
      %cst_19 = arith.constant dense<0.000000e+00> : vector<128xf32>
      %24 = vector.multi_reduction <add>, %23, %cst_19 [0] : vector<32x128xf32> to vector<128xf32>
      %25 = vector.shape_cast %24 : vector<128xf32> to vector<1x128xf32>
      %26 = vector.shape_cast %25 : vector<1x128xf32> to vector<1x128xf32>
      %27 = vector.broadcast %26 : vector<1x128xf32> to vector<8x128xf32>
      %c0_20 = arith.constant 0 : index
      %c0_21 = arith.constant 0 : index
      %28 = vector.load %arg8[%c0_20, %c0_21] : memref<8x128xf32, #tpu.memory_space<vmem>>, vector<8x128xf32>
      tpu.vector_store %arg8[%c0_20, %c0_21], %27 {strides = array<i32>} : memref<8x128xf32, #tpu.memory_space<vmem>>, vector<8x128xf32>,
    } else {
    }
    return
  }
  func.func @transform_0(%arg0: i32, %arg1: i32, %arg2: i32) -> (i32, i32) {
    %c0_i32 = arith.constant 0 : i32
    return %arg0, %arg2 : i32, i32
  }
  func.func @transform_1(%arg0: i32, %arg1: i32, %arg2: i32) -> (i32, i32) {
    %c0_i32 = arith.constant 0 : i32
    return %arg2, %arg1 : i32, i32
  }
  func.func @transform_2(%arg0: i32, %arg1: i32, %arg2: i32) -> (i32, i32) {
    %c0_i32 = arith.constant 0 : i32
    %c0_i32_0 = arith.constant 0 : i32
    return %c0_i32, %arg1 : i32, i32
  }
  func.func @transform_3(%arg0: i32, %arg1: i32, %arg2: i32) -> (i32, i32) {
    %c0_i32 = arith.constant 0 : i32
    return %arg0, %arg1 : i32, i32
  }
  func.func @transform_4(%arg0: i32, %arg1: i32, %arg2: i32) -> (i32, i32) {
    %c0_i32 = arith.constant 0 : i32
    return %arg0, %arg1 : i32, i32
  }
  func.func @transform_5(%arg0: i32, %arg1: i32, %arg2: i32) -> (i32, i32) {
    %c0_i32 = arith.constant 0 : i32
    return %arg0, %arg1 : i32, i32
  }
}

module attributes {stable_mosaic.version = 11 : i64} {
  func.func @_bn_act_kernel(%arg0: i32, %arg1: memref<32x32xbf16, #tpu.memory_space<vmem>>, %arg2: memref<1x32xf32, #tpu.memory_space<vmem>>, %arg3: memref<1x32xf32, #tpu.memory_space<vmem>>, %arg4: memref<32x32xbf16, #tpu.memory_space<vmem>>) attributes {dimension_semantics = [#tpu.dimension_semantics<parallel>], iteration_bounds = array<i64: 1>, scalar_prefetch = 0 : i64, scratch_operands = 0 : i64, tpu.core_type = #tpu.core_type<tc>, window_params = [{transform_indices = @transform_0, window_bounds = array<i64: 32, 32>}, {pipeline_mode = #tpu.pipeline_mode<synchronous>, transform_indices = @transform_1, window_bounds = array<i64: 1, 32>}, {pipeline_mode = #tpu.pipeline_mode<synchronous>, transform_indices = @transform_2, window_bounds = array<i64: 1, 32>}, {transform_indices = @transform_3, window_bounds = array<i64: 32, 32>}]} {
    %c0 = arith.constant 0 : index
    %c0_0 = arith.constant 0 : index
    %0 = vector.load %arg1[%c0, %c0_0] : memref<32x32xbf16, #tpu.memory_space<vmem>>, vector<32x32xbf16>
    %1 = arith.extf %0 : vector<32x32xbf16> to vector<32x32xf32>
    %c0_1 = arith.constant 0 : index
    %c0_2 = arith.constant 0 : index
    %2 = vector.load %arg2[%c0_1, %c0_2] : memref<1x32xf32, #tpu.memory_space<vmem>>, vector<1x32xf32>
    %3 = vector.broadcast %2 : vector<1x32xf32> to vector<32x32xf32>
    %4 = arith.mulf %1, %3 : vector<32x32xf32>
    %c0_3 = arith.constant 0 : index
    %c0_4 = arith.constant 0 : index
    %5 = vector.load %arg3[%c0_3, %c0_4] : memref<1x32xf32, #tpu.memory_space<vmem>>, vector<1x32xf32>
    %6 = vector.broadcast %5 : vector<1x32xf32> to vector<32x32xf32>
    %7 = arith.addf %4, %6 : vector<32x32xf32>
    %cst = arith.constant 0.000000e+00 : f32
    %8 = vector.broadcast %cst : f32 to vector<32x32xf32>
    %9 = arith.cmpf oge, %7, %8 : vector<32x32xf32>
    %cst_5 = arith.constant 2.000000e-01 : f32
    %10 = vector.broadcast %cst_5 : f32 to vector<32x32xf32>
    %11 = arith.mulf %10, %7 : vector<32x32xf32>
    %12 = arith.select %9, %7, %11 : vector<32x32xi1>, vector<32x32xf32>
    %13 = arith.truncf %12 : vector<32x32xf32> to vector<32x32xbf16>
    %c0_6 = arith.constant 0 : index
    %c0_7 = arith.constant 0 : index
    %14 = vector.load %arg4[%c0_6, %c0_7] : memref<32x32xbf16, #tpu.memory_space<vmem>>, vector<32x32xbf16>
    tpu.vector_store %arg4[%c0_6, %c0_7], %13 {strides = array<i32>} : memref<32x32xbf16, #tpu.memory_space<vmem>>, vector<32x32xbf16>,
    return
  }
  func.func @transform_0(%arg0: i32) -> (i32, i32) {
    %c0_i32 = arith.constant 0 : i32
    %c0_i32_0 = arith.constant 0 : i32
    return %arg0, %c0_i32 : i32, i32
  }
  func.func @transform_1(%arg0: i32) -> (i32, i32) {
    %c0_i32 = arith.constant 0 : i32
    %c0_i32_0 = arith.constant 0 : i32
    %c0_i32_1 = arith.constant 0 : i32
    return %c0_i32, %c0_i32_0 : i32, i32
  }
  func.func @transform_2(%arg0: i32) -> (i32, i32) {
    %c0_i32 = arith.constant 0 : i32
    %c0_i32_0 = arith.constant 0 : i32
    %c0_i32_1 = arith.constant 0 : i32
    return %c0_i32, %c0_i32_0 : i32, i32
  }
  func.func @transform_3(%arg0: i32) -> (i32, i32) {
    %c0_i32 = arith.constant 0 : i32
    %c0_i32_0 = arith.constant 0 : i32
    return %arg0, %c0_i32 : i32, i32
  }
}

module attributes {stable_mosaic.version = 11 : i64} {
  func.func @_bn_relu_pair_kernel(%arg0: i32, %arg1: memref<32x32xbf16, #tpu.memory_space<vmem>>, %arg2: memref<32x32xbf16, #tpu.memory_space<vmem>>, %arg3: memref<1x32xf32, #tpu.memory_space<vmem>>, %arg4: memref<1x32xf32, #tpu.memory_space<vmem>>, %arg5: memref<32x32xbf16, #tpu.memory_space<vmem>>, %arg6: memref<32x32xbf16, #tpu.memory_space<vmem>>) attributes {dimension_semantics = [#tpu.dimension_semantics<parallel>], iteration_bounds = array<i64: 1>, scalar_prefetch = 0 : i64, scratch_operands = 0 : i64, tpu.core_type = #tpu.core_type<tc>, window_params = [{transform_indices = @transform_0, window_bounds = array<i64: 32, 32>}, {transform_indices = @transform_1, window_bounds = array<i64: 32, 32>}, {pipeline_mode = #tpu.pipeline_mode<synchronous>, transform_indices = @transform_2, window_bounds = array<i64: 1, 32>}, {pipeline_mode = #tpu.pipeline_mode<synchronous>, transform_indices = @transform_3, window_bounds = array<i64: 1, 32>}, {transform_indices = @transform_4, window_bounds = array<i64: 32, 32>}, {transform_indices = @transform_5, window_bounds = array<i64: 32, 32>}]} {
    %c0 = arith.constant 0 : index
    %c0_0 = arith.constant 0 : index
    %0 = vector.load %arg1[%c0, %c0_0] : memref<32x32xbf16, #tpu.memory_space<vmem>>, vector<32x32xbf16>
    %1 = arith.extf %0 : vector<32x32xbf16> to vector<32x32xf32>
    %cst = arith.constant 0.000000e+00 : f32
    %2 = vector.broadcast %cst : f32 to vector<32x32xf32>
    %3 = arith.maximumf %1, %2 : vector<32x32xf32>
    %4 = arith.truncf %3 : vector<32x32xf32> to vector<32x32xbf16>
    %c0_1 = arith.constant 0 : index
    %c0_2 = arith.constant 0 : index
    %5 = vector.load %arg5[%c0_1, %c0_2] : memref<32x32xbf16, #tpu.memory_space<vmem>>, vector<32x32xbf16>
    tpu.vector_store %arg5[%c0_1, %c0_2], %4 {strides = array<i32>} : memref<32x32xbf16, #tpu.memory_space<vmem>>, vector<32x32xbf16>,
    %c0_3 = arith.constant 0 : index
    %c0_4 = arith.constant 0 : index
    %6 = vector.load %arg2[%c0_3, %c0_4] : memref<32x32xbf16, #tpu.memory_space<vmem>>, vector<32x32xbf16>
    %7 = arith.extf %6 : vector<32x32xbf16> to vector<32x32xf32>
    %c0_5 = arith.constant 0 : index
    %c0_6 = arith.constant 0 : index
    %8 = vector.load %arg3[%c0_5, %c0_6] : memref<1x32xf32, #tpu.memory_space<vmem>>, vector<1x32xf32>
    %9 = vector.broadcast %8 : vector<1x32xf32> to vector<32x32xf32>
    %10 = arith.mulf %7, %9 : vector<32x32xf32>
    %c0_7 = arith.constant 0 : index
    %c0_8 = arith.constant 0 : index
    %11 = vector.load %arg4[%c0_7, %c0_8] : memref<1x32xf32, #tpu.memory_space<vmem>>, vector<1x32xf32>
    %12 = vector.broadcast %11 : vector<1x32xf32> to vector<32x32xf32>
    %13 = arith.addf %10, %12 : vector<32x32xf32>
    %cst_9 = arith.constant 0.000000e+00 : f32
    %14 = vector.broadcast %cst_9 : f32 to vector<32x32xf32>
    %15 = arith.maximumf %13, %14 : vector<32x32xf32>
    %16 = arith.truncf %15 : vector<32x32xf32> to vector<32x32xbf16>
    %c0_10 = arith.constant 0 : index
    %c0_11 = arith.constant 0 : index
    %17 = vector.load %arg6[%c0_10, %c0_11] : memref<32x32xbf16, #tpu.memory_space<vmem>>, vector<32x32xbf16>
    tpu.vector_store %arg6[%c0_10, %c0_11], %16 {strides = array<i32>} : memref<32x32xbf16, #tpu.memory_space<vmem>>, vector<32x32xbf16>,
    return
  }
  func.func @transform_0(%arg0: i32) -> (i32, i32) {
    %c0_i32 = arith.constant 0 : i32
    %c0_i32_0 = arith.constant 0 : i32
    return %arg0, %c0_i32 : i32, i32
  }
  func.func @transform_1(%arg0: i32) -> (i32, i32) {
    %c0_i32 = arith.constant 0 : i32
    %c0_i32_0 = arith.constant 0 : i32
    return %arg0, %c0_i32 : i32, i32
  }
  func.func @transform_2(%arg0: i32) -> (i32, i32) {
    %c0_i32 = arith.constant 0 : i32
    %c0_i32_0 = arith.constant 0 : i32
    %c0_i32_1 = arith.constant 0 : i32
    return %c0_i32, %c0_i32_0 : i32, i32
  }
  func.func @transform_3(%arg0: i32) -> (i32, i32) {
    %c0_i32 = arith.constant 0 : i32
    %c0_i32_0 = arith.constant 0 : i32
    %c0_i32_1 = arith.constant 0 : i32
    return %c0_i32, %c0_i32_0 : i32, i32
  }
  func.func @transform_4(%arg0: i32) -> (i32, i32) {
    %c0_i32 = arith.constant 0 : i32
    %c0_i32_0 = arith.constant 0 : i32
    return %arg0, %c0_i32 : i32, i32
  }
  func.func @transform_5(%arg0: i32) -> (i32, i32) {
    %c0_i32 = arith.constant 0 : i32
    %c0_i32_0 = arith.constant 0 : i32
    return %arg0, %c0_i32 : i32, i32
  }
}

module attributes {stable_mosaic.version = 11 : i64} {
  func.func @_gemm_kernel(%arg0: i32, %arg1: i32, %arg2: i32, %arg3: memref<32x640xbf16, #tpu.memory_space<vmem>>, %arg4: memref<640x128xbf16, #tpu.memory_space<vmem>>, %arg5: memref<1x128xf32, #tpu.memory_space<vmem>>, %arg6: memref<32x128xbf16, #tpu.memory_space<vmem>>, %arg7: memref<8x128xf32, #tpu.memory_space<vmem>>, %arg8: memref<8x128xf32, #tpu.memory_space<vmem>>, %arg9: memref<32x128xf32, #tpu.memory_space<vmem>>) attributes {dimension_semantics = [#tpu.dimension_semantics<parallel>, #tpu.dimension_semantics<parallel>, #tpu.dimension_semantics<arbitrary>], iteration_bounds = array<i64: 1, 1, 1>, scalar_prefetch = 0 : i64, scratch_operands = 1 : i64, tpu.core_type = #tpu.core_type<tc>, window_params = [{transform_indices = @transform_0, window_bounds = array<i64: 32, 640>}, {transform_indices = @transform_1, window_bounds = array<i64: 640, 128>}, {transform_indices = @transform_2, window_bounds = array<i64: 1, 128>}, {transform_indices = @transform_3, window_bounds = array<i64: 32, 128>}, {transform_indices = @transform_4, window_bounds = array<i64: 8, 128>}, {transform_indices = @transform_5, window_bounds = array<i64: 8, 128>}]} {
    %c0_i32 = arith.constant 0 : i32
    %0 = arith.cmpi eq, %arg2, %c0_i32 : i32
    %1 = arith.extui %0 : i1 to i32
    %c0_i32_0 = arith.constant 0 : i32
    %2 = arith.cmpi ne, %1, %c0_i32_0 : i32
    scf.if %2 {
      %cst_10 = arith.constant 0.000000e+00 : f32
      %12 = vector.broadcast %cst_10 : f32 to vector<32x128xf32>
      %c0_11 = arith.constant 0 : index
      %c0_12 = arith.constant 0 : index
      %13 = vector.load %arg9[%c0_11, %c0_12] : memref<32x128xf32, #tpu.memory_space<vmem>>, vector<32x128xf32>
      tpu.vector_store %arg9[%c0_11, %c0_12], %12 {strides = array<i32>} : memref<32x128xf32, #tpu.memory_space<vmem>>, vector<32x128xf32>,
    } else {
    }
    %c0 = arith.constant 0 : index
    %c0_1 = arith.constant 0 : index
    %3 = vector.load %arg9[%c0, %c0_1] : memref<32x128xf32, #tpu.memory_space<vmem>>, vector<32x128xf32>
    %c0_2 = arith.constant 0 : index
    %c0_3 = arith.constant 0 : index
    %4 = vector.load %arg3[%c0_2, %c0_3] : memref<32x640xbf16, #tpu.memory_space<vmem>>, vector<32x640xbf16>
    %c0_4 = arith.constant 0 : index
    %c0_5 = arith.constant 0 : index
    %5 = vector.load %arg4[%c0_4, %c0_5] : memref<640x128xbf16, #tpu.memory_space<vmem>>, vector<640x128xbf16>
    %cst = arith.constant dense<0.000000e+00> : vector<32x128xf32>
    %6 = tpu.matmul %4, %5, %cst {dimension_numbers = #tpu.dot_dimension_numbers<[1], [0], [0], [1], [0, 0, 1, 1], [], []>} : vector<32x640xbf16>, vector<640x128xbf16>, vector<32x128xf32> -> vector<32x128xf32>
    %7 = arith.addf %3, %6 : vector<32x128xf32>
    %c0_6 = arith.constant 0 : index
    %c0_7 = arith.constant 0 : index
    %8 = vector.load %arg9[%c0_6, %c0_7] : memref<32x128xf32, #tpu.memory_space<vmem>>, vector<32x128xf32>
    tpu.vector_store %arg9[%c0_6, %c0_7], %7 {strides = array<i32>} : memref<32x128xf32, #tpu.memory_space<vmem>>, vector<32x128xf32>,
    %c0_i32_8 = arith.constant 0 : i32
    %9 = arith.cmpi eq, %arg2, %c0_i32_8 : i32
    %10 = arith.extui %9 : i1 to i32
    %c0_i32_9 = arith.constant 0 : i32
    %11 = arith.cmpi ne, %10, %c0_i32_9 : i32
    scf.if %11 {
      %c0_10 = arith.constant 0 : index
      %c0_11 = arith.constant 0 : index
      %12 = vector.load %arg9[%c0_10, %c0_11] : memref<32x128xf32, #tpu.memory_space<vmem>>, vector<32x128xf32>
      %c0_12 = arith.constant 0 : index
      %c0_13 = arith.constant 0 : index
      %13 = vector.load %arg5[%c0_12, %c0_13] : memref<1x128xf32, #tpu.memory_space<vmem>>, vector<1x128xf32>
      %14 = vector.broadcast %13 : vector<1x128xf32> to vector<32x128xf32>
      %15 = arith.addf %12, %14 : vector<32x128xf32>
      %16 = arith.truncf %15 : vector<32x128xf32> to vector<32x128xbf16>
      %c0_14 = arith.constant 0 : index
      %c0_15 = arith.constant 0 : index
      %17 = vector.load %arg6[%c0_14, %c0_15] : memref<32x128xbf16, #tpu.memory_space<vmem>>, vector<32x128xbf16>
      tpu.vector_store %arg6[%c0_14, %c0_15], %16 {strides = array<i32>} : memref<32x128xbf16, #tpu.memory_space<vmem>>, vector<32x128xbf16>,
      %cst_16 = arith.constant dense<0.000000e+00> : vector<128xf32>
      %18 = vector.multi_reduction <add>, %15, %cst_16 [0] : vector<32x128xf32> to vector<128xf32>
      %19 = vector.shape_cast %18 : vector<128xf32> to vector<1x128xf32>
      %20 = vector.shape_cast %19 : vector<1x128xf32> to vector<1x128xf32>
      %21 = vector.broadcast %20 : vector<1x128xf32> to vector<8x128xf32>
      %c0_17 = arith.constant 0 : index
      %c0_18 = arith.constant 0 : index
      %22 = vector.load %arg7[%c0_17, %c0_18] : memref<8x128xf32, #tpu.memory_space<vmem>>, vector<8x128xf32>
      tpu.vector_store %arg7[%c0_17, %c0_18], %21 {strides = array<i32>} : memref<8x128xf32, #tpu.memory_space<vmem>>, vector<8x128xf32>,
      %23 = arith.mulf %15, %15 : vector<32x128xf32>
      %cst_19 = arith.constant dense<0.000000e+00> : vector<128xf32>
      %24 = vector.multi_reduction <add>, %23, %cst_19 [0] : vector<32x128xf32> to vector<128xf32>
      %25 = vector.shape_cast %24 : vector<128xf32> to vector<1x128xf32>
      %26 = vector.shape_cast %25 : vector<1x128xf32> to vector<1x128xf32>
      %27 = vector.broadcast %26 : vector<1x128xf32> to vector<8x128xf32>
      %c0_20 = arith.constant 0 : index
      %c0_21 = arith.constant 0 : index
      %28 = vector.load %arg8[%c0_20, %c0_21] : memref<8x128xf32, #tpu.memory_space<vmem>>, vector<8x128xf32>
      tpu.vector_store %arg8[%c0_20, %c0_21], %27 {strides = array<i32>} : memref<8x128xf32, #tpu.memory_space<vmem>>, vector<8x128xf32>,
    } else {
    }
    return
  }
  func.func @transform_0(%arg0: i32, %arg1: i32, %arg2: i32) -> (i32, i32) {
    %c0_i32 = arith.constant 0 : i32
    return %arg0, %arg2 : i32, i32
  }
  func.func @transform_1(%arg0: i32, %arg1: i32, %arg2: i32) -> (i32, i32) {
    %c0_i32 = arith.constant 0 : i32
    return %arg2, %arg1 : i32, i32
  }
  func.func @transform_2(%arg0: i32, %arg1: i32, %arg2: i32) -> (i32, i32) {
    %c0_i32 = arith.constant 0 : i32
    %c0_i32_0 = arith.constant 0 : i32
    return %c0_i32, %arg1 : i32, i32
  }
  func.func @transform_3(%arg0: i32, %arg1: i32, %arg2: i32) -> (i32, i32) {
    %c0_i32 = arith.constant 0 : i32
    return %arg0, %arg1 : i32, i32
  }
  func.func @transform_4(%arg0: i32, %arg1: i32, %arg2: i32) -> (i32, i32) {
    %c0_i32 = arith.constant 0 : i32
    return %arg0, %arg1 : i32, i32
  }
  func.func @transform_5(%arg0: i32, %arg1: i32, %arg2: i32) -> (i32, i32) {
    %c0_i32 = arith.constant 0 : i32
    return %arg0, %arg1 : i32, i32
  }
}

module attributes {stable_mosaic.version = 11 : i64} {
  func.func @_bn_relu_pair_kernel(%arg0: i32, %arg1: memref<128x16xbf16, #tpu.memory_space<vmem>>, %arg2: memref<128x16xbf16, #tpu.memory_space<vmem>>, %arg3: memref<1x16xf32, #tpu.memory_space<vmem>>, %arg4: memref<1x16xf32, #tpu.memory_space<vmem>>, %arg5: memref<128x16xbf16, #tpu.memory_space<vmem>>, %arg6: memref<128x16xbf16, #tpu.memory_space<vmem>>) attributes {dimension_semantics = [#tpu.dimension_semantics<parallel>], iteration_bounds = array<i64: 1>, scalar_prefetch = 0 : i64, scratch_operands = 0 : i64, tpu.core_type = #tpu.core_type<tc>, window_params = [{transform_indices = @transform_0, window_bounds = array<i64: 128, 16>}, {transform_indices = @transform_1, window_bounds = array<i64: 128, 16>}, {pipeline_mode = #tpu.pipeline_mode<synchronous>, transform_indices = @transform_2, window_bounds = array<i64: 1, 16>}, {pipeline_mode = #tpu.pipeline_mode<synchronous>, transform_indices = @transform_3, window_bounds = array<i64: 1, 16>}, {transform_indices = @transform_4, window_bounds = array<i64: 128, 16>}, {transform_indices = @transform_5, window_bounds = array<i64: 128, 16>}]} {
    %c0 = arith.constant 0 : index
    %c0_0 = arith.constant 0 : index
    %0 = vector.load %arg1[%c0, %c0_0] : memref<128x16xbf16, #tpu.memory_space<vmem>>, vector<128x16xbf16>
    %1 = arith.extf %0 : vector<128x16xbf16> to vector<128x16xf32>
    %cst = arith.constant 0.000000e+00 : f32
    %2 = vector.broadcast %cst : f32 to vector<128x16xf32>
    %3 = arith.maximumf %1, %2 : vector<128x16xf32>
    %4 = arith.truncf %3 : vector<128x16xf32> to vector<128x16xbf16>
    %c0_1 = arith.constant 0 : index
    %c0_2 = arith.constant 0 : index
    %5 = vector.load %arg5[%c0_1, %c0_2] : memref<128x16xbf16, #tpu.memory_space<vmem>>, vector<128x16xbf16>
    tpu.vector_store %arg5[%c0_1, %c0_2], %4 {strides = array<i32>} : memref<128x16xbf16, #tpu.memory_space<vmem>>, vector<128x16xbf16>,
    %c0_3 = arith.constant 0 : index
    %c0_4 = arith.constant 0 : index
    %6 = vector.load %arg2[%c0_3, %c0_4] : memref<128x16xbf16, #tpu.memory_space<vmem>>, vector<128x16xbf16>
    %7 = arith.extf %6 : vector<128x16xbf16> to vector<128x16xf32>
    %c0_5 = arith.constant 0 : index
    %c0_6 = arith.constant 0 : index
    %8 = vector.load %arg3[%c0_5, %c0_6] : memref<1x16xf32, #tpu.memory_space<vmem>>, vector<1x16xf32>
    %9 = vector.broadcast %8 : vector<1x16xf32> to vector<128x16xf32>
    %10 = arith.mulf %7, %9 : vector<128x16xf32>
    %c0_7 = arith.constant 0 : index
    %c0_8 = arith.constant 0 : index
    %11 = vector.load %arg4[%c0_7, %c0_8] : memref<1x16xf32, #tpu.memory_space<vmem>>, vector<1x16xf32>
    %12 = vector.broadcast %11 : vector<1x16xf32> to vector<128x16xf32>
    %13 = arith.addf %10, %12 : vector<128x16xf32>
    %cst_9 = arith.constant 0.000000e+00 : f32
    %14 = vector.broadcast %cst_9 : f32 to vector<128x16xf32>
    %15 = arith.maximumf %13, %14 : vector<128x16xf32>
    %16 = arith.truncf %15 : vector<128x16xf32> to vector<128x16xbf16>
    %c0_10 = arith.constant 0 : index
    %c0_11 = arith.constant 0 : index
    %17 = vector.load %arg6[%c0_10, %c0_11] : memref<128x16xbf16, #tpu.memory_space<vmem>>, vector<128x16xbf16>
    tpu.vector_store %arg6[%c0_10, %c0_11], %16 {strides = array<i32>} : memref<128x16xbf16, #tpu.memory_space<vmem>>, vector<128x16xbf16>,
    return
  }
  func.func @transform_0(%arg0: i32) -> (i32, i32) {
    %c0_i32 = arith.constant 0 : i32
    %c0_i32_0 = arith.constant 0 : i32
    return %arg0, %c0_i32 : i32, i32
  }
  func.func @transform_1(%arg0: i32) -> (i32, i32) {
    %c0_i32 = arith.constant 0 : i32
    %c0_i32_0 = arith.constant 0 : i32
    return %arg0, %c0_i32 : i32, i32
  }
  func.func @transform_2(%arg0: i32) -> (i32, i32) {
    %c0_i32 = arith.constant 0 : i32
    %c0_i32_0 = arith.constant 0 : i32
    %c0_i32_1 = arith.constant 0 : i32
    return %c0_i32, %c0_i32_0 : i32, i32
  }
  func.func @transform_3(%arg0: i32) -> (i32, i32) {
    %c0_i32 = arith.constant 0 : i32
    %c0_i32_0 = arith.constant 0 : i32
    %c0_i32_1 = arith.constant 0 : i32
    return %c0_i32, %c0_i32_0 : i32, i32
  }
  func.func @transform_4(%arg0: i32) -> (i32, i32) {
    %c0_i32 = arith.constant 0 : i32
    %c0_i32_0 = arith.constant 0 : i32
    return %arg0, %c0_i32 : i32, i32
  }
  func.func @transform_5(%arg0: i32) -> (i32, i32) {
    %c0_i32 = arith.constant 0 : i32
    %c0_i32_0 = arith.constant 0 : i32
    return %arg0, %c0_i32 : i32, i32
  }
}

module attributes {stable_mosaic.version = 11 : i64} {
  func.func @_gemm_kernel(%arg0: i32, %arg1: i32, %arg2: i32, %arg3: memref<128x384xbf16, #tpu.memory_space<vmem>>, %arg4: memref<384x128xbf16, #tpu.memory_space<vmem>>, %arg5: memref<1x128xf32, #tpu.memory_space<vmem>>, %arg6: memref<128x128xbf16, #tpu.memory_space<vmem>>, %arg7: memref<8x128xf32, #tpu.memory_space<vmem>>, %arg8: memref<8x128xf32, #tpu.memory_space<vmem>>, %arg9: memref<128x128xf32, #tpu.memory_space<vmem>>) attributes {dimension_semantics = [#tpu.dimension_semantics<parallel>, #tpu.dimension_semantics<parallel>, #tpu.dimension_semantics<arbitrary>], iteration_bounds = array<i64: 1, 1, 1>, scalar_prefetch = 0 : i64, scratch_operands = 1 : i64, tpu.core_type = #tpu.core_type<tc>, window_params = [{transform_indices = @transform_0, window_bounds = array<i64: 128, 384>}, {transform_indices = @transform_1, window_bounds = array<i64: 384, 128>}, {transform_indices = @transform_2, window_bounds = array<i64: 1, 128>}, {transform_indices = @transform_3, window_bounds = array<i64: 128, 128>}, {transform_indices = @transform_4, window_bounds = array<i64: 8, 128>}, {transform_indices = @transform_5, window_bounds = array<i64: 8, 128>}]} {
    %c0_i32 = arith.constant 0 : i32
    %0 = arith.cmpi eq, %arg2, %c0_i32 : i32
    %1 = arith.extui %0 : i1 to i32
    %c0_i32_0 = arith.constant 0 : i32
    %2 = arith.cmpi ne, %1, %c0_i32_0 : i32
    scf.if %2 {
      %cst_10 = arith.constant 0.000000e+00 : f32
      %12 = vector.broadcast %cst_10 : f32 to vector<128x128xf32>
      %c0_11 = arith.constant 0 : index
      %c0_12 = arith.constant 0 : index
      %13 = vector.load %arg9[%c0_11, %c0_12] : memref<128x128xf32, #tpu.memory_space<vmem>>, vector<128x128xf32>
      tpu.vector_store %arg9[%c0_11, %c0_12], %12 {strides = array<i32>} : memref<128x128xf32, #tpu.memory_space<vmem>>, vector<128x128xf32>,
    } else {
    }
    %c0 = arith.constant 0 : index
    %c0_1 = arith.constant 0 : index
    %3 = vector.load %arg9[%c0, %c0_1] : memref<128x128xf32, #tpu.memory_space<vmem>>, vector<128x128xf32>
    %c0_2 = arith.constant 0 : index
    %c0_3 = arith.constant 0 : index
    %4 = vector.load %arg3[%c0_2, %c0_3] : memref<128x384xbf16, #tpu.memory_space<vmem>>, vector<128x384xbf16>
    %c0_4 = arith.constant 0 : index
    %c0_5 = arith.constant 0 : index
    %5 = vector.load %arg4[%c0_4, %c0_5] : memref<384x128xbf16, #tpu.memory_space<vmem>>, vector<384x128xbf16>
    %cst = arith.constant dense<0.000000e+00> : vector<128x128xf32>
    %6 = tpu.matmul %4, %5, %cst {dimension_numbers = #tpu.dot_dimension_numbers<[1], [0], [0], [1], [0, 0, 1, 1], [], []>} : vector<128x384xbf16>, vector<384x128xbf16>, vector<128x128xf32> -> vector<128x128xf32>
    %7 = arith.addf %3, %6 : vector<128x128xf32>
    %c0_6 = arith.constant 0 : index
    %c0_7 = arith.constant 0 : index
    %8 = vector.load %arg9[%c0_6, %c0_7] : memref<128x128xf32, #tpu.memory_space<vmem>>, vector<128x128xf32>
    tpu.vector_store %arg9[%c0_6, %c0_7], %7 {strides = array<i32>} : memref<128x128xf32, #tpu.memory_space<vmem>>, vector<128x128xf32>,
    %c0_i32_8 = arith.constant 0 : i32
    %9 = arith.cmpi eq, %arg2, %c0_i32_8 : i32
    %10 = arith.extui %9 : i1 to i32
    %c0_i32_9 = arith.constant 0 : i32
    %11 = arith.cmpi ne, %10, %c0_i32_9 : i32
    scf.if %11 {
      %c0_10 = arith.constant 0 : index
      %c0_11 = arith.constant 0 : index
      %12 = vector.load %arg9[%c0_10, %c0_11] : memref<128x128xf32, #tpu.memory_space<vmem>>, vector<128x128xf32>
      %c0_12 = arith.constant 0 : index
      %c0_13 = arith.constant 0 : index
      %13 = vector.load %arg5[%c0_12, %c0_13] : memref<1x128xf32, #tpu.memory_space<vmem>>, vector<1x128xf32>
      %14 = vector.broadcast %13 : vector<1x128xf32> to vector<128x128xf32>
      %15 = arith.addf %12, %14 : vector<128x128xf32>
      %16 = arith.truncf %15 : vector<128x128xf32> to vector<128x128xbf16>
      %c0_14 = arith.constant 0 : index
      %c0_15 = arith.constant 0 : index
      %17 = vector.load %arg6[%c0_14, %c0_15] : memref<128x128xbf16, #tpu.memory_space<vmem>>, vector<128x128xbf16>
      tpu.vector_store %arg6[%c0_14, %c0_15], %16 {strides = array<i32>} : memref<128x128xbf16, #tpu.memory_space<vmem>>, vector<128x128xbf16>,
      %cst_16 = arith.constant dense<0.000000e+00> : vector<128xf32>
      %18 = vector.multi_reduction <add>, %15, %cst_16 [0] : vector<128x128xf32> to vector<128xf32>
      %19 = vector.shape_cast %18 : vector<128xf32> to vector<1x128xf32>
      %20 = vector.shape_cast %19 : vector<1x128xf32> to vector<1x128xf32>
      %21 = vector.broadcast %20 : vector<1x128xf32> to vector<8x128xf32>
      %c0_17 = arith.constant 0 : index
      %c0_18 = arith.constant 0 : index
      %22 = vector.load %arg7[%c0_17, %c0_18] : memref<8x128xf32, #tpu.memory_space<vmem>>, vector<8x128xf32>
      tpu.vector_store %arg7[%c0_17, %c0_18], %21 {strides = array<i32>} : memref<8x128xf32, #tpu.memory_space<vmem>>, vector<8x128xf32>,
      %23 = arith.mulf %15, %15 : vector<128x128xf32>
      %cst_19 = arith.constant dense<0.000000e+00> : vector<128xf32>
      %24 = vector.multi_reduction <add>, %23, %cst_19 [0] : vector<128x128xf32> to vector<128xf32>
      %25 = vector.shape_cast %24 : vector<128xf32> to vector<1x128xf32>
      %26 = vector.shape_cast %25 : vector<1x128xf32> to vector<1x128xf32>
      %27 = vector.broadcast %26 : vector<1x128xf32> to vector<8x128xf32>
      %c0_20 = arith.constant 0 : index
      %c0_21 = arith.constant 0 : index
      %28 = vector.load %arg8[%c0_20, %c0_21] : memref<8x128xf32, #tpu.memory_space<vmem>>, vector<8x128xf32>
      tpu.vector_store %arg8[%c0_20, %c0_21], %27 {strides = array<i32>} : memref<8x128xf32, #tpu.memory_space<vmem>>, vector<8x128xf32>,
    } else {
    }
    return
  }
  func.func @transform_0(%arg0: i32, %arg1: i32, %arg2: i32) -> (i32, i32) {
    %c0_i32 = arith.constant 0 : i32
    return %arg0, %arg2 : i32, i32
  }
  func.func @transform_1(%arg0: i32, %arg1: i32, %arg2: i32) -> (i32, i32) {
    %c0_i32 = arith.constant 0 : i32
    return %arg2, %arg1 : i32, i32
  }
  func.func @transform_2(%arg0: i32, %arg1: i32, %arg2: i32) -> (i32, i32) {
    %c0_i32 = arith.constant 0 : i32
    %c0_i32_0 = arith.constant 0 : i32
    return %c0_i32, %arg1 : i32, i32
  }
  func.func @transform_3(%arg0: i32, %arg1: i32, %arg2: i32) -> (i32, i32) {
    %c0_i32 = arith.constant 0 : i32
    return %arg0, %arg1 : i32, i32
  }
  func.func @transform_4(%arg0: i32, %arg1: i32, %arg2: i32) -> (i32, i32) {
    %c0_i32 = arith.constant 0 : i32
    return %arg0, %arg1 : i32, i32
  }
  func.func @transform_5(%arg0: i32, %arg1: i32, %arg2: i32) -> (i32, i32) {
    %c0_i32 = arith.constant 0 : i32
    return %arg0, %arg1 : i32, i32
  }
}

module attributes {stable_mosaic.version = 11 : i64} {
  func.func @_bn_relu_pair_kernel(%arg0: i32, %arg1: memref<512x8xbf16, #tpu.memory_space<vmem>>, %arg2: memref<512x8xbf16, #tpu.memory_space<vmem>>, %arg3: memref<1x8xf32, #tpu.memory_space<vmem>>, %arg4: memref<1x8xf32, #tpu.memory_space<vmem>>, %arg5: memref<512x8xbf16, #tpu.memory_space<vmem>>, %arg6: memref<512x8xbf16, #tpu.memory_space<vmem>>) attributes {dimension_semantics = [#tpu.dimension_semantics<parallel>], iteration_bounds = array<i64: 1>, scalar_prefetch = 0 : i64, scratch_operands = 0 : i64, tpu.core_type = #tpu.core_type<tc>, window_params = [{transform_indices = @transform_0, window_bounds = array<i64: 512, 8>}, {transform_indices = @transform_1, window_bounds = array<i64: 512, 8>}, {pipeline_mode = #tpu.pipeline_mode<synchronous>, transform_indices = @transform_2, window_bounds = array<i64: 1, 8>}, {pipeline_mode = #tpu.pipeline_mode<synchronous>, transform_indices = @transform_3, window_bounds = array<i64: 1, 8>}, {transform_indices = @transform_4, window_bounds = array<i64: 512, 8>}, {transform_indices = @transform_5, window_bounds = array<i64: 512, 8>}]} {
    %c0 = arith.constant 0 : index
    %c0_0 = arith.constant 0 : index
    %0 = vector.load %arg1[%c0, %c0_0] : memref<512x8xbf16, #tpu.memory_space<vmem>>, vector<512x8xbf16>
    %1 = arith.extf %0 : vector<512x8xbf16> to vector<512x8xf32>
    %cst = arith.constant 0.000000e+00 : f32
    %2 = vector.broadcast %cst : f32 to vector<512x8xf32>
    %3 = arith.maximumf %1, %2 : vector<512x8xf32>
    %4 = arith.truncf %3 : vector<512x8xf32> to vector<512x8xbf16>
    %c0_1 = arith.constant 0 : index
    %c0_2 = arith.constant 0 : index
    %5 = vector.load %arg5[%c0_1, %c0_2] : memref<512x8xbf16, #tpu.memory_space<vmem>>, vector<512x8xbf16>
    tpu.vector_store %arg5[%c0_1, %c0_2], %4 {strides = array<i32>} : memref<512x8xbf16, #tpu.memory_space<vmem>>, vector<512x8xbf16>,
    %c0_3 = arith.constant 0 : index
    %c0_4 = arith.constant 0 : index
    %6 = vector.load %arg2[%c0_3, %c0_4] : memref<512x8xbf16, #tpu.memory_space<vmem>>, vector<512x8xbf16>
    %7 = arith.extf %6 : vector<512x8xbf16> to vector<512x8xf32>
    %c0_5 = arith.constant 0 : index
    %c0_6 = arith.constant 0 : index
    %8 = vector.load %arg3[%c0_5, %c0_6] : memref<1x8xf32, #tpu.memory_space<vmem>>, vector<1x8xf32>
    %9 = vector.broadcast %8 : vector<1x8xf32> to vector<512x8xf32>
    %10 = arith.mulf %7, %9 : vector<512x8xf32>
    %c0_7 = arith.constant 0 : index
    %c0_8 = arith.constant 0 : index
    %11 = vector.load %arg4[%c0_7, %c0_8] : memref<1x8xf32, #tpu.memory_space<vmem>>, vector<1x8xf32>
    %12 = vector.broadcast %11 : vector<1x8xf32> to vector<512x8xf32>
    %13 = arith.addf %10, %12 : vector<512x8xf32>
    %cst_9 = arith.constant 0.000000e+00 : f32
    %14 = vector.broadcast %cst_9 : f32 to vector<512x8xf32>
    %15 = arith.maximumf %13, %14 : vector<512x8xf32>
    %16 = arith.truncf %15 : vector<512x8xf32> to vector<512x8xbf16>
    %c0_10 = arith.constant 0 : index
    %c0_11 = arith.constant 0 : index
    %17 = vector.load %arg6[%c0_10, %c0_11] : memref<512x8xbf16, #tpu.memory_space<vmem>>, vector<512x8xbf16>
    tpu.vector_store %arg6[%c0_10, %c0_11], %16 {strides = array<i32>} : memref<512x8xbf16, #tpu.memory_space<vmem>>, vector<512x8xbf16>,
    return
  }
  func.func @transform_0(%arg0: i32) -> (i32, i32) {
    %c0_i32 = arith.constant 0 : i32
    %c0_i32_0 = arith.constant 0 : i32
    return %arg0, %c0_i32 : i32, i32
  }
  func.func @transform_1(%arg0: i32) -> (i32, i32) {
    %c0_i32 = arith.constant 0 : i32
    %c0_i32_0 = arith.constant 0 : i32
    return %arg0, %c0_i32 : i32, i32
  }
  func.func @transform_2(%arg0: i32) -> (i32, i32) {
    %c0_i32 = arith.constant 0 : i32
    %c0_i32_0 = arith.constant 0 : i32
    %c0_i32_1 = arith.constant 0 : i32
    return %c0_i32, %c0_i32_0 : i32, i32
  }
  func.func @transform_3(%arg0: i32) -> (i32, i32) {
    %c0_i32 = arith.constant 0 : i32
    %c0_i32_0 = arith.constant 0 : i32
    %c0_i32_1 = arith.constant 0 : i32
    return %c0_i32, %c0_i32_0 : i32, i32
  }
  func.func @transform_4(%arg0: i32) -> (i32, i32) {
    %c0_i32 = arith.constant 0 : i32
    %c0_i32_0 = arith.constant 0 : i32
    return %arg0, %c0_i32 : i32, i32
  }
  func.func @transform_5(%arg0: i32) -> (i32, i32) {
    %c0_i32 = arith.constant 0 : i32
    %c0_i32_0 = arith.constant 0 : i32
    return %arg0, %c0_i32 : i32, i32
  }
}

module attributes {stable_mosaic.version = 11 : i64} {
  func.func @_gemm_kernel(%arg0: i32, %arg1: i32, %arg2: i32, %arg3: memref<512x256xbf16, #tpu.memory_space<vmem>>, %arg4: memref<256x128xbf16, #tpu.memory_space<vmem>>, %arg5: memref<1x128xf32, #tpu.memory_space<vmem>>, %arg6: memref<512x128xbf16, #tpu.memory_space<vmem>>, %arg7: memref<512x128xf32, #tpu.memory_space<vmem>>) attributes {dimension_semantics = [#tpu.dimension_semantics<parallel>, #tpu.dimension_semantics<parallel>, #tpu.dimension_semantics<arbitrary>], iteration_bounds = array<i64: 1, 1, 1>, scalar_prefetch = 0 : i64, scratch_operands = 1 : i64, tpu.core_type = #tpu.core_type<tc>, window_params = [{transform_indices = @transform_0, window_bounds = array<i64: 512, 256>}, {transform_indices = @transform_1, window_bounds = array<i64: 256, 128>}, {transform_indices = @transform_2, window_bounds = array<i64: 1, 128>}, {transform_indices = @transform_3, window_bounds = array<i64: 512, 128>}]} {
    %c0_i32 = arith.constant 0 : i32
    %0 = arith.cmpi eq, %arg2, %c0_i32 : i32
    %1 = arith.extui %0 : i1 to i32
    %c0_i32_0 = arith.constant 0 : i32
    %2 = arith.cmpi ne, %1, %c0_i32_0 : i32
    scf.if %2 {
      %cst_10 = arith.constant 0.000000e+00 : f32
      %12 = vector.broadcast %cst_10 : f32 to vector<512x128xf32>
      %c0_11 = arith.constant 0 : index
      %c0_12 = arith.constant 0 : index
      %13 = vector.load %arg7[%c0_11, %c0_12] : memref<512x128xf32, #tpu.memory_space<vmem>>, vector<512x128xf32>
      tpu.vector_store %arg7[%c0_11, %c0_12], %12 {strides = array<i32>} : memref<512x128xf32, #tpu.memory_space<vmem>>, vector<512x128xf32>,
    } else {
    }
    %c0 = arith.constant 0 : index
    %c0_1 = arith.constant 0 : index
    %3 = vector.load %arg7[%c0, %c0_1] : memref<512x128xf32, #tpu.memory_space<vmem>>, vector<512x128xf32>
    %c0_2 = arith.constant 0 : index
    %c0_3 = arith.constant 0 : index
    %4 = vector.load %arg3[%c0_2, %c0_3] : memref<512x256xbf16, #tpu.memory_space<vmem>>, vector<512x256xbf16>
    %c0_4 = arith.constant 0 : index
    %c0_5 = arith.constant 0 : index
    %5 = vector.load %arg4[%c0_4, %c0_5] : memref<256x128xbf16, #tpu.memory_space<vmem>>, vector<256x128xbf16>
    %cst = arith.constant dense<0.000000e+00> : vector<512x128xf32>
    %6 = tpu.matmul %4, %5, %cst {dimension_numbers = #tpu.dot_dimension_numbers<[1], [0], [0], [1], [0, 0, 1, 1], [], []>} : vector<512x256xbf16>, vector<256x128xbf16>, vector<512x128xf32> -> vector<512x128xf32>
    %7 = arith.addf %3, %6 : vector<512x128xf32>
    %c0_6 = arith.constant 0 : index
    %c0_7 = arith.constant 0 : index
    %8 = vector.load %arg7[%c0_6, %c0_7] : memref<512x128xf32, #tpu.memory_space<vmem>>, vector<512x128xf32>
    tpu.vector_store %arg7[%c0_6, %c0_7], %7 {strides = array<i32>} : memref<512x128xf32, #tpu.memory_space<vmem>>, vector<512x128xf32>,
    %c0_i32_8 = arith.constant 0 : i32
    %9 = arith.cmpi eq, %arg2, %c0_i32_8 : i32
    %10 = arith.extui %9 : i1 to i32
    %c0_i32_9 = arith.constant 0 : i32
    %11 = arith.cmpi ne, %10, %c0_i32_9 : i32
    scf.if %11 {
      %c0_10 = arith.constant 0 : index
      %c0_11 = arith.constant 0 : index
      %12 = vector.load %arg7[%c0_10, %c0_11] : memref<512x128xf32, #tpu.memory_space<vmem>>, vector<512x128xf32>
      %c0_12 = arith.constant 0 : index
      %c0_13 = arith.constant 0 : index
      %13 = vector.load %arg5[%c0_12, %c0_13] : memref<1x128xf32, #tpu.memory_space<vmem>>, vector<1x128xf32>
      %14 = vector.broadcast %13 : vector<1x128xf32> to vector<512x128xf32>
      %15 = arith.addf %12, %14 : vector<512x128xf32>
      %16 = arith.truncf %15 : vector<512x128xf32> to vector<512x128xbf16>
      %c0_14 = arith.constant 0 : index
      %c0_15 = arith.constant 0 : index
      %17 = vector.load %arg6[%c0_14, %c0_15] : memref<512x128xbf16, #tpu.memory_space<vmem>>, vector<512x128xbf16>
      tpu.vector_store %arg6[%c0_14, %c0_15], %16 {strides = array<i32>} : memref<512x128xbf16, #tpu.memory_space<vmem>>, vector<512x128xbf16>,
    } else {
    }
    return
  }
  func.func @transform_0(%arg0: i32, %arg1: i32, %arg2: i32) -> (i32, i32) {
    %c0_i32 = arith.constant 0 : i32
    return %arg0, %arg2 : i32, i32
  }
  func.func @transform_1(%arg0: i32, %arg1: i32, %arg2: i32) -> (i32, i32) {
    %c0_i32 = arith.constant 0 : i32
    return %arg2, %arg1 : i32, i32
  }
  func.func @transform_2(%arg0: i32, %arg1: i32, %arg2: i32) -> (i32, i32) {
    %c0_i32 = arith.constant 0 : i32
    %c0_i32_0 = arith.constant 0 : i32
    return %c0_i32, %arg1 : i32, i32
  }
  func.func @transform_3(%arg0: i32, %arg1: i32, %arg2: i32) -> (i32, i32) {
    %c0_i32 = arith.constant 0 : i32
    return %arg0, %arg1 : i32, i32
  }
}

</mosaic_0001>

<bundles_post_ra>
// kernel: _lambda_.11
= control target key start
LH: loop header
LB: loop body
LE: loop exit
PB: predicated region body
PF: predicated region fallthrough
CT: control target
= control target key end

     0   :  { %s2382_s1 = inlined_call_operand.vmem [shape: bf16[128,128], index: 1, kind: input, shape index: {}]   ;;  %s2383_s0 = inlined_call_operand.vmem [shape: bf16[512,128], index: 0, kind: input, shape index: {}]   ;;  %s2384_s2 = inlined_call_operand.vmem [shape: f32[1,128], index: 2, kind: input, shape index: {}]   ;;  %s2385_s3 = inlined_call_operand.vmem [shape: bf16[512,128], index: 3, kind: output, shape index: {}]  }
   0x1   :  { %v2034_v0 = vld [vmem:[%s2382_s1 + $0x38] sm:$0xff]   ;;  %v2035_v1 = vld [vmem:[%s2382_s1 + $0x30] sm:$0xff]   ;;  %v2036_v2 = vld [vmem:[%s2382_s1 + $0x28] sm:$0xff]  }
   0x2   :  { %1938 = vmatprep.subr.bf16.mxu0 %v2034_v0  ;;  %2018 = vmatprep.subr.bf16.mxu1 %v2034_v0  ;;  %v2037_v3 = vld [vmem:[%s2382_s1 + $0x20] sm:$0xff]   ;;  %v2038_v6 = vld [vmem:[%s2382_s1 + $0x18] sm:$0xff]   ;;  %v2039_v7 = vld [vmem:[%s2382_s1 + $0x10] sm:$0xff]  }
   0x3   :  { %1939 = vmatpush3.bf16.msra.mxu0 %v2034_v0  ;;  %2026 = vmatpush3.bf16.msra.mxu1 %v2034_v0  ;;  %v2042_v4 = vld [vmem:[%s2383_s0] sm:$0xff]   ;;  %v2040_v8 = vld [vmem:[%s2382_s1 + $0x8] sm:$0xff]   ;;  %v2046_v12 = vld [vmem:[%s2383_s0 + $0x10] sm:$0xff]  }
   0x4   :  { %1940 = vmatprep.subr.bf16.mxu0 %v2035_v1  ;;  %2019 = vmatprep.subr.bf16.mxu1 %v2035_v1  ;;  %v2043_v5 = vld [vmem:[%s2383_s0 + $0x80] sm:$0xff]   ;;  %v2044_v10 = vld [vmem:[%s2383_s0 + $0x8] sm:$0xff]   ;;  %v2047_v13 = vld [vmem:[%s2383_s0 + $0x90] sm:$0xff]  }
   0x5   :  { %1954 = vmatprep.mubr.bf16.mxu0 %v2042_v4  ;;  %1986 = vmatprep.mubr.bf16.mxu1 %v2043_v5  ;;  %v2041_v9 = vld [vmem:[%s2382_s1] sm:$0xff]   ;;  %v2045_v11 = vld [vmem:[%s2383_s0 + $0x88] sm:$0xff]   ;;  %v2048_v14 = vld [vmem:[%s2383_s0 + $0x18] sm:$0xff]  }
   0x6   :  { %v2049_v15 = vld [vmem:[%s2383_s0 + $0x98] sm:$0xff]   ;;  %v2050_v16 = vld [vmem:[%s2383_s0 + $0x20] sm:$0xff]   ;;  %v2052_v18 = vld [vmem:[%s2383_s0 + $0x28] sm:$0xff]  }
   0x7   :  { %1941 = vmatpush3.bf16.msra.mxu0 %v2035_v1  ;;  %2027 = vmatpush3.bf16.msra.mxu1 %v2035_v1  ;;  %v2051_v17 = vld [vmem:[%s2383_s0 + $0xa0] sm:$0xff]   ;;  %v2053_v19 = vld [vmem:[%s2383_s0 + $0xa8] sm:$0xff]   ;;  %v2054_v20 = vld [vmem:[%s2383_s0 + $0x30] sm:$0xff]  }
   0x8   :  { %1942 = vmatprep.subr.bf16.mxu0 %v2036_v2  ;;  %2020 = vmatprep.subr.bf16.mxu1 %v2036_v2  ;;  %v2055_v21 = vld [vmem:[%s2383_s0 + $0xb0] sm:$0xff]   ;;  %v2056_v22 = vld [vmem:[%s2383_s0 + $0x38] sm:$0xff]   ;;  %v2058_v24 = vld [vmem:[%s2383_s0 + $0x40] sm:$0xff]  }
   0x9   :  { %v2057_v23 = vld [vmem:[%s2383_s0 + $0xb8] sm:$0xff]   ;;  %v2059_v25 = vld [vmem:[%s2383_s0 + $0xc0] sm:$0xff]   ;;  %v2060_v26 = vld [vmem:[%s2383_s0 + $0x48] sm:$0xff]  }
   0xa   :  { %v2061_v27 = vld [vmem:[%s2383_s0 + $0xc8] sm:$0xff]   ;;  %v2062_v28 = vld [vmem:[%s2383_s0 + $0x50] sm:$0xff]   ;;  %v2064_v30 = vld [vmem:[%s2383_s0 + $0x58] sm:$0xff]  }
   0xb   :  { %1943 = vmatpush3.bf16.msra.mxu0 %v2036_v2  ;;  %2028 = vmatpush3.bf16.msra.mxu1 %v2036_v2  ;;  %v2063_v29 = vld [vmem:[%s2383_s0 + $0xd0] sm:$0xff]   ;;  %v2065_v31 = vld [vmem:[%s2383_s0 + $0xd8] sm:$0xff]   ;;  %v2066_v32 = vld [vmem:[%s2383_s0 + $0x60] sm:$0xff]  }
   0xc   :  { %1944 = vmatprep.subr.bf16.mxu0 %v2037_v3  ;;  %2021 = vmatprep.subr.bf16.mxu1 %v2037_v3  ;;  %v2067_v33 = vld [vmem:[%s2383_s0 + $0xe0] sm:$0xff]   ;;  %v2068_v34 = vld [vmem:[%s2383_s0 + $0x68] sm:$0xff]   ;;  %v2070_v36 = vld [vmem:[%s2383_s0 + $0x70] sm:$0xff]  }
   0xd   :  { %v2069_v35 = vld [vmem:[%s2383_s0 + $0xe8] sm:$0xff]   ;;  %v2071_v37 = vld [vmem:[%s2383_s0 + $0xf0] sm:$0xff]   ;;  %v2072_v38 = vld [vmem:[%s2383_s0 + $0x78] sm:$0xff]  }
   0xe   :  { %v2073_v39 = vld [vmem:[%s2383_s0 + $0xf8] sm:$0xff]   ;;  %v2217_v40 = vld [vmem:[%s2384_s2] ss:$0 sm:$0xff] }
   0xf   :  { %1945 = vmatpush3.bf16.msra.mxu0 %v2037_v3  ;;  %2029 = vmatpush3.bf16.msra.mxu1 %v2037_v3 }
  0x10   :  { %1946 = vmatprep.subr.bf16.mxu0 %v2038_v6  ;;  %2022 = vmatprep.subr.bf16.mxu1 %v2038_v6 }
  0x13   :  { %1947 = vmatpush3.bf16.msra.mxu0 %v2038_v6  ;;  %2030 = vmatpush3.bf16.msra.mxu1 %v2038_v6 }
  0x14   :  { %1948 = vmatprep.subr.bf16.mxu0 %v2039_v7  ;;  %2023 = vmatprep.subr.bf16.mxu1 %v2039_v7 }
  0x17   :  { %1949 = vmatpush3.bf16.msra.mxu0 %v2039_v7  ;;  %2031 = vmatpush3.bf16.msra.mxu1 %v2039_v7 }
  0x18   :  { %1950 = vmatprep.subr.bf16.mxu0 %v2040_v8  ;;  %2024 = vmatprep.subr.bf16.mxu1 %v2040_v8 }
  0x1b   :  { %1951 = vmatpush3.bf16.msra.mxu0 %v2040_v8  ;;  %2032 = vmatpush3.bf16.msra.mxu1 %v2040_v8 }
  0x1c   :  { %1952 = vmatprep.subr.bf16.mxu0 %v2041_v9  ;;  %2025 = vmatprep.subr.bf16.mxu1 %v2041_v9 }
  0x1f   :  { %1953 = vmatpush3.bf16.msra.mxu0 %v2041_v9  ;;  %2033 = vmatpush3.bf16.msra.mxu1 %v2041_v9 }
  0x22   :  { %1955 = vmatmul.mubr.bf16.vlgmr.msra.gmra.mxu0 %v2044_v10  ;;  %1987 = vmatmul.mubr.bf16.vlgmr.msra.gmra.mxu1 %v2045_v11 }
  0x23   :  { %1958 = vmatprep.mubr.bf16.mxu0 %v2046_v12  ;;  %1990 = vmatprep.mubr.bf16.mxu1 %v2047_v13 }
  0x2a   :  { %1959 = vmatmul.mubr.bf16.gmra.mxu0 %v2048_v14  ;;  %1991 = vmatmul.mubr.bf16.gmra.mxu1 %v2049_v15 }
  0x2b   :  { %1962 = vmatprep.mubr.bf16.mxu0 %v2050_v16  ;;  %1994 = vmatprep.mubr.bf16.mxu1 %v2051_v17 }
  0x32   :  { %1963 = vmatmul.mubr.bf16.gmra.mxu0 %v2052_v18  ;;  %1995 = vmatmul.mubr.bf16.gmra.mxu1 %v2053_v19 }
  0x33   :  { %1966 = vmatprep.mubr.bf16.mxu0 %v2054_v20  ;;  %1998 = vmatprep.mubr.bf16.mxu1 %v2055_v21 }
  0x3a   :  { %1967 = vmatmul.mubr.bf16.gmra.mxu0 %v2056_v22  ;;  %1999 = vmatmul.mubr.bf16.gmra.mxu1 %v2057_v23 }
  0x3b   :  { %1970 = vmatprep.mubr.bf16.mxu0 %v2058_v24  ;;  %2002 = vmatprep.mubr.bf16.mxu1 %v2059_v25 }
  0x42   :  { %1971 = vmatmul.mubr.bf16.gmra.mxu0 %v2060_v26  ;;  %2003 = vmatmul.mubr.bf16.gmra.mxu1 %v2061_v27 }
  0x43   :  { %1974 = vmatprep.mubr.bf16.mxu0 %v2062_v28  ;;  %2006 = vmatprep.mubr.bf16.mxu1 %v2063_v29 }
  0x4a   :  { %1975 = vmatmul.mubr.bf16.gmra.mxu0 %v2064_v30  ;;  %2007 = vmatmul.mubr.bf16.gmra.mxu1 %v2065_v31 }
  0x4b   :  { %1978 = vmatprep.mubr.bf16.mxu0 %v2066_v32  ;;  %2010 = vmatprep.mubr.bf16.mxu1 %v2067_v33 }
  0x52   :  { %1979 = vmatmul.mubr.bf16.gmra.mxu0 %v2068_v34  ;;  %2011 = vmatmul.mubr.bf16.gmra.mxu1 %v2069_v35 }
  0x53   :  { %1982 = vmatprep.mubr.bf16.mxu0 %v2070_v36  ;;  %2014 = vmatprep.mubr.bf16.mxu1 %v2071_v37 }
  0x5a   :  { %1983 = vmatmul.mubr.bf16.gmra.mxu0 %v2072_v38  ;;  %2015 = vmatmul.mubr.bf16.gmra.mxu1 %v2073_v39 }
  0xe2   :  { %v1956_v41 = vpop.f32.mrf.mxu0  ;;  %v1988_v42 = vpop.f32.mrf.mxu1 }
  0xe3   :  { %v960_v43 = vadd.f32 %v1956_v41, %v2217_v40  ;;  %v992_v44 = vadd.f32 %v1988_v42, %v2217_v40 }
  0xe4   :  { %v501_v45 = vpop.f32.mrf.mxu0  ;;  %v629_v46 = vpop.f32.mrf.mxu1 }
  0xe5   :  { %vm1024_vm0 = vcmp.ge.f32.partialorder %v960_v43, 0.0  ;;  %v1088_v47 = vmul.f32 0.2, %v960_v43  ;;  %vm1056_vm1 = vcmp.ge.f32.partialorder %v992_v44, 0.0  ;;  %v1120_v48 = vmul.f32 0.2, %v992_v44 }
  0xe6   :  { %v958_v49 = vadd.f32 %v2217_v40, %v501_v45  ;;  %v990_v50 = vadd.f32 %v2217_v40, %v629_v46  ;;  %v1957_v51 = vpop.f32.mrf.mxu0  ;;  %v1989_v52 = vpop.f32.mrf.mxu1 }
  0xe7   :  { %v1152_v53 = vsel %vm1024_vm0, %v960_v43, %v1088_v47  ;;  %v961_v54 = vadd.f32 %v1957_v51, %v2217_v40  ;;  %v993_v55 = vadd.f32 %v1989_v52, %v2217_v40  ;;  %v1184_v56 = vsel %vm1056_vm1, %v992_v44, %v1120_v48 }
  0xe8   :  { %vm1022_vm2 = vcmp.ge.f32.partialorder %v958_v49, 0.0  ;;  %v1086_v57 = vmul.f32 0.2, %v958_v49  ;;  %vm1054_vm3 = vcmp.ge.f32.partialorder %v990_v50, 0.0  ;;  %v504_v58 = vpop.f32.mrf.mxu0  ;;  %v632_v59 = vpop.f32.mrf.mxu1  ;;  %v1118_v63 = vmul.f32 0.2, %v990_v50 }
  0xe9   :  { %vm1025_vm4 = vcmp.ge.f32.partialorder %v961_v54, 0.0  ;;  %v1089_v60 = vmul.f32 0.2, %v961_v54  ;;  %vm1057_vm5 = vcmp.ge.f32.partialorder %v993_v55, 0.0  ;;  %v1121_v61 = vmul.f32 0.2, %v993_v55 }
  0xea   :  { %v1150_v62 = vsel %vm1022_vm2, %v958_v49, %v1086_v57  ;;  %v959_v0 = vadd.f32 %v2217_v40, %v504_v58  ;;  %v991_v1 = vadd.f32 %v2217_v40, %v632_v59  ;;  %v1960_v2 = vpop.f32.mrf.mxu0  ;;  %v1992_v3 = vpop.f32.mrf.mxu1  ;;  %v1182_v15 = vsel %vm1054_vm3, %v990_v50, %v1118_v63 }
  0xeb   :  { %v1153_v4 = vsel %vm1025_vm4, %v961_v54, %v1089_v60  ;;  %v1185_v5 = vsel %vm1057_vm5, %v993_v55, %v1121_v61  ;;  %v964_v6 = vadd.f32 %v1960_v2, %v2217_v40  ;;  %v996_v7 = vadd.f32 %v1992_v3, %v2217_v40 }
  0xec   :  { %v1715_v8 = vpack.c.bf16 %v1153_v4, %v1152_v53  ;;  %v1795_v9 = vpack.c.bf16 %v1185_v5, %v1184_v56  ;;  %vm1023_vm6 = vcmp.ge.f32.partialorder %v959_v0, 0.0  ;;  %v1087_v10 = vmul.f32 0.2, %v959_v0  ;;  %v517_v11 = vpop.f32.mrf.mxu0  ;;  %v645_v12 = vpop.f32.mrf.mxu1 }
  0xed   :  { %vm1055_vm7 = vcmp.ge.f32.partialorder %v991_v1, 0.0  ;;  %v1119_v13 = vmul.f32 0.2, %v991_v1  ;;  %vm1028_vm8 = vcmp.ge.f32.partialorder %v964_v6, 0.0  ;;  %v1092_v14 = vmul.f32 0.2, %v964_v6 }
  0xee   :  { %1867 = vst [vmem:[%s2385_s3 + $0x8] sm:$0xff] %v1715_v8   ;;  %1883 = vst [vmem:[%s2385_s3 + $0x88] sm:$0xff] %v1795_v9   ;;  %v1151_v16 = vsel %vm1023_vm6, %v959_v0, %v1087_v10  ;;  %v1124_v17 = vmul.f32 0.2, %v996_v7  ;;  %v962_v18 = vadd.f32 %v2217_v40, %v517_v11  ;;  %v1961_v19 = vpop.f32.mrf.mxu0  ;;  %v1993_v20 = vpop.f32.mrf.mxu1  ;;  %vm1060_vm9 = vcmp.ge.f32.partialorder %v996_v7, 0.0 }
  0xef   :  { %v1710_v21 = vpack.c.bf16 %v1151_v16, %v1150_v62  ;;  %v1183_v22 = vsel %vm1055_vm7, %v991_v1, %v1119_v13  ;;  %v994_v23 = vadd.f32 %v2217_v40, %v645_v12  ;;  %v1156_v25 = vsel %vm1028_vm8, %v964_v6, %v1092_v14 }
  0xf0   :  { %v1790_v24 = vpack.c.bf16 %v1183_v22, %v1182_v15  ;;  %vm1026_vm10 = vcmp.ge.f32.partialorder %v962_v18, 0.0  ;;  %v1090_v26 = vmul.f32 0.2, %v962_v18  ;;  %v520_v27 = vpop.f32.mrf.mxu0  ;;  %v648_v28 = vpop.f32.mrf.mxu1  ;;  %v965_v30 = vadd.f32 %v1961_v19, %v2217_v40 }
  0xf1   :  { %1711 = vst [vmem:[%s2385_s3] sm:$0xff] %v1710_v21   ;;  %vm1058_vm11 = vcmp.ge.f32.partialorder %v994_v23, 0.0  ;;  %v1122_v29 = vmul.f32 0.2, %v994_v23  ;;  %v997_v31 = vadd.f32 %v1993_v20, %v2217_v40  ;;  %v1188_v32 = vsel %vm1060_vm9, %v996_v7, %v1124_v17 }
  0xf2   :  { %1882 = vst [vmem:[%s2385_s3 + $0x80] sm:$0xff] %v1790_v24   ;;  %v1154_v33 = vsel %vm1026_vm10, %v962_v18, %v1090_v26  ;;  %v963_v34 = vadd.f32 %v2217_v40, %v520_v27  ;;  %v995_v35 = vadd.f32 %v2217_v40, %v648_v28  ;;  %v1964_v36 = vpop.f32.mrf.mxu0  ;;  %v1996_v37 = vpop.f32.mrf.mxu1  ;;  %vm1029_vm12 = vcmp.ge.f32.partialorder %v965_v30, 0.0 }
  0xf3   :  { %v1186_v38 = vsel %vm1058_vm11, %v994_v23, %v1122_v29  ;;  %v1093_v39 = vmul.f32 0.2, %v965_v30  ;;  %vm1061_vm13 = vcmp.ge.f32.partialorder %v997_v31, 0.0  ;;  %v1125_v41 = vmul.f32 0.2, %v997_v31 }
  0xf4   :  { %vm1027_vm14 = vcmp.ge.f32.partialorder %v963_v34, 0.0  ;;  %v1091_v42 = vmul.f32 0.2, %v963_v34  ;;  %vm1059_vm15 = vcmp.ge.f32.partialorder %v995_v35, 0.0  ;;  %v533_v43 = vpop.f32.mrf.mxu0  ;;  %v661_v44 = vpop.f32.mrf.mxu1  ;;  %v1123_v46 = vmul.f32 0.2, %v995_v35 }
  0xf5   :  { %v1157_v45 = vsel %vm1029_vm12, %v965_v30, %v1093_v39  ;;  %v968_v47 = vadd.f32 %v1964_v36, %v2217_v40  ;;  %v1000_v48 = vadd.f32 %v1996_v37, %v2217_v40  ;;  %v1189_v50 = vsel %vm1061_vm13, %v997_v31, %v1125_v41 }
  0xf6   :  { %v1725_v49 = vpack.c.bf16 %v1157_v45, %v1156_v25  ;;  %v1155_v51 = vsel %vm1027_vm14, %v963_v34, %v1091_v42  ;;  %v966_v52 = vadd.f32 %v2217_v40, %v533_v43  ;;  %v1965_v53 = vpop.f32.mrf.mxu0  ;;  %v1997_v54 = vpop.f32.mrf.mxu1  ;;  %v1805_v55 = vpack.c.bf16 %v1189_v50, %v1188_v32 }
  0xf7   :  { %v1720_v56 = vpack.c.bf16 %v1155_v51, %v1154_v33  ;;  %v1187_v57 = vsel %vm1059_vm15, %v995_v35, %v1123_v46  ;;  %vm1032_vm0 = vcmp.ge.f32.partialorder %v968_v47, 0.0  ;;  %v1096_v59 = vmul.f32 0.2, %v968_v47 }
  0xf8   :  { %1869 = vst [vmem:[%s2385_s3 + $0x18] sm:$0xff] %v1725_v49   ;;  %v1800_v58 = vpack.c.bf16 %v1187_v57, %v1186_v38  ;;  %vm1064_vm1 = vcmp.ge.f32.partialorder %v1000_v48, 0.0  ;;  %v1128_v60 = vmul.f32 0.2, %v1000_v48  ;;  %v536_v61 = vpop.f32.mrf.mxu0  ;;  %v664_v62 = vpop.f32.mrf.mxu1  ;;  %1885 = vst [vmem:[%s2385_s3 + $0x98] sm:$0xff] %v1805_v55   ;;  %vm1030_vm2 = vcmp.ge.f32.partialorder %v966_v52, 0.0 }
  0xf9   :  { %1868 = vst [vmem:[%s2385_s3 + $0x10] sm:$0xff] %v1720_v56   ;;  %v1094_v63 = vmul.f32 0.2, %v966_v52  ;;  %v998_v0 = vadd.f32 %v2217_v40, %v661_v44  ;;  %v969_v1 = vadd.f32 %v1965_v53, %v2217_v40  ;;  %v1160_v2 = vsel %vm1032_vm0, %v968_v47, %v1096_v59 }
  0xfa   :  { %1884 = vst [vmem:[%s2385_s3 + $0x90] sm:$0xff] %v1800_v58   ;;  %v1192_v3 = vsel %vm1064_vm1, %v1000_v48, %v1128_v60  ;;  %v1001_v4 = vadd.f32 %v1997_v54, %v2217_v40  ;;  %v967_v5 = vadd.f32 %v2217_v40, %v536_v61  ;;  %v1968_v6 = vpop.f32.mrf.mxu0  ;;  %v2000_v7 = vpop.f32.mrf.mxu1  ;;  %v999_v16 = vadd.f32 %v2217_v40, %v664_v62 }
  0xfb   :  { %v1158_v8 = vsel %vm1030_vm2, %v966_v52, %v1094_v63  ;;  %vm1062_vm3 = vcmp.ge.f32.partialorder %v998_v0, 0.0  ;;  %v1126_v9 = vmul.f32 0.2, %v998_v0  ;;  %vm1033_vm4 = vcmp.ge.f32.partialorder %v969_v1, 0.0 }
  0xfc   :  { %v1097_v10 = vmul.f32 0.2, %v969_v1  ;;  %vm1065_vm5 = vcmp.ge.f32.partialorder %v1001_v4, 0.0  ;;  %v1129_v11 = vmul.f32 0.2, %v1001_v4  ;;  %vm1031_vm6 = vcmp.ge.f32.partialorder %v967_v5, 0.0  ;;  %v549_v12 = vpop.f32.mrf.mxu0  ;;  %v677_v13 = vpop.f32.mrf.mxu1 }
  0xfd   :  { %v1190_v14 = vsel %vm1062_vm3, %v998_v0, %v1126_v9  ;;  %v1095_v15 = vmul.f32 0.2, %v967_v5  ;;  %v972_v17 = vadd.f32 %v1968_v6, %v2217_v40  ;;  %v1004_v20 = vadd.f32 %v2000_v7, %v2217_v40 }
  0xfe   :  { %v1161_v18 = vsel %vm1033_vm4, %v969_v1, %v1097_v10  ;;  %v1193_v19 = vsel %vm1065_vm5, %v1001_v4, %v1129_v11  ;;  %v970_v21 = vadd.f32 %v2217_v40, %v549_v12  ;;  %v1969_v22 = vpop.f32.mrf.mxu0  ;;  %v2001_v23 = vpop.f32.mrf.mxu1  ;;  %vm1063_vm7 = vcmp.ge.f32.partialorder %v999_v16, 0.0 }
  0xff   :  { %v1735_v24 = vpack.c.bf16 %v1161_v18, %v1160_v2  ;;  %v1815_v25 = vpack.c.bf16 %v1193_v19, %v1192_v3  ;;  %v1159_v26 = vsel %vm1031_vm6, %v967_v5, %v1095_v15  ;;  %v1127_v28 = vmul.f32 0.2, %v999_v16 }
 0x100   :  { %v1730_v27 = vpack.c.bf16 %v1159_v26, %v1158_v8  ;;  %vm1036_vm8 = vcmp.ge.f32.partialorder %v972_v17, 0.0  ;;  %v1100_v29 = vmul.f32 0.2, %v972_v17  ;;  %v552_v30 = vpop.f32.mrf.mxu0  ;;  %v680_v31 = vpop.f32.mrf.mxu1  ;;  %vm1068_vm9 = vcmp.ge.f32.partialorder %v1004_v20, 0.0 }
 0x101   :  { %1871 = vst [vmem:[%s2385_s3 + $0x28] sm:$0xff] %v1735_v24   ;;  %1887 = vst [vmem:[%s2385_s3 + $0xa8] sm:$0xff] %v1815_v25   ;;  %v1132_v32 = vmul.f32 0.2, %v1004_v20  ;;  %vm1034_vm10 = vcmp.ge.f32.partialorder %v970_v21, 0.0  ;;  %v1191_v34 = vsel %vm1063_vm7, %v999_v16, %v1127_v28  ;;  %v1002_v36 = vadd.f32 %v2217_v40, %v677_v13 }
 0x102   :  { %v1098_v33 = vmul.f32 0.2, %v970_v21  ;;  %1870 = vst [vmem:[%s2385_s3 + $0x20] sm:$0xff] %v1730_v27   ;;  %v1164_v35 = vsel %vm1036_vm8, %v972_v17, %v1100_v29  ;;  %v973_v37 = vadd.f32 %v1969_v22, %v2217_v40  ;;  %v1972_v38 = vpop.f32.mrf.mxu0  ;;  %v2004_v39 = vpop.f32.mrf.mxu1  ;;  %v1810_v41 = vpack.c.bf16 %v1191_v34, %v1190_v14 }
 0x103   :  { %v1196_v42 = vsel %vm1068_vm9, %v1004_v20, %v1132_v32  ;;  %v1005_v44 = vadd.f32 %v2001_v23, %v2217_v40  ;;  %vm1066_vm11 = vcmp.ge.f32.partialorder %v1002_v36, 0.0  ;;  %v1130_v45 = vmul.f32 0.2, %v1002_v36 }
 0x104   :  { %v1162_v43 = vsel %vm1034_vm10, %v970_v21, %v1098_v33  ;;  %vm1037_vm12 = vcmp.ge.f32.partialorder %v973_v37, 0.0  ;;  %v1101_v46 = vmul.f32 0.2, %v973_v37  ;;  %v565_v47 = vpop.f32.mrf.mxu0  ;;  %v693_v48 = vpop.f32.mrf.mxu1  ;;  %1886 = vst [vmem:[%s2385_s3 + $0xa0] sm:$0xff] %v1810_v41   ;;  %v971_v50 = vadd.f32 %v2217_v40, %v552_v30 }
 0x105   :  { %vm1069_vm13 = vcmp.ge.f32.partialorder %v1005_v44, 0.0  ;;  %v1133_v49 = vmul.f32 0.2, %v1005_v44  ;;  %v1003_v51 = vadd.f32 %v2217_v40, %v680_v31  ;;  %v1194_v52 = vsel %vm1066_vm11, %v1002_v36, %v1130_v45 }
 0x106   :  { %v1165_v53 = vsel %vm1037_vm12, %v973_v37, %v1101_v46  ;;  %v976_v54 = vadd.f32 %v1972_v38, %v2217_v40  ;;  %v1008_v55 = vadd.f32 %v2004_v39, %v2217_v40  ;;  %v1973_v56 = vpop.f32.mrf.mxu0  ;;  %v2005_v57 = vpop.f32.mrf.mxu1  ;;  %vm1035_vm14 = vcmp.ge.f32.partialorder %v971_v50, 0.0 }
 0x107   :  { %v1745_v58 = vpack.c.bf16 %v1165_v53, %v1164_v35  ;;  %v1197_v59 = vsel %vm1069_vm13, %v1005_v44, %v1133_v49  ;;  %v1099_v60 = vmul.f32 0.2, %v971_v50  ;;  %vm1067_vm15 = vcmp.ge.f32.partialorder %v1003_v51, 0.0 }
 0x108   :  { %v1825_v61 = vpack.c.bf16 %v1197_v59, %v1196_v42  ;;  %v1131_v62 = vmul.f32 0.2, %v1003_v51  ;;  %vm1040_vm0 = vcmp.ge.f32.partialorder %v976_v54, 0.0  ;;  %v568_v63 = vpop.f32.mrf.mxu0  ;;  %v696_v0 = vpop.f32.mrf.mxu1  ;;  %v1104_v2 = vmul.f32 0.2, %v976_v54 }
 0x109   :  { %1873 = vst [vmem:[%s2385_s3 + $0x38] sm:$0xff] %v1745_v58   ;;  %v1163_v1 = vsel %vm1035_vm14, %v971_v50, %v1099_v60  ;;  %vm1072_vm1 = vcmp.ge.f32.partialorder %v1008_v55, 0.0  ;;  %v1136_v3 = vmul.f32 0.2, %v1008_v55  ;;  %v974_v6 = vadd.f32 %v2217_v40, %v565_v47 }
 0x10a   :  { %1889 = vst [vmem:[%s2385_s3 + $0xb8] sm:$0xff] %v1825_v61   ;;  %v1740_v4 = vpack.c.bf16 %v1163_v1, %v1162_v43  ;;  %v1195_v5 = vsel %vm1067_vm15, %v1003_v51, %v1131_v62  ;;  %v1006_v7 = vadd.f32 %v2217_v40, %v693_v48  ;;  %v1976_v8 = vpop.f32.mrf.mxu0  ;;  %v2008_v9 = vpop.f32.mrf.mxu1  ;;  %v1168_v11 = vsel %vm1040_vm0, %v976_v54, %v1104_v2 }
 0x10b   :  { %v1820_v10 = vpack.c.bf16 %v1195_v5, %v1194_v52  ;;  %v1200_v12 = vsel %vm1072_vm1, %v1008_v55, %v1136_v3  ;;  %v977_v13 = vadd.f32 %v1973_v56, %v2217_v40  ;;  %vm1038_vm2 = vcmp.ge.f32.partialorder %v974_v6, 0.0 }
 0x10c   :  { %1872 = vst [vmem:[%s2385_s3 + $0x30] sm:$0xff] %v1740_v4   ;;  %v1102_v14 = vmul.f32 0.2, %v974_v6  ;;  %vm1070_vm3 = vcmp.ge.f32.partialorder %v1006_v7, 0.0  ;;  %v1134_v15 = vmul.f32 0.2, %v1006_v7  ;;  %v581_v16 = vpop.f32.mrf.mxu0  ;;  %v709_v17 = vpop.f32.mrf.mxu1  ;;  %v1009_v19 = vadd.f32 %v2005_v57, %v2217_v40 }
 0x10d   :  { %1888 = vst [vmem:[%s2385_s3 + $0xb0] sm:$0xff] %v1820_v10   ;;  %vm1041_vm4 = vcmp.ge.f32.partialorder %v977_v13, 0.0  ;;  %v1105_v18 = vmul.f32 0.2, %v977_v13  ;;  %v975_v20 = vadd.f32 %v2217_v40, %v568_v63  ;;  %v1007_v23 = vadd.f32 %v2217_v40, %v696_v0 }
 0x10e   :  { %v1166_v21 = vsel %vm1038_vm2, %v974_v6, %v1102_v14  ;;  %v1198_v22 = vsel %vm1070_vm3, %v1006_v7, %v1134_v15  ;;  %v980_v24 = vadd.f32 %v1976_v8, %v2217_v40  ;;  %v1977_v25 = vpop.f32.mrf.mxu0  ;;  %v2009_v26 = vpop.f32.mrf.mxu1  ;;  %vm1073_vm5 = vcmp.ge.f32.partialorder %v1009_v19, 0.0 }
 0x10f   :  { %v1169_v27 = vsel %vm1041_vm4, %v977_v13, %v1105_v18  ;;  %v1137_v28 = vmul.f32 0.2, %v1009_v19  ;;  %vm1039_vm6 = vcmp.ge.f32.partialorder %v975_v20, 0.0  ;;  %v1103_v30 = vmul.f32 0.2, %v975_v20 }
 0x110   :  { %v1755_v29 = vpack.c.bf16 %v1169_v27, %v1168_v11  ;;  %vm1071_vm7 = vcmp.ge.f32.partialorder %v1007_v23, 0.0  ;;  %v1135_v31 = vmul.f32 0.2, %v1007_v23  ;;  %v584_v32 = vpop.f32.mrf.mxu0  ;;  %v712_v33 = vpop.f32.mrf.mxu1  ;;  %vm1044_vm8 = vcmp.ge.f32.partialorder %v980_v24, 0.0 }
 0x111   :  { %v1201_v34 = vsel %vm1073_vm5, %v1009_v19, %v1137_v28  ;;  %v1108_v35 = vmul.f32 0.2, %v980_v24  ;;  %v1012_v36 = vadd.f32 %v2008_v9, %v2217_v40  ;;  %v1167_v38 = vsel %vm1039_vm6, %v975_v20, %v1103_v30 }
 0x112   :  { %1875 = vst [vmem:[%s2385_s3 + $0x48] sm:$0xff] %v1755_v29   ;;  %v1835_v37 = vpack.c.bf16 %v1201_v34, %v1200_v12  ;;  %v1199_v39 = vsel %vm1071_vm7, %v1007_v23, %v1135_v31  ;;  %v978_v41 = vadd.f32 %v2217_v40, %v581_v16  ;;  %v1980_v42 = vpop.f32.mrf.mxu0  ;;  %v2012_v43 = vpop.f32.mrf.mxu1  ;;  %v1750_v44 = vpack.c.bf16 %v1167_v38, %v1166_v21 }
 0x113   :  { %v1830_v45 = vpack.c.bf16 %v1199_v39, %v1198_v22  ;;  %v1172_v46 = vsel %vm1044_vm8, %v980_v24, %v1108_v35  ;;  %vm1076_vm9 = vcmp.ge.f32.partialorder %v1012_v36, 0.0  ;;  %v1140_v47 = vmul.f32 0.2, %v1012_v36 }
 0x114   :  { %1891 = vst [vmem:[%s2385_s3 + $0xc8] sm:$0xff] %v1835_v37   ;;  %vm1042_vm10 = vcmp.ge.f32.partialorder %v978_v41, 0.0  ;;  %v1106_v48 = vmul.f32 0.2, %v978_v41  ;;  %v1010_v49 = vadd.f32 %v2217_v40, %v709_v17  ;;  %v597_v50 = vpop.f32.mrf.mxu0  ;;  %v725_v51 = vpop.f32.mrf.mxu1  ;;  %1874 = vst [vmem:[%s2385_s3 + $0x40] sm:$0xff] %v1750_v44   ;;  %v981_v52 = vadd.f32 %v1977_v25, %v2217_v40 }
 0x115   :  { %1890 = vst [vmem:[%s2385_s3 + $0xc0] sm:$0xff] %v1830_v45   ;;  %v1013_v53 = vadd.f32 %v2009_v26, %v2217_v40  ;;  %v979_v54 = vadd.f32 %v2217_v40, %v584_v32  ;;  %v1011_v55 = vadd.f32 %v2217_v40, %v712_v33  ;;  %v1204_v56 = vsel %vm1076_vm9, %v1012_v36, %v1140_v47 }
 0x116   :  { %v1170_v57 = vsel %vm1042_vm10, %v978_v41, %v1106_v48  ;;  %vm1074_vm11 = vcmp.ge.f32.partialorder %v1010_v49, 0.0  ;;  %v1138_v58 = vmul.f32 0.2, %v1010_v49  ;;  %v1981_v59 = vpop.f32.mrf.mxu0  ;;  %v2013_v60 = vpop.f32.mrf.mxu1  ;;  %vm1045_vm12 = vcmp.ge.f32.partialorder %v981_v52, 0.0 }
 0x117   :  { %v1109_v61 = vmul.f32 0.2, %v981_v52  ;;  %vm1077_vm13 = vcmp.ge.f32.partialorder %v1013_v53, 0.0  ;;  %v1141_v62 = vmul.f32 0.2, %v1013_v53  ;;  %vm1043_vm14 = vcmp.ge.f32.partialorder %v979_v54, 0.0 }
 0x118   :  { %v1202_v63 = vsel %vm1074_vm11, %v1010_v49, %v1138_v58  ;;  %v1107_v0 = vmul.f32 0.2, %v979_v54  ;;  %vm1075_vm15 = vcmp.ge.f32.partialorder %v1011_v55, 0.0  ;;  %v600_v1 = vpop.f32.mrf.mxu0  ;;  %v728_v2 = vpop.f32.mrf.mxu1  ;;  %v1139_v5 = vmul.f32 0.2, %v1011_v55 }
 0x119   :  { %v1173_v3 = vsel %vm1045_vm12, %v981_v52, %v1109_v61  ;;  %v1205_v4 = vsel %vm1077_vm13, %v1013_v53, %v1141_v62  ;;  %v984_v6 = vadd.f32 %v1980_v42, %v2217_v40  ;;  %v1016_v10 = vadd.f32 %v2012_v43, %v2217_v40 }
 0x11a   :  { %v1765_v7 = vpack.c.bf16 %v1173_v3, %v1172_v46  ;;  %v1845_v8 = vpack.c.bf16 %v1205_v4, %v1204_v56  ;;  %v1171_v9 = vsel %vm1043_vm14, %v979_v54, %v1107_v0  ;;  %v1984_v11 = vpop.f32.mrf.mxu0  ;;  %v2016_v12 = vpop.f32.mrf.mxu1  ;;  %v1203_v14 = vsel %vm1075_vm15, %v1011_v55, %v1139_v5 }
 0x11b   :  { %v1760_v13 = vpack.c.bf16 %v1171_v9, %v1170_v57  ;;  %vm1048_vm0 = vcmp.ge.f32.partialorder %v984_v6, 0.0  ;;  %v1112_v15 = vmul.f32 0.2, %v984_v6  ;;  %v1840_v16 = vpack.c.bf16 %v1203_v14, %v1202_v63 }
 0x11c   :  { %1877 = vst [vmem:[%s2385_s3 + $0x58] sm:$0xff] %v1765_v7   ;;  %1893 = vst [vmem:[%s2385_s3 + $0xd8] sm:$0xff] %v1845_v8   ;;  %vm1080_vm1 = vcmp.ge.f32.partialorder %v1016_v10, 0.0  ;;  %v1144_v17 = vmul.f32 0.2, %v1016_v10  ;;  %v982_v18 = vadd.f32 %v2217_v40, %v597_v50  ;;  %v1014_v19 = vadd.f32 %v2217_v40, %v725_v51  ;;  %v613_v25 = vpop.f32.mrf.mxu0  ;;  %v741_v26 = vpop.f32.mrf.mxu1 }
 0x11d   :  { %1876 = vst [vmem:[%s2385_s3 + $0x50] sm:$0xff] %v1760_v13   ;;  %v985_v20 = vadd.f32 %v1981_v59, %v2217_v40  ;;  %v1017_v21 = vadd.f32 %v2013_v60, %v2217_v40  ;;  %1892 = vst [vmem:[%s2385_s3 + $0xd0] sm:$0xff] %v1840_v16   ;;  %v1176_v22 = vsel %vm1048_vm0, %v984_v6, %v1112_v15 }
 0x11e   :  { %vm1046_vm2 = vcmp.ge.f32.partialorder %v982_v18, 0.0  ;;  %v1110_v23 = vmul.f32 0.2, %v982_v18  ;;  %v983_v24 = vadd.f32 %v2217_v40, %v600_v1  ;;  %v1208_v27 = vsel %vm1080_vm1, %v1016_v10, %v1144_v17  ;;  %v1985_v39 = vpop.f32.mrf.mxu0  ;;  %v2017_v41 = vpop.f32.mrf.mxu1 }
 0x11f   :  { %vm1078_vm3 = vcmp.ge.f32.partialorder %v1014_v19, 0.0  ;;  %vm1049_vm4 = vcmp.ge.f32.partialorder %v985_v20, 0.0  ;;  %v1113_v28 = vmul.f32 0.2, %v985_v20  ;;  %v1142_v29 = vmul.f32 0.2, %v1014_v19 }
 0x120   :  { %vm1081_vm5 = vcmp.ge.f32.partialorder %v1017_v21, 0.0  ;;  %v1145_v30 = vmul.f32 0.2, %v1017_v21  ;;  %vm1047_vm6 = vcmp.ge.f32.partialorder %v983_v24, 0.0  ;;  %v1174_v31 = vsel %vm1046_vm2, %v982_v18, %v1110_v23  ;;  %v616_v55 = vpop.f32.mrf.mxu0  ;;  %v744_v56 = vpop.f32.mrf.mxu1 }
 0x121   :  { %v1177_v32 = vsel %vm1049_vm4, %v985_v20, %v1113_v28  ;;  %v1111_v33 = vmul.f32 0.2, %v983_v24  ;;  %v1015_v34 = vadd.f32 %v2217_v40, %v728_v2  ;;  %v988_v37 = vadd.f32 %v1984_v11, %v2217_v40 }
 0x122   :  { %v1775_v35 = vpack.c.bf16 %v1177_v32, %v1176_v22  ;;  %v1209_v36 = vsel %vm1081_vm5, %v1017_v21, %v1145_v30  ;;  %v1020_v38 = vadd.f32 %v2016_v12, %v2217_v40  ;;  %v1206_v45 = vsel %vm1078_vm3, %v1014_v19, %v1142_v29 }
 0x123   :  { %v1855_v42 = vpack.c.bf16 %v1209_v36, %v1208_v27  ;;  %v1175_v43 = vsel %vm1047_vm6, %v983_v24, %v1111_v33  ;;  %vm1079_vm7 = vcmp.ge.f32.partialorder %v1015_v34, 0.0  ;;  %v1143_v44 = vmul.f32 0.2, %v1015_v34 }
 0x124   :  { %1879 = vst [vmem:[%s2385_s3 + $0x68] sm:$0xff] %v1775_v35   ;;  %v1770_v46 = vpack.c.bf16 %v1175_v43, %v1174_v31  ;;  %vm1052_vm8 = vcmp.ge.f32.partialorder %v988_v37, 0.0  ;;  %v1116_v47 = vmul.f32 0.2, %v988_v37  ;;  %vm1084_vm9 = vcmp.ge.f32.partialorder %v1020_v38, 0.0 }
 0x125   :  { %1895 = vst [vmem:[%s2385_s3 + $0xe8] sm:$0xff] %v1855_v42   ;;  %v1207_v48 = vsel %vm1079_vm7, %v1015_v34, %v1143_v44  ;;  %v1148_v49 = vmul.f32 0.2, %v1020_v38  ;;  %v986_v50 = vadd.f32 %v2217_v40, %v613_v25  ;;  %v1018_v52 = vadd.f32 %v2217_v40, %v741_v26 }
 0x126   :  { %1878 = vst [vmem:[%s2385_s3 + $0x60] sm:$0xff] %v1770_v46   ;;  %v1850_v51 = vpack.c.bf16 %v1207_v48, %v1206_v45  ;;  %v989_v53 = vadd.f32 %v1985_v39, %v2217_v40  ;;  %v1021_v54 = vadd.f32 %v2017_v41, %v2217_v40  ;;  %v1180_v57 = vsel %vm1052_vm8, %v988_v37, %v1116_v47 }
 0x127   :  { %v1212_v58 = vsel %vm1084_vm9, %v1020_v38, %v1148_v49  ;;  %v1114_v60 = vmul.f32 0.2, %v986_v50  ;;  %v987_v62 = vadd.f32 %v2217_v40, %v616_v55  ;;  %v1019_v63 = vadd.f32 %v2217_v40, %v744_v56 }
 0x128   :  { %1894 = vst [vmem:[%s2385_s3 + $0xe0] sm:$0xff] %v1850_v51   ;;  %vm1053_vm10 = vcmp.ge.f32.partialorder %v989_v53, 0.0  ;;  %v1117_v59 = vmul.f32 0.2, %v989_v53  ;;  %vm1085_vm11 = vcmp.ge.f32.partialorder %v1021_v54, 0.0  ;;  %vm1050_vm12 = vcmp.ge.f32.partialorder %v986_v50, 0.0 }
 0x129   :  { %v1149_v61 = vmul.f32 0.2, %v1021_v54  ;;  %vm1082_vm13 = vcmp.ge.f32.partialorder %v1018_v52, 0.0  ;;  %v1146_v0 = vmul.f32 0.2, %v1018_v52  ;;  %vm1051_vm14 = vcmp.ge.f32.partialorder %v987_v62, 0.0 }
 0x12a   :  { %v1181_v1 = vsel %vm1053_vm10, %v989_v53, %v1117_v59  ;;  %v1115_v4 = vmul.f32 0.2, %v987_v62  ;;  %vm1083_vm15 = vcmp.ge.f32.partialorder %v1019_v63, 0.0  ;;  %v1147_v6 = vmul.f32 0.2, %v1019_v63 }
 0x12b   :  { %v1785_v2 = vpack.c.bf16 %v1181_v1, %v1180_v57  ;;  %v1213_v3 = vsel %vm1085_vm11, %v1021_v54, %v1149_v61  ;;  %v1178_v7 = vsel %vm1050_vm12, %v986_v50, %v1114_v60  ;;  %v1210_v9 = vsel %vm1082_vm13, %v1018_v52, %v1146_v0 }
 0x12c   :  { %v1865_v5 = vpack.c.bf16 %v1213_v3, %v1212_v58  ;;  %v1179_v8 = vsel %vm1051_vm14, %v987_v62, %v1115_v4  ;;  %v1211_v10 = vsel %vm1083_vm15, %v1019_v63, %v1147_v6 }
 0x12d   :  { %1881 = vst [vmem:[%s2385_s3 + $0x78] sm:$0xff] %v1785_v2   ;;  %v1780_v40 = vpack.c.bf16 %v1179_v8, %v1178_v7  ;;  %v1860_v11 = vpack.c.bf16 %v1211_v10, %v1210_v9 }
 0x12e   :  { %1897 = vst [vmem:[%s2385_s3 + $0xf8] sm:$0xff] %v1865_v5  }
 0x12f   :  { %1880 = vst [vmem:[%s2385_s3 + $0x70] sm:$0xff] %v1780_v40   ;;  %1896 = vst [vmem:[%s2385_s3 + $0xf0] sm:$0xff] %v1860_v11  }

// kernel: _lambda_.13
= control target key start
LH: loop header
LB: loop body
LE: loop exit
PB: predicated region body
PF: predicated region fallthrough
CT: control target
= control target key end

     0   :  { %vm204_vm0 = vcmask 125952   ;;  %s448_s0 = inlined_call_operand.vmem [shape: bf16[128,16], index: 0, kind: input, shape index: {}]   ;;  %s449_s1 = inlined_call_operand.vmem [shape: f32[1,16], index: 1, kind: input, shape index: {}]   ;;  %s450_s2 = inlined_call_operand.vmem [shape: f32[1,16], index: 2, kind: input, shape index: {}]   ;;  %s451_s3 = inlined_call_operand.vmem [shape: bf16[128,16], index: 3, kind: output, shape index: {}]  }
   0x1   :  { %v260_v0 = vld [vmem:[%s448_s0] sm:$0xff]   ;;  %v291_v4 = vld [vmem:[%s448_s0 + $0x8] sm:$0xff]   ;;  %v292_v5 = vld [vmem:[%s448_s0 + $0x10] sm:$0xff]  }
   0x2   :  { %v324_v1 = vld [vmem:[%s449_s1] ss:$0 sm:$0xff]  ;;  %v261_v2 = vunpack.c.l.bf16 %v260_v0  ;;  %v262_v3 = vunpack.c.h.bf16 %v260_v0  ;;  %v293_v6 = vld [vmem:[%s448_s0 + $0x18] sm:$0xff]   ;;  %v265_v8 = vunpack.c.l.bf16 %v291_v4  ;;  %v266_v9 = vunpack.c.h.bf16 %v291_v4  ;;  %v295_v40 = vld [vmem:[%s448_s0 + $0x28] sm:$0xff]  }
   0x3   :  { %v338_v7 = vld [vmem:[%s450_s2] ss:$0 sm:$0xff]  ;;  %v269_v10 = vunpack.c.l.bf16 %v292_v5  ;;  %v270_v11 = vunpack.c.h.bf16 %v292_v5  ;;  %v273_v14 = vunpack.c.l.bf16 %v293_v6  ;;  %v274_v15 = vunpack.c.h.bf16 %v293_v6  ;;  %v296_v52 = vld [vmem:[%s448_s0 + $0x30] sm:$0xff]  }
   0x4   :  { %v53_v12 = vmul.f32 %v261_v2, %v324_v1  ;;  %v54_v13 = vmul.f32 %v262_v3, %v324_v1  ;;  %v55_v16 = vmul.f32 %v265_v8, %v324_v1  ;;  %v56_v17 = vmul.f32 %v266_v9, %v324_v1  ;;  %v294_v39 = vld [vmem:[%s448_s0 + $0x20] sm:$0xff]  }
   0x5   :  { %v57_v18 = vmul.f32 %v269_v10, %v324_v1  ;;  %v58_v19 = vmul.f32 %v270_v11, %v324_v1  ;;  %v59_v22 = vmul.f32 %v273_v14, %v324_v1  ;;  %v60_v23 = vmul.f32 %v274_v15, %v324_v1 }
   0x6   :  { %v76_v20 = vadd.f32 %v338_v7, %v53_v12  ;;  %v77_v21 = vadd.f32 %v338_v7, %v54_v13  ;;  %v78_v24 = vadd.f32 %v338_v7, %v55_v16  ;;  %v79_v25 = vadd.f32 %v338_v7, %v56_v17  ;;  %v297_v17 = vld [vmem:[%s448_s0 + $0x38] sm:$0xff]  }
   0x7   :  { %v80_v26 = vadd.f32 %v338_v7, %v57_v18  ;;  %v81_v27 = vadd.f32 %v338_v7, %v58_v19  ;;  %v82_v46 = vadd.f32 %v338_v7, %v59_v22  ;;  %v83_v47 = vadd.f32 %v338_v7, %v60_v23 }
   0x8   :  { %vm92_vm1 = vcmp.ge.f32.partialorder %v76_v20, 0.0  ;;  %v108_v28 = vmul.f32 0.2, %v76_v20  ;;  %vm93_vm2 = vcmp.ge.f32.partialorder %v77_v21, 0.0  ;;  %v109_v29 = vmul.f32 0.2, %v77_v21 }
   0x9   :  { %vm94_vm3 = vcmp.ge.f32.partialorder %v78_v24, 0.0  ;;  %v110_v30 = vmul.f32 0.2, %v78_v24  ;;  %vm95_vm4 = vcmp.ge.f32.partialorder %v79_v25, 0.0  ;;  %v111_v31 = vmul.f32 0.2, %v79_v25 }
   0xa   :  { %v124_v32 = vsel %vm92_vm1, %v76_v20, %v108_v28  ;;  %v125_v33 = vsel %vm93_vm2, %v77_v21, %v109_v29  ;;  %vm96_vm5 = vcmp.ge.f32.partialorder %v80_v26, 0.0  ;;  %v112_v34 = vmul.f32 0.2, %v80_v26 }
   0xb   :  { %v243_v35 = vpack.c.bf16 %v124_v32, %v124_v32  ;;  %v244_v36 = vpack.c.bf16 %v125_v33, %v125_v33  ;;  %v126_v37 = vsel %vm94_vm3, %v78_v24, %v110_v30  ;;  %v127_v38 = vsel %vm95_vm4, %v79_v25, %v111_v31 }
   0xc   :  { %v245_v41 = vpack.c.bf16 %v126_v37, %v126_v37  ;;  %v246_v42 = vpack.c.bf16 %v127_v38, %v127_v38  ;;  %v128_v43 = vsel %vm96_vm5, %v80_v26, %v112_v34  ;;  %vm97_vm6 = vcmp.ge.f32.partialorder %v81_v27, 0.0 }
   0xd   :  { %205 = vst.msk [vmem:[%s451_s3] sm:$0xf] %vm204_vm0, %v243_v35  ;;  %206 = vst.msk [vmem:[%s451_s3 + $0x4] sm:$0xf] %vm204_vm0, %v244_v36  ;;  %v247_v44 = vpack.c.bf16 %v128_v43, %v128_v43  ;;  %v113_v45 = vmul.f32 0.2, %v81_v27  ;;  %v277_v48 = vunpack.c.l.bf16 %v294_v39  ;;  %v278_v49 = vunpack.c.h.bf16 %v294_v39 }
   0xe   :  { %207 = vst.msk [vmem:[%s451_s3 + $0x8] sm:$0xf] %vm204_vm0, %v245_v41  ;;  %208 = vst.msk [vmem:[%s451_s3 + $0xc] sm:$0xf] %vm204_vm0, %v246_v42  ;;  %v281_v50 = vunpack.c.l.bf16 %v295_v40  ;;  %v282_v51 = vunpack.c.h.bf16 %v295_v40  ;;  %vm98_vm7 = vcmp.ge.f32.partialorder %v82_v46, 0.0  ;;  %vm99_vm8 = vcmp.ge.f32.partialorder %v83_v47, 0.0 }
   0xf   :  { %209 = vst.msk [vmem:[%s451_s3 + $0x10] sm:$0xf] %vm204_vm0, %v247_v44  ;;  %v129_v53 = vsel %vm97_vm6, %v81_v27, %v113_v45  ;;  %v114_v54 = vmul.f32 0.2, %v82_v46  ;;  %v115_v56 = vmul.f32 0.2, %v83_v47  ;;  %v61_v57 = vmul.f32 %v277_v48, %v324_v1 }
  0x10   :  { %v248_v55 = vpack.c.bf16 %v129_v53, %v129_v53  ;;  %v62_v58 = vmul.f32 %v278_v49, %v324_v1  ;;  %v63_v60 = vmul.f32 %v281_v50, %v324_v1  ;;  %v64_v61 = vmul.f32 %v282_v51, %v324_v1 }
  0x11   :  { %v130_v59 = vsel %vm98_vm7, %v82_v46, %v114_v54  ;;  %v285_v62 = vunpack.c.l.bf16 %v296_v52  ;;  %v131_v0 = vsel %vm99_vm8, %v83_v47, %v115_v56  ;;  %v84_v2 = vadd.f32 %v338_v7, %v61_v57 }
  0x12   :  { %210 = vst.msk [vmem:[%s451_s3 + $0x14] sm:$0xf] %vm204_vm0, %v248_v55  ;;  %v249_v63 = vpack.c.bf16 %v130_v59, %v130_v59  ;;  %v85_v3 = vadd.f32 %v338_v7, %v62_v58  ;;  %v250_v4 = vpack.c.bf16 %v131_v0, %v131_v0  ;;  %v86_v5 = vadd.f32 %v338_v7, %v63_v60 }
  0x13   :  { %v87_v6 = vadd.f32 %v338_v7, %v64_v61  ;;  %v65_v8 = vmul.f32 %v285_v62, %v324_v1  ;;  %vm100_vm9 = vcmp.ge.f32.partialorder %v84_v2, 0.0  ;;  %v116_v9 = vmul.f32 0.2, %v84_v2 }
  0x14   :  { %211 = vst.msk [vmem:[%s451_s3 + $0x18] sm:$0xf] %vm204_vm0, %v249_v63  ;;  %vm101_vm10 = vcmp.ge.f32.partialorder %v85_v3, 0.0  ;;  %v117_v10 = vmul.f32 0.2, %v85_v3  ;;  %vm102_vm11 = vcmp.ge.f32.partialorder %v86_v5, 0.0  ;;  %v286_v16 = vunpack.c.h.bf16 %v296_v52 }
  0x15   :  { %212 = vst.msk [vmem:[%s451_s3 + $0x1c] sm:$0xf] %vm204_vm0, %v250_v4  ;;  %v118_v11 = vmul.f32 0.2, %v86_v5  ;;  %vm103_vm12 = vcmp.ge.f32.partialorder %v87_v6, 0.0  ;;  %v132_v13 = vsel %vm100_vm9, %v84_v2, %v116_v9  ;;  %v88_v15 = vadd.f32 %v338_v7, %v65_v8 }
  0x16   :  { %v119_v12 = vmul.f32 0.2, %v87_v6  ;;  %v133_v14 = vsel %vm101_vm10, %v85_v3, %v117_v10  ;;  %v251_v18 = vpack.c.bf16 %v132_v13, %v132_v13  ;;  %v66_v25 = vmul.f32 %v286_v16, %v324_v1 }
  0x17   :  { %v252_v19 = vpack.c.bf16 %v133_v14, %v133_v14  ;;  %v134_v20 = vsel %vm102_vm11, %v86_v5, %v118_v11  ;;  %vm104_vm13 = vcmp.ge.f32.partialorder %v88_v15, 0.0  ;;  %v120_v24 = vmul.f32 0.2, %v88_v15 }
  0x18   :  { %v135_v21 = vsel %vm103_vm12, %v87_v6, %v119_v12  ;;  %v253_v22 = vpack.c.bf16 %v134_v20, %v134_v20  ;;  %213 = vst.msk [vmem:[%s451_s3 + $0x20] sm:$0xf] %vm204_vm0, %v251_v18  ;;  %v289_v26 = vunpack.c.l.bf16 %v297_v17  ;;  %v290_v27 = vunpack.c.h.bf16 %v297_v17 }
  0x19   :  { %v254_v23 = vpack.c.bf16 %v135_v21, %v135_v21  ;;  %214 = vst.msk [vmem:[%s451_s3 + $0x24] sm:$0xf] %vm204_vm0, %v252_v19  ;;  %v136_v28 = vsel %vm104_vm13, %v88_v15, %v120_v24  ;;  %v89_v30 = vadd.f32 %v338_v7, %v66_v25 }
  0x1a   :  { %215 = vst.msk [vmem:[%s451_s3 + $0x28] sm:$0xf] %vm204_vm0, %v253_v22  ;;  %v255_v29 = vpack.c.bf16 %v136_v28, %v136_v28  ;;  %v67_v31 = vmul.f32 %v289_v26, %v324_v1  ;;  %v68_v32 = vmul.f32 %v290_v27, %v324_v1 }
  0x1b   :  { %216 = vst.msk [vmem:[%s451_s3 + $0x2c] sm:$0xf] %vm204_vm0, %v254_v23  ;;  %vm105_vm14 = vcmp.ge.f32.partialorder %v89_v30, 0.0  ;;  %v121_v33 = vmul.f32 0.2, %v89_v30 }
  0x1c   :  { %217 = vst.msk [vmem:[%s451_s3 + $0x30] sm:$0xf] %vm204_vm0, %v255_v29  ;;  %v90_v34 = vadd.f32 %v338_v7, %v67_v31  ;;  %v91_v35 = vadd.f32 %v338_v7, %v68_v32 }
  0x1d   :  { %v137_v36 = vsel %vm105_vm14, %v89_v30, %v121_v33 }
  0x1e   :  { %vm106_vm15 = vcmp.ge.f32.partialorder %v90_v34, 0.0  ;;  %v122_v37 = vmul.f32 0.2, %v90_v34  ;;  %vm107_vm1 = vcmp.ge.f32.partialorder %v91_v35, 0.0  ;;  %v256_v38 = vpack.c.bf16 %v137_v36, %v137_v36 }
  0x1f   :  { %v123_v39 = vmul.f32 0.2, %v91_v35 }
  0x20   :  { %v138_v40 = vsel %vm106_vm15, %v90_v34, %v122_v37  ;;  %218 = vst.msk [vmem:[%s451_s3 + $0x34] sm:$0xf] %vm204_vm0, %v256_v38 }
  0x21   :  { %v257_v1 = vpack.c.bf16 %v138_v40, %v138_v40  ;;  %v139_v41 = vsel %vm107_vm1, %v91_v35, %v123_v39 }
  0x22   :  { %v258_v42 = vpack.c.bf16 %v139_v41, %v139_v41 }
  0x23   :  { %219 = vst.msk [vmem:[%s451_s3 + $0x38] sm:$0xf] %vm204_vm0, %v257_v1 }
  0x24   :  { %220 = vst.msk [vmem:[%s451_s3 + $0x3c] sm:$0xf] %vm204_vm0, %v258_v42 }

// kernel: _lambda_.12
= control target key start
LH: loop header
LB: loop body
LE: loop exit
PB: predicated region body
PF: predicated region fallthrough
CT: control target
= control target key end

     0   :  { %s804_s1 = inlined_call_operand.vmem [shape: bf16[128,128], index: 1, kind: input, shape index: {}]   ;;  %s805_s0 = inlined_call_operand.vmem [shape: bf16[128,128], index: 0, kind: input, shape index: {}]   ;;  %s806_s2 = inlined_call_operand.vmem [shape: f32[1,128], index: 2, kind: input, shape index: {}]   ;;  %s807_s3 = inlined_call_operand.vmem [shape: bf16[128,128], index: 3, kind: output, shape index: {0}]   ;;  %s808_s4 = inlined_call_operand.vmem [shape: f32[8,128], index: 4, kind: output, shape index: {1}]   ;;  %s809_s5 = inlined_call_operand.vmem [shape: f32[8,128], index: 5, kind: output, shape index: {2}]  }
   0x1   :  { %v665_v0 = vld [vmem:[%s804_s1 + $0x38] sm:$0xff]   ;;  %v666_v1 = vld [vmem:[%s804_s1 + $0x30] sm:$0xff]   ;;  %v667_v2 = vld [vmem:[%s804_s1 + $0x28] sm:$0xff]  }
   0x2   :  { %617 = vmatprep.subr.bf16.mxu0 %v665_v0  ;;  %649 = vmatprep.subr.bf16.mxu1 %v665_v0  ;;  %v668_v3 = vld [vmem:[%s804_s1 + $0x20] sm:$0xff]   ;;  %v669_v5 = vld [vmem:[%s804_s1 + $0x18] sm:$0xff]   ;;  %v670_v7 = vld [vmem:[%s804_s1 + $0x10] sm:$0xff]  }
   0x3   :  { %618 = vmatpush3.bf16.msra.mxu0 %v665_v0  ;;  %657 = vmatpush3.bf16.msra.mxu1 %v665_v0  ;;  %v673_v4 = vld [vmem:[%s805_s0] sm:$0xff]   ;;  %v671_v8 = vld [vmem:[%s804_s1 + $0x8] sm:$0xff]   ;;  %v675_v12 = vld [vmem:[%s805_s0 + $0x10] sm:$0xff]  }
   0x4   :  { %619 = vmatprep.subr.bf16.mxu0 %v666_v1  ;;  %650 = vmatprep.subr.bf16.mxu1 %v666_v1  ;;  %v677_v6 = vld [vmem:[%s805_s0 + $0x20] sm:$0xff]   ;;  %v674_v10 = vld [vmem:[%s805_s0 + $0x8] sm:$0xff]   ;;  %v679_v13 = vld [vmem:[%s805_s0 + $0x30] sm:$0xff]  }
   0x5   :  { %633 = vmatprep.mubr.bf16.mxu0 %v673_v4  ;;  %641 = vmatprep.mubr.bf16.mxu1 %v677_v6  ;;  %v672_v9 = vld [vmem:[%s804_s1] sm:$0xff]   ;;  %v678_v11 = vld [vmem:[%s805_s0 + $0x28] sm:$0xff]   ;;  %v676_v14 = vld [vmem:[%s805_s0 + $0x18] sm:$0xff]  }
   0x6   :  { %v680_v15 = vld [vmem:[%s805_s0 + $0x38] sm:$0xff]   ;;  %v521_v18 = vld [vmem:[%s806_s2] ss:$0 sm:$0xff] }
   0x7   :  { %620 = vmatpush3.bf16.msra.mxu0 %v666_v1  ;;  %658 = vmatpush3.bf16.msra.mxu1 %v666_v1 }
   0x8   :  { %621 = vmatprep.subr.bf16.mxu0 %v667_v2  ;;  %651 = vmatprep.subr.bf16.mxu1 %v667_v2 }
   0xb   :  { %622 = vmatpush3.bf16.msra.mxu0 %v667_v2  ;;  %659 = vmatpush3.bf16.msra.mxu1 %v667_v2 }
   0xc   :  { %623 = vmatprep.subr.bf16.mxu0 %v668_v3  ;;  %652 = vmatprep.subr.bf16.mxu1 %v668_v3 }
   0xf   :  { %624 = vmatpush3.bf16.msra.mxu0 %v668_v3  ;;  %660 = vmatpush3.bf16.msra.mxu1 %v668_v3 }
  0x10   :  { %625 = vmatprep.subr.bf16.mxu0 %v669_v5  ;;  %653 = vmatprep.subr.bf16.mxu1 %v669_v5 }
  0x13   :  { %626 = vmatpush3.bf16.msra.mxu0 %v669_v5  ;;  %661 = vmatpush3.bf16.msra.mxu1 %v669_v5 }
  0x14   :  { %627 = vmatprep.subr.bf16.mxu0 %v670_v7  ;;  %654 = vmatprep.subr.bf16.mxu1 %v670_v7 }
  0x17   :  { %628 = vmatpush3.bf16.msra.mxu0 %v670_v7  ;;  %662 = vmatpush3.bf16.msra.mxu1 %v670_v7 }
  0x18   :  { %629 = vmatprep.subr.bf16.mxu0 %v671_v8  ;;  %655 = vmatprep.subr.bf16.mxu1 %v671_v8 }
  0x1b   :  { %630 = vmatpush3.bf16.msra.mxu0 %v671_v8  ;;  %663 = vmatpush3.bf16.msra.mxu1 %v671_v8 }
  0x1c   :  { %631 = vmatprep.subr.bf16.mxu0 %v672_v9  ;;  %656 = vmatprep.subr.bf16.mxu1 %v672_v9 }
  0x1f   :  { %632 = vmatpush3.bf16.msra.mxu0 %v672_v9  ;;  %664 = vmatpush3.bf16.msra.mxu1 %v672_v9 }
  0x22   :  { %634 = vmatmul.mubr.bf16.vlgmr.msra.gmra.mxu0 %v674_v10  ;;  %642 = vmatmul.mubr.bf16.vlgmr.msra.gmra.mxu1 %v678_v11 }
  0x23   :  { %637 = vmatprep.mubr.bf16.mxu0 %v675_v12  ;;  %645 = vmatprep.mubr.bf16.mxu1 %v679_v13 }
  0x2a   :  { %638 = vmatmul.mubr.bf16.gmra.mxu0 %v676_v14  ;;  %646 = vmatmul.mubr.bf16.gmra.mxu1 %v680_v15 }
  0xe2   :  { %v635_v16 = vpop.f32.mrf.mxu0  ;;  %v643_v17 = vpop.f32.mrf.mxu1 }
  0xe3   :  { %v762_v21 = vadd.f32 %v643_v17, %v521_v18  ;;  %v339_v24 = vadd.f32 %v635_v16, %v521_v18 }
  0xe4   :  { %v216_v19 = vpop.f32.mrf.mxu0  ;;  %v248_v20 = vpop.f32.mrf.mxu1 }
  0xe5   :  { %v337_v25 = vadd.f32 %v521_v18, %v216_v19  ;;  %v345_v29 = vadd.f32 %v521_v18, %v248_v20  ;;  %v457_v44 = vmul.f32 %v339_v24, %v339_v24  ;;  %v465_v20 = vmul.f32 %v762_v21, %v762_v21 }
  0xe6   :  { %v636_v22 = vpop.f32.mrf.mxu0  ;;  %v644_v23 = vpop.f32.mrf.mxu1 }
  0xe7   :  { %v340_v26 = vadd.f32 %v636_v22, %v521_v18  ;;  %v764_v27 = vadd.f32 %v644_v23, %v521_v18  ;;  %v455_v37 = vmul.f32 %v337_v25, %v337_v25  ;;  %v463_v14 = vmul.f32 %v345_v29, %v345_v29 }
  0xe8   :  { %v219_v28 = vpop.f32.mrf.mxu0  ;;  %v251_v30 = vpop.f32.mrf.mxu1 }
  0xe9   :  { %v562_v31 = vpack.c.bf16 %v340_v26, %v339_v24  ;;  %v338_v32 = vadd.f32 %v521_v18, %v219_v28  ;;  %v582_v33 = vpack.c.bf16 %v764_v27, %v762_v21  ;;  %v346_v35 = vadd.f32 %v521_v18, %v251_v30 }
  0xea   :  { %v639_v34 = vpop.f32.mrf.mxu0  ;;  %v647_v36 = vpop.f32.mrf.mxu1  ;;  %v458_v48 = vmul.f32 %v340_v26, %v340_v26 }
  0xeb   :  { %594 = vst [vmem:[%s807_s3 + $0x8] sm:$0xff] %v562_v31   ;;  %v557_v38 = vpack.c.bf16 %v338_v32, %v337_v25  ;;  %v433_v39 = vadd.f32 %v338_v32, %v337_v25  ;;  %v456_v40 = vmul.f32 %v338_v32, %v338_v32  ;;  %598 = vst [vmem:[%s807_s3 + $0x28] sm:$0xff] %v582_v33  }
  0xec   :  { %v232_v41 = vpop.f32.mrf.mxu0  ;;  %v577_v42 = vpack.c.bf16 %v346_v35, %v345_v29  ;;  %v264_v43 = vpop.f32.mrf.mxu1  ;;  %v351_v50 = vadd.f32 %v647_v36, %v521_v18  ;;  %v343_v53 = vadd.f32 %v639_v34, %v521_v18 }
  0xed   :  { %558 = vst [vmem:[%s807_s3] sm:$0xff] %v557_v38   ;;  %v434_v45 = vadd.f32 %v433_v39, %v339_v24  ;;  %v471_v46 = vadd.f32 %v456_v40, %v455_v37  ;;  %v341_v47 = vadd.f32 %v521_v18, %v232_v41  ;;  %v349_v57 = vadd.f32 %v521_v18, %v264_v43 }
  0xee   :  { %v640_v49 = vpop.f32.mrf.mxu0  ;;  %597 = vst [vmem:[%s807_s3 + $0x20] sm:$0xff] %v577_v42   ;;  %v648_v51 = vpop.f32.mrf.mxu1  ;;  %v461_v8 = vmul.f32 %v343_v53, %v343_v53  ;;  %v466_v24 = vmul.f32 %v764_v27, %v764_v27  ;;  %v469_v34 = vmul.f32 %v351_v50, %v351_v50 }
  0xef   :  { %v472_v52 = vadd.f32 %v471_v46, %v457_v44  ;;  %v435_v54 = vadd.f32 %v434_v45, %v340_v26  ;;  %v344_v55 = vadd.f32 %v640_v49, %v521_v18  ;;  %v352_v58 = vadd.f32 %v648_v51, %v521_v18 }
  0xf0   :  { %v235_v56 = vpop.f32.mrf.mxu0  ;;  %v267_v59 = vpop.f32.mrf.mxu1  ;;  %v459_v61 = vmul.f32 %v341_v47, %v341_v47  ;;  %v467_v30 = vmul.f32 %v349_v57, %v349_v57 }
  0xf1   :  { %v436_v60 = vadd.f32 %v435_v54, %v341_v47  ;;  %v473_v62 = vadd.f32 %v472_v52, %v458_v48  ;;  %v572_v63 = vpack.c.bf16 %v344_v55, %v343_v53  ;;  %v342_v0 = vadd.f32 %v521_v18, %v235_v56 }
  0xf2   :  { %v592_v1 = vpack.c.bf16 %v352_v58, %v351_v50  ;;  %v350_v2 = vadd.f32 %v521_v18, %v267_v59  ;;  %v462_v11 = vmul.f32 %v344_v55, %v344_v55  ;;  %v464_v18 = vmul.f32 %v346_v35, %v346_v35 }
  0xf3   :  { %v474_v3 = vadd.f32 %v473_v62, %v459_v61  ;;  %596 = vst [vmem:[%s807_s3 + $0x18] sm:$0xff] %v572_v63   ;;  %v567_v4 = vpack.c.bf16 %v342_v0, %v341_v47  ;;  %v437_v5 = vadd.f32 %v436_v60, %v342_v0  ;;  %v460_v6 = vmul.f32 %v342_v0, %v342_v0 }
  0xf4   :  { %600 = vst [vmem:[%s807_s3 + $0x38] sm:$0xff] %v592_v1   ;;  %v587_v7 = vpack.c.bf16 %v350_v2, %v349_v57  ;;  %v468_v33 = vmul.f32 %v350_v2, %v350_v2  ;;  %v470_v37 = vmul.f32 %v352_v58, %v352_v58 }
  0xf5   :  { %595 = vst [vmem:[%s807_s3 + $0x10] sm:$0xff] %v567_v4   ;;  %v438_v9 = vadd.f32 %v437_v5, %v343_v53  ;;  %v475_v10 = vadd.f32 %v474_v3, %v460_v6 }
  0xf6   :  { %599 = vst [vmem:[%s807_s3 + $0x30] sm:$0xff] %v587_v7  }
  0xf7   :  { %v476_v12 = vadd.f32 %v475_v10, %v461_v8  ;;  %v439_v13 = vadd.f32 %v438_v9, %v344_v55 }
  0xf9   :  { %v440_v15 = vadd.f32 %v439_v13, %v345_v29  ;;  %v477_v16 = vadd.f32 %v476_v12, %v462_v11 }
  0xfb   :  { %v441_v17 = vadd.f32 %v440_v15, %v346_v35  ;;  %v478_v19 = vadd.f32 %v477_v16, %v463_v14 }
  0xfd   :  { %v442_v22 = vadd.f32 %v441_v17, %v762_v21  ;;  %v479_v23 = vadd.f32 %v478_v19, %v464_v18 }
  0xff   :  { %v480_v25 = vadd.f32 %v479_v23, %v465_v20  ;;  %v443_v26 = vadd.f32 %v442_v22, %v764_v27 }
 0x101   :  { %v444_v28 = vadd.f32 %v443_v26, %v349_v57  ;;  %v481_v31 = vadd.f32 %v480_v25, %v466_v24 }
 0x103   :  { %v482_v29 = vadd.f32 %v481_v31, %v467_v30  ;;  %v445_v32 = vadd.f32 %v444_v28, %v350_v2 }
 0x105   :  { %v446_v35 = vadd.f32 %v445_v32, %v351_v50  ;;  %v483_v36 = vadd.f32 %v482_v29, %v468_v33 }
 0x107   :  { %v447_v38 = vadd.f32 %v446_v35, %v352_v58  ;;  %v484_v39 = vadd.f32 %v483_v36, %v469_v34 }
 0x109   :  { %v448_v21 = vrot.slane %v447_v38, 4  ;;  %v485_v40 = vadd.f32 %v484_v39, %v470_v37 }
 0x10b   :  { %v449_v41 = vadd.f32 %v448_v21, %v447_v38  ;;  %v486_v42 = vrot.slane %v485_v40, 4 }
 0x10d   :  { %v450_v43 = vrot.slane %v449_v41, 2  ;;  %v487_v44 = vadd.f32 %v486_v42, %v485_v40 }
 0x10f   :  { %v451_v45 = vadd.f32 %v450_v43, %v449_v41  ;;  %v488_v27 = vrot.slane %v487_v44, 2 }
 0x111   :  { %v452_v46 = vrot.slane %v451_v45, 1  ;;  %v489_v47 = vadd.f32 %v488_v27, %v487_v44 }
 0x113   :  { %v453_v48 = vadd.f32 %v452_v46, %v451_v45  ;;  %v490_v49 = vrot.slane %v489_v47, 1 }
 0x115   :  { %454 = vst [vmem:[%s808_s4] sm:$0xff] %v453_v48  ;;  %v491_v50 = vadd.f32 %v490_v49, %v489_v47 }
 0x117   :  { %492 = vst [vmem:[%s809_s5] sm:$0xff] %v491_v50 }

// kernel: _lambda_.14
= control target key start
LH: loop header
LB: loop body
LE: loop exit
PB: predicated region body
PF: predicated region fallthrough
CT: control target
= control target key end

     0   :  { %s524_s1 = inlined_call_operand.vmem [shape: bf16[256,128], index: 1, kind: input, shape index: {}]   ;;  %s525_s0 = inlined_call_operand.vmem [shape: bf16[32,256], index: 0, kind: input, shape index: {}]   ;;  %s526_s2 = inlined_call_operand.vmem [shape: f32[1,128], index: 2, kind: input, shape index: {}]   ;;  %s527_s3 = inlined_call_operand.vmem [shape: bf16[32,128], index: 3, kind: output, shape index: {0}]   ;;  %s528_s4 = inlined_call_operand.vmem [shape: f32[8,128], index: 4, kind: output, shape index: {1}]   ;;  %s529_s5 = inlined_call_operand.vmem [shape: f32[8,128], index: 5, kind: output, shape index: {2}]  }
   0x1   :  { %v397_v0 = vld [vmem:[%s524_s1 + $0x78] sm:$0xff]   ;;  %v399_v2 = vld [vmem:[%s524_s1 + $0x70] sm:$0xff]   ;;  %v401_v4 = vld [vmem:[%s524_s1 + $0x68] sm:$0xff]  }
   0x2   :  { %v398_v1 = vld [vmem:[%s524_s1 + $0x38] sm:$0xff]   ;;  %353 = vmatprep.subr.bf16.mxu0 %v397_v0  ;;  %381 = vmatprep.subr.bf16.mxu1 %v397_v0  ;;  %v400_v3 = vld [vmem:[%s524_s1 + $0x30] sm:$0xff]   ;;  %v402_v5 = vld [vmem:[%s524_s1 + $0x28] sm:$0xff]  }
   0x3   :  { %354 = vmatpush3.bf16.msra.mxu0 %v398_v1  ;;  %389 = vmatpush3.bf16.msra.mxu1 %v398_v1  ;;  %v403_v6 = vld [vmem:[%s524_s1 + $0x60] sm:$0xff]   ;;  %v405_v8 = vld [vmem:[%s524_s1 + $0x58] sm:$0xff]   ;;  %v407_v10 = vld [vmem:[%s524_s1 + $0x50] sm:$0xff]  }
   0x4   :  { %355 = vmatprep.subr.bf16.mxu0 %v399_v2  ;;  %382 = vmatprep.subr.bf16.mxu1 %v399_v2  ;;  %v404_v7 = vld [vmem:[%s524_s1 + $0x20] sm:$0xff]   ;;  %v406_v9 = vld [vmem:[%s524_s1 + $0x18] sm:$0xff]   ;;  %v408_v13 = vld [vmem:[%s524_s1 + $0x10] sm:$0xff]  }
   0x5   :  { %v415_v11 = vld [vmem:[%s525_s0 + $0x4] ss:$8 sps:$4 sm:$0xff]   ;;  %v418_v12 = vld [vmem:[%s525_s0 + $0x14] ss:$8 sps:$4 sm:$0xff]   ;;  %v413_v18 = vld [vmem:[%s525_s0] ss:$8 sps:$4 sm:$0xff]  }
   0x6   :  { %v409_v14 = vld [vmem:[%s524_s1 + $0x48] sm:$0xff]   ;;  %214 = vmatprep.mubr.bf16.mxu0 %v415_v11  ;;  %222 = vmatprep.mubr.bf16.mxu1 %v418_v12  ;;  %v411_v16 = vld [vmem:[%s524_s1 + $0x40] sm:$0xff]   ;;  %v416_v19 = vld [vmem:[%s525_s0 + $0x10] ss:$8 sps:$4 sm:$0xff]  }
   0x7   :  { %356 = vmatpush3.bf16.msra.mxu0 %v400_v3  ;;  %390 = vmatpush3.bf16.msra.mxu1 %v400_v3  ;;  %v410_v15 = vld [vmem:[%s524_s1 + $0x8] sm:$0xff]   ;;  %v412_v17 = vld [vmem:[%s524_s1] sm:$0xff]  }
   0x8   :  { %357 = vmatprep.subr.bf16.mxu0 %v401_v4  ;;  %383 = vmatprep.subr.bf16.mxu1 %v401_v4  ;;  %v333_v25 = vld [vmem:[%s526_s2] ss:$0 sm:$0xff] }
   0xb   :  { %358 = vmatpush3.bf16.msra.mxu0 %v402_v5  ;;  %391 = vmatpush3.bf16.msra.mxu1 %v402_v5 }
   0xc   :  { %359 = vmatprep.subr.bf16.mxu0 %v403_v6  ;;  %384 = vmatprep.subr.bf16.mxu1 %v403_v6 }
   0xf   :  { %360 = vmatpush3.bf16.msra.mxu0 %v404_v7  ;;  %392 = vmatpush3.bf16.msra.mxu1 %v404_v7 }
  0x10   :  { %361 = vmatprep.subr.bf16.mxu0 %v405_v8  ;;  %385 = vmatprep.subr.bf16.mxu1 %v405_v8 }
  0x13   :  { %362 = vmatpush3.bf16.msra.mxu0 %v406_v9  ;;  %393 = vmatpush3.bf16.msra.mxu1 %v406_v9 }
  0x14   :  { %363 = vmatprep.subr.bf16.mxu0 %v407_v10  ;;  %386 = vmatprep.subr.bf16.mxu1 %v407_v10 }
  0x17   :  { %364 = vmatpush3.bf16.msra.mxu0 %v408_v13  ;;  %394 = vmatpush3.bf16.msra.mxu1 %v408_v13 }
  0x18   :  { %365 = vmatprep.subr.bf16.mxu0 %v409_v14  ;;  %387 = vmatprep.subr.bf16.mxu1 %v409_v14 }
  0x1b   :  { %366 = vmatpush3.bf16.msra.mxu0 %v410_v15  ;;  %395 = vmatpush3.bf16.msra.mxu1 %v410_v15 }
  0x1c   :  { %367 = vmatprep.subr.bf16.mxu0 %v411_v16  ;;  %388 = vmatprep.subr.bf16.mxu1 %v411_v16 }
  0x1f   :  { %368 = vmatpush3.bf16.msra.mxu0 %v412_v17  ;;  %396 = vmatpush3.bf16.msra.mxu1 %v412_v17 }
  0x22   :  { %215 = vmatmul.mubr.bf16.vlgmr.msra.gmra.mxu0 %v413_v18  ;;  %223 = vmatmul.mubr.bf16.vlgmr.msra.gmra.mxu1 %v416_v19 }
  0xe2   :  { %v369_v20 = vpop.f32.mrf.mxu0  ;;  %v375_v21 = vpop.f32.mrf.mxu1 }
  0xe4   :  { %v370_v22 = vpop.f32.mrf.mxu0  ;;  %v376_v23 = vpop.f32.mrf.mxu1 }
  0xe5   :  { %v371_v24 = vadd.f32 %v370_v22, %v369_v20  ;;  %v377_v28 = vadd.f32 %v376_v23, %v375_v21 }
  0xe6   :  { %v372_v26 = vpop.f32.mrf.mxu0  ;;  %v378_v27 = vpop.f32.mrf.mxu1 }
  0xe7   :  { %v253_v29 = vadd.f32 %v371_v24, %v333_v25  ;;  %v255_v34 = vadd.f32 %v377_v28, %v333_v25 }
  0xe8   :  { %v373_v30 = vpop.f32.mrf.mxu0  ;;  %v379_v31 = vpop.f32.mrf.mxu1 }
  0xe9   :  { %v374_v32 = vadd.f32 %v373_v30, %v372_v26  ;;  %v380_v33 = vadd.f32 %v379_v31, %v378_v27  ;;  %v287_v37 = vmul.f32 %v253_v29, %v253_v29  ;;  %v289_v42 = vmul.f32 %v255_v34, %v255_v34 }
  0xeb   :  { %v254_v35 = vadd.f32 %v374_v32, %v333_v25  ;;  %v256_v36 = vadd.f32 %v380_v33, %v333_v25 }
  0xed   :  { %v345_v38 = vpack.c.bf16 %v254_v35, %v253_v29  ;;  %v277_v39 = vadd.f32 %v254_v35, %v253_v29  ;;  %v288_v40 = vmul.f32 %v254_v35, %v254_v35  ;;  %v350_v41 = vpack.c.bf16 %v256_v36, %v255_v34 }
  0xee   :  { %v290_v46 = vmul.f32 %v256_v36, %v256_v36 }
  0xef   :  { %346 = vst [vmem:[%s527_s3] sm:$0xff] %v345_v38   ;;  %v291_v43 = vadd.f32 %v288_v40, %v287_v37  ;;  %352 = vst [vmem:[%s527_s3 + $0x8] sm:$0xff] %v350_v41   ;;  %v278_v44 = vadd.f32 %v277_v39, %v255_v34 }
  0xf1   :  { %v279_v45 = vadd.f32 %v278_v44, %v256_v36  ;;  %v292_v47 = vadd.f32 %v291_v43, %v289_v42 }
  0xf3   :  { %v280_v48 = vrot.slane %v279_v45, 4  ;;  %v293_v49 = vadd.f32 %v292_v47, %v290_v46 }
  0xf5   :  { %v281_v50 = vadd.f32 %v280_v48, %v279_v45  ;;  %v294_v51 = vrot.slane %v293_v49, 4 }
  0xf7   :  { %v282_v52 = vrot.slane %v281_v50, 2  ;;  %v295_v53 = vadd.f32 %v294_v51, %v293_v49 }
  0xf9   :  { %v283_v54 = vadd.f32 %v282_v52, %v281_v50  ;;  %v296_v55 = vrot.slane %v295_v53, 2 }
  0xfb   :  { %v284_v56 = vrot.slane %v283_v54, 1  ;;  %v297_v57 = vadd.f32 %v296_v55, %v295_v53 }
  0xfd   :  { %v285_v58 = vadd.f32 %v284_v56, %v283_v54  ;;  %v298_v59 = vrot.slane %v297_v57, 1 }
  0xff   :  { %286 = vst [vmem:[%s528_s4] sm:$0xff] %v285_v58  ;;  %v299_v60 = vadd.f32 %v298_v59, %v297_v57 }
 0x101   :  { %300 = vst [vmem:[%s529_s5] sm:$0xff] %v299_v60 }

// kernel: _lambda_.15
= control target key start
LH: loop header
LB: loop body
LE: loop exit
PB: predicated region body
PF: predicated region fallthrough
CT: control target
= control target key end

     0   :  { %vm72_vm4 = vcmask 257024   ;;  %s144_s0 = inlined_call_operand.vmem [shape: bf16[32,32], index: 0, kind: input, shape index: {}]   ;;  %s145_s1 = inlined_call_operand.vmem [shape: f32[1,32], index: 1, kind: input, shape index: {}]   ;;  %s146_s2 = inlined_call_operand.vmem [shape: f32[1,32], index: 2, kind: input, shape index: {}]   ;;  %s147_s3 = inlined_call_operand.vmem [shape: bf16[32,32], index: 3, kind: output, shape index: {}]  }
   0x1   :  { %v92_v0 = vld [vmem:[%s144_s0] sm:$0xff]   ;;  %v99_v4 = vld [vmem:[%s144_s0 + $0x8] sm:$0xff]  }
   0x2   :  { %v81_v1 = vld [vmem:[%s145_s1] ss:$0 sm:$0xff]  ;;  %v93_v2 = vunpack.c.l.bf16 %v92_v0  ;;  %v94_v3 = vunpack.c.h.bf16 %v92_v0  ;;  %v97_v6 = vunpack.c.l.bf16 %v99_v4  ;;  %v98_v7 = vunpack.c.h.bf16 %v99_v4 }
   0x3   :  { %v82_v5 = vld [vmem:[%s146_s2] ss:$0 sm:$0xff] }
   0x4   :  { %v29_v8 = vmul.f32 %v93_v2, %v81_v1  ;;  %v30_v9 = vmul.f32 %v94_v3, %v81_v1  ;;  %v31_v10 = vmul.f32 %v97_v6, %v81_v1  ;;  %v32_v11 = vmul.f32 %v98_v7, %v81_v1 }
   0x6   :  { %v40_v12 = vadd.f32 %v82_v5, %v29_v8  ;;  %v41_v13 = vadd.f32 %v82_v5, %v30_v9  ;;  %v42_v14 = vadd.f32 %v82_v5, %v31_v10  ;;  %v43_v15 = vadd.f32 %v82_v5, %v32_v11 }
   0x8   :  { %vm44_vm0 = vcmp.ge.f32.partialorder %v40_v12, 0.0  ;;  %v48_v16 = vmul.f32 0.2, %v40_v12  ;;  %vm45_vm1 = vcmp.ge.f32.partialorder %v41_v13, 0.0  ;;  %v49_v17 = vmul.f32 0.2, %v41_v13 }
   0x9   :  { %vm46_vm2 = vcmp.ge.f32.partialorder %v42_v14, 0.0  ;;  %v50_v18 = vmul.f32 0.2, %v42_v14  ;;  %vm47_vm3 = vcmp.ge.f32.partialorder %v43_v15, 0.0  ;;  %v51_v19 = vmul.f32 0.2, %v43_v15 }
   0xa   :  { %v52_v20 = vsel %vm44_vm0, %v40_v12, %v48_v16  ;;  %v53_v21 = vsel %vm45_vm1, %v41_v13, %v49_v17 }
   0xb   :  { %v87_v22 = vpack.c.bf16 %v52_v20, %v52_v20  ;;  %v88_v23 = vpack.c.bf16 %v53_v21, %v53_v21  ;;  %v54_v24 = vsel %vm46_vm2, %v42_v14, %v50_v18  ;;  %v55_v25 = vsel %vm47_vm3, %v43_v15, %v51_v19 }
   0xc   :  { %v89_v26 = vpack.c.bf16 %v54_v24, %v54_v24  ;;  %v90_v27 = vpack.c.bf16 %v55_v25, %v55_v25 }
   0xd   :  { %73 = vst.msk [vmem:[%s147_s3] sm:$0xf] %vm72_vm4, %v87_v22  ;;  %74 = vst.msk [vmem:[%s147_s3 + $0x4] sm:$0xf] %vm72_vm4, %v88_v23 }
   0xe   :  { %75 = vst.msk [vmem:[%s147_s3 + $0x8] sm:$0xf] %vm72_vm4, %v89_v26  ;;  %76 = vst.msk [vmem:[%s147_s3 + $0xc] sm:$0xf] %vm72_vm4, %v90_v27 }

// kernel: _lambda_.16
= control target key start
LH: loop header
LB: loop body
LE: loop exit
PB: predicated region body
PF: predicated region fallthrough
CT: control target
= control target key end

     0   :  { %vm47_vm0 = vcmask 257024   ;;  %s230_s0 = inlined_call_operand.vmem [shape: bf16[32,32], index: 0, kind: input, shape index: {}]   ;;  %s231_s1 = inlined_call_operand.vmem [shape: bf16[32,32], index: 1, kind: input, shape index: {}]   ;;  %s232_s2 = inlined_call_operand.vmem [shape: f32[1,32], index: 2, kind: input, shape index: {}]   ;;  %s233_s3 = inlined_call_operand.vmem [shape: f32[1,32], index: 3, kind: input, shape index: {}]   ;;  %s234_s4 = inlined_call_operand.vmem [shape: bf16[32,32], index: 4, kind: output, shape index: {0}]   ;;  %s235_s5 = inlined_call_operand.vmem [shape: bf16[32,32], index: 5, kind: output, shape index: {1}]  }
   0x1   :  { %v133_v0 = vld [vmem:[%s230_s0] sm:$0xff]   ;;  %v148_v1 = vld [vmem:[%s230_s0 + $0x8] sm:$0xff]  }
   0x2   :  { %v141_v2 = vld [vmem:[%s231_s1] sm:$0xff]   ;;  %v134_v3 = vunpack.c.l.bf16 %v133_v0  ;;  %v135_v4 = vunpack.c.h.bf16 %v133_v0  ;;  %v138_v5 = vunpack.c.l.bf16 %v148_v1  ;;  %v139_v6 = vunpack.c.h.bf16 %v148_v1  ;;  %v149_v8 = vld [vmem:[%s231_s1 + $0x8] sm:$0xff]  }
   0x3   :  { %v118_v7 = vld [vmem:[%s232_s2] ss:$0 sm:$0xff]  ;;  %v142_v9 = vunpack.c.l.bf16 %v141_v2  ;;  %v143_v10 = vunpack.c.h.bf16 %v141_v2  ;;  %v146_v11 = vunpack.c.l.bf16 %v149_v8  ;;  %v147_v12 = vunpack.c.h.bf16 %v149_v8 }
   0x4   :  { %v27_v13 = vmax.f32 %v134_v3, 0.0  ;;  %v28_v14 = vmax.f32 %v135_v4, 0.0  ;;  %v29_v15 = vmax.f32 %v138_v5, 0.0  ;;  %v30_v16 = vmax.f32 %v139_v6, 0.0  ;;  %v119_v17 = vld [vmem:[%s233_s3] ss:$0 sm:$0xff] }
   0x5   :  { %v67_v18 = vmul.f32 %v142_v9, %v118_v7  ;;  %v68_v19 = vmul.f32 %v143_v10, %v118_v7  ;;  %v69_v20 = vmul.f32 %v146_v11, %v118_v7  ;;  %v70_v21 = vmul.f32 %v147_v12, %v118_v7 }
   0x6   :  { %v124_v22 = vpack.c.bf16 %v27_v13, %v27_v13  ;;  %v125_v23 = vpack.c.bf16 %v28_v14, %v28_v14  ;;  %v126_v24 = vpack.c.bf16 %v29_v15, %v29_v15  ;;  %v127_v25 = vpack.c.bf16 %v30_v16, %v30_v16 }
   0x7   :  { %v78_v26 = vadd.f32 %v119_v17, %v67_v18  ;;  %v79_v27 = vadd.f32 %v119_v17, %v68_v19  ;;  %v80_v28 = vadd.f32 %v119_v17, %v69_v20  ;;  %v81_v29 = vadd.f32 %v119_v17, %v70_v21 }
   0x8   :  { %48 = vst.msk [vmem:[%s234_s4] sm:$0xf] %vm47_vm0, %v124_v22  ;;  %49 = vst.msk [vmem:[%s234_s4 + $0x4] sm:$0xf] %vm47_vm0, %v125_v23 }
   0x9   :  { %50 = vst.msk [vmem:[%s234_s4 + $0x8] sm:$0xf] %vm47_vm0, %v126_v24  ;;  %51 = vst.msk [vmem:[%s234_s4 + $0xc] sm:$0xf] %vm47_vm0, %v127_v25  ;;  %v82_v30 = vmax.f32 %v78_v26, 0.0  ;;  %v83_v31 = vmax.f32 %v79_v27, 0.0 }
   0xa   :  { %v84_v32 = vmax.f32 %v80_v28, 0.0  ;;  %v85_v33 = vmax.f32 %v81_v29, 0.0 }
   0xb   :  { %v128_v34 = vpack.c.bf16 %v82_v30, %v82_v30  ;;  %v129_v35 = vpack.c.bf16 %v83_v31, %v83_v31 }
   0xc   :  { %v130_v36 = vpack.c.bf16 %v84_v32, %v84_v32  ;;  %v131_v37 = vpack.c.bf16 %v85_v33, %v85_v33 }
   0xd   :  { %102 = vst.msk [vmem:[%s235_s5] sm:$0xf] %vm47_vm0, %v128_v34  ;;  %103 = vst.msk [vmem:[%s235_s5 + $0x4] sm:$0xf] %vm47_vm0, %v129_v35 }
   0xe   :  { %104 = vst.msk [vmem:[%s235_s5 + $0x8] sm:$0xf] %vm47_vm0, %v130_v36  ;;  %105 = vst.msk [vmem:[%s235_s5 + $0xc] sm:$0xf] %vm47_vm0, %v131_v37 }

// kernel: _lambda_.17
= control target key start
LH: loop header
LB: loop body
LE: loop exit
PB: predicated region body
PF: predicated region fallthrough
CT: control target
= control target key end

     0   :  { %s1048_s1 = inlined_call_operand.vmem [shape: bf16[640,128], index: 1, kind: input, shape index: {}]   ;;  %s1049_s0 = inlined_call_operand.vmem [shape: bf16[32,640], index: 0, kind: input, shape index: {}]   ;;  %s1050_s2 = inlined_call_operand.vmem [shape: f32[1,128], index: 2, kind: input, shape index: {}]   ;;  %s1051_s3 = inlined_call_operand.vmem [shape: bf16[32,128], index: 3, kind: output, shape index: {0}]   ;;  %s1052_s4 = inlined_call_operand.vmem [shape: f32[8,128], index: 4, kind: output, shape index: {1}]   ;;  %s1053_s5 = inlined_call_operand.vmem [shape: f32[8,128], index: 5, kind: output, shape index: {2}]  }
   0x1   :  { %v799_v0 = vld [vmem:[%s1048_s1 + $0x78] sm:$0xff]   ;;  %v803_v4 = vld [vmem:[%s1048_s1 + $0x70] sm:$0xff]   ;;  %v807_v8 = vld [vmem:[%s1048_s1 + $0x68] sm:$0xff]  }
   0x2   :  { %v800_v1 = vld [vmem:[%s1048_s1 + $0xf8] sm:$0xff]   ;;  %713 = vmatprep.subr.bf16.mxu0 %v799_v0  ;;  %v804_v5 = vld [vmem:[%s1048_s1 + $0xf0] sm:$0xff]   ;;  %v808_v9 = vld [vmem:[%s1048_s1 + $0xe8] sm:$0xff]  }
   0x3   :  { %v801_v2 = vld [vmem:[%s1048_s1 + $0x38] sm:$0xff]   ;;  %741 = vmatprep.subr.bf16.mxu1 %v800_v1  ;;  %v805_v6 = vld [vmem:[%s1048_s1 + $0x30] sm:$0xff]   ;;  %v809_v10 = vld [vmem:[%s1048_s1 + $0x28] sm:$0xff]  }
   0x4   :  { %v802_v3 = vld [vmem:[%s1048_s1 + $0xb8] sm:$0xff]   ;;  %714 = vmatpush3.bf16.msra.mxu0 %v801_v2  ;;  %v806_v7 = vld [vmem:[%s1048_s1 + $0xb0] sm:$0xff]   ;;  %v810_v11 = vld [vmem:[%s1048_s1 + $0xa8] sm:$0xff]  }
   0x5   :  { %742 = vmatpush3.bf16.msra.mxu1 %v802_v3  ;;  %715 = vmatprep.subr.bf16.mxu0 %v803_v4  ;;  %v811_v12 = vld [vmem:[%s1048_s1 + $0x60] sm:$0xff]   ;;  %v815_v16 = vld [vmem:[%s1048_s1 + $0x58] sm:$0xff]   ;;  %v819_v20 = vld [vmem:[%s1048_s1 + $0x50] sm:$0xff]  }
   0x6   :  { %743 = vmatprep.subr.bf16.mxu1 %v804_v5  ;;  %v812_v13 = vld [vmem:[%s1048_s1 + $0xe0] sm:$0xff]   ;;  %v816_v17 = vld [vmem:[%s1048_s1 + $0xd8] sm:$0xff]   ;;  %v820_v21 = vld [vmem:[%s1048_s1 + $0xd0] sm:$0xff]  }
   0x7   :  { %v813_v14 = vld [vmem:[%s1048_s1 + $0x20] sm:$0xff]   ;;  %v817_v18 = vld [vmem:[%s1048_s1 + $0x18] sm:$0xff]   ;;  %v821_v22 = vld [vmem:[%s1048_s1 + $0x10] sm:$0xff]  }
   0x8   :  { %716 = vmatpush3.bf16.msra.mxu0 %v805_v6  ;;  %v814_v15 = vld [vmem:[%s1048_s1 + $0xa0] sm:$0xff]   ;;  %v818_v19 = vld [vmem:[%s1048_s1 + $0x98] sm:$0xff]   ;;  %v822_v23 = vld [vmem:[%s1048_s1 + $0x90] sm:$0xff]  }
   0x9   :  { %744 = vmatpush3.bf16.msra.mxu1 %v806_v7  ;;  %717 = vmatprep.subr.bf16.mxu0 %v807_v8  ;;  %v823_v24 = vld [vmem:[%s1048_s1 + $0x48] sm:$0xff]   ;;  %v827_v28 = vld [vmem:[%s1048_s1 + $0x40] sm:$0xff]   ;;  %v837_v36 = vld [vmem:[%s1048_s1 + $0x138] sm:$0xff]  }
   0xa   :  { %745 = vmatprep.subr.bf16.mxu1 %v808_v9  ;;  %v824_v25 = vld [vmem:[%s1048_s1 + $0xc8] sm:$0xff]   ;;  %v828_v29 = vld [vmem:[%s1048_s1 + $0xc0] sm:$0xff]   ;;  %v838_v37 = vld [vmem:[%s1048_s1 + $0x130] sm:$0xff]  }
   0xb   :  { %v825_v26 = vld [vmem:[%s1048_s1 + $0x8] sm:$0xff]   ;;  %v829_v30 = vld [vmem:[%s1048_s1] sm:$0xff]   ;;  %v841_v45 = vld [vmem:[%s1048_s1 + $0x118] sm:$0xff]  }
   0xc   :  { %718 = vmatpush3.bf16.msra.mxu0 %v809_v10  ;;  %v826_v27 = vld [vmem:[%s1048_s1 + $0x88] sm:$0xff]   ;;  %v830_v31 = vld [vmem:[%s1048_s1 + $0x80] sm:$0xff]   ;;  %v848_v46 = vld [vmem:[%s1048_s1 + $0x110] sm:$0xff]  }
   0xd   :  { %746 = vmatpush3.bf16.msra.mxu1 %v810_v11  ;;  %719 = vmatprep.subr.bf16.mxu0 %v811_v12  ;;  %v831_v32 = vld [vmem:[%s1049_s0] ss:$20 sps:$4 sm:$0xff]   ;;  %v833_v33 = vld [vmem:[%s1049_s0 + $0x4] ss:$20 sps:$4 sm:$0xff]   ;;  %v834_v34 = vld [vmem:[%s1049_s0 + $0x8] ss:$20 sps:$4 sm:$0xff]  }
   0xe   :  { %747 = vmatprep.subr.bf16.mxu1 %v812_v13  ;;  %v836_v35 = vld [vmem:[%s1049_s0 + $0xc] ss:$20 sps:$4 sm:$0xff]   ;;  %446 = vmatprep.mubr.bf16.mxu0 %v833_v33  ;;  %v844_v40 = vld [vmem:[%s1049_s0 + $0x34] ss:$20 sps:$4 sm:$0xff]   ;;  %v847_v42 = vld [vmem:[%s1049_s0 + $0x30] ss:$20 sps:$4 sm:$0xff]  }
   0xf   :  { %495 = vmatprep.mubr.bf16.mxu1 %v836_v35  ;;  %v839_v38 = vld [vmem:[%s1048_s1 + $0x128] sm:$0xff]   ;;  %v840_v43 = vld [vmem:[%s1048_s1 + $0x120] sm:$0xff]  }
  0x10   :  { %720 = vmatpush3.bf16.msra.mxu0 %v813_v14  ;;  %v842_v39 = vld [vmem:[%s1049_s0 + $0x2c] ss:$20 sps:$4 sm:$0xff]   ;;  %v846_v41 = vld [vmem:[%s1049_s0 + $0x28] ss:$20 sps:$4 sm:$0xff]   ;;  %v851_v44 = vld [vmem:[%s1049_s0 + $0x10] ss:$20 sps:$4 sm:$0xff]  }
  0x11   :  { %748 = vmatpush3.bf16.msra.mxu1 %v814_v15  ;;  %721 = vmatprep.subr.bf16.mxu0 %v815_v16  ;;  %v849_v47 = vld [vmem:[%s1048_s1 + $0x108] sm:$0xff]   ;;  %v850_v48 = vld [vmem:[%s1048_s1 + $0x100] sm:$0xff]  }
  0x12   :  { %749 = vmatprep.subr.bf16.mxu1 %v816_v17  ;;  %v852_v49 = vld [vmem:[%s1049_s0 + $0x38] ss:$20 sps:$4 sm:$0xff]   ;;  %v693_v17 = vld [vmem:[%s1050_s2] ss:$0 sm:$0xff] }
  0x14   :  { %722 = vmatpush3.bf16.msra.mxu0 %v817_v18 }
  0x15   :  { %750 = vmatpush3.bf16.msra.mxu1 %v818_v19  ;;  %723 = vmatprep.subr.bf16.mxu0 %v819_v20 }
  0x16   :  { %751 = vmatprep.subr.bf16.mxu1 %v820_v21 }
  0x18   :  { %724 = vmatpush3.bf16.msra.mxu0 %v821_v22 }
  0x19   :  { %752 = vmatpush3.bf16.msra.mxu1 %v822_v23  ;;  %725 = vmatprep.subr.bf16.mxu0 %v823_v24 }
  0x1a   :  { %753 = vmatprep.subr.bf16.mxu1 %v824_v25 }
  0x1c   :  { %726 = vmatpush3.bf16.msra.mxu0 %v825_v26 }
  0x1d   :  { %754 = vmatpush3.bf16.msra.mxu1 %v826_v27  ;;  %727 = vmatprep.subr.bf16.mxu0 %v827_v28 }
  0x1e   :  { %755 = vmatprep.subr.bf16.mxu1 %v828_v29 }
  0x20   :  { %728 = vmatpush3.bf16.msra.mxu0 %v829_v30 }
  0x21   :  { %756 = vmatpush3.bf16.msra.mxu1 %v830_v31  ;;  %779 = vmatprep.subr.bf16.mxu0 %v837_v36 }
  0x23   :  { %447 = vmatmul.mubr.bf16.vlgmr.msra.gmra.mxu0 %v831_v32 }
  0x24   :  { %496 = vmatmul.mubr.bf16.vlgmr.msra.gmra.mxu1 %v834_v34  ;;  %780 = vmatpush3.bf16.msra.mxu0 %v837_v36 }
  0x25   :  { %781 = vmatprep.subr.bf16.mxu0 %v838_v37  ;;  %454 = vmatprep.mubr.bf16.mxu0 %v842_v39 }
  0x26   :  { %503 = vmatprep.mubr.bf16.mxu1 %v844_v40 }
  0x28   :  { %782 = vmatpush3.bf16.msra.mxu0 %v838_v37 }
  0x29   :  { %783 = vmatprep.subr.bf16.mxu0 %v839_v38 }
  0x2b   :  { %455 = vmatmul.mubr.bf16.gmra.mxu0 %v846_v41 }
  0x2c   :  { %504 = vmatmul.mubr.bf16.gmra.mxu1 %v847_v42  ;;  %784 = vmatpush3.bf16.msra.mxu0 %v839_v38 }
  0x2d   :  { %785 = vmatprep.subr.bf16.mxu0 %v840_v43  ;;  %795 = vmatprep.mubr.bf16.mxu0 %v851_v44 }
  0x30   :  { %786 = vmatpush3.bf16.msra.mxu0 %v840_v43 }
  0x31   :  { %787 = vmatprep.subr.bf16.mxu0 %v841_v45 }
  0x34   :  { %788 = vmatpush3.bf16.msra.mxu0 %v841_v45 }
  0x35   :  { %789 = vmatprep.subr.bf16.mxu0 %v848_v46 }
  0x38   :  { %790 = vmatpush3.bf16.msra.mxu0 %v848_v46 }
  0x39   :  { %791 = vmatprep.subr.bf16.mxu0 %v849_v47 }
  0x3c   :  { %792 = vmatpush3.bf16.msra.mxu0 %v849_v47 }
  0x3d   :  { %793 = vmatprep.subr.bf16.mxu0 %v850_v48 }
  0x40   :  { %794 = vmatpush3.bf16.msra.mxu0 %v850_v48 }
  0x43   :  { %796 = vmatmul.mubr.bf16.vlgmr.msra.gmra.mxu0 %v852_v49 }
  0xe3   :  { %v729_v50 = vpop.f32.mrf.mxu0 }
  0xe4   :  { %v757_v51 = vpop.f32.mrf.mxu1 }
  0xe5   :  { %v730_v52 = vpop.f32.mrf.mxu0 }
  0xe6   :  { %v758_v53 = vpop.f32.mrf.mxu1  ;;  %v731_v2 = vadd.f32 %v730_v52, %v729_v50 }
  0xe7   :  { %v732_v54 = vpop.f32.mrf.mxu0  ;;  %v759_v3 = vadd.f32 %v758_v53, %v757_v51 }
  0xe8   :  { %v760_v55 = vpop.f32.mrf.mxu1 }
  0xe9   :  { %v733_v56 = vpop.f32.mrf.mxu0  ;;  %v498_v12 = vadd.f32 %v759_v3, %v731_v2 }
  0xea   :  { %v761_v57 = vpop.f32.mrf.mxu1  ;;  %v734_v9 = vadd.f32 %v733_v56, %v732_v54 }
  0xeb   :  { %v735_v58 = vpop.f32.mrf.mxu0  ;;  %v762_v10 = vadd.f32 %v761_v57, %v760_v55 }
  0xec   :  { %v763_v59 = vpop.f32.mrf.mxu1 }
  0xed   :  { %v736_v60 = vpop.f32.mrf.mxu0  ;;  %v501_v20 = vadd.f32 %v762_v10, %v734_v9 }
  0xee   :  { %v764_v61 = vpop.f32.mrf.mxu1  ;;  %v737_v4 = vadd.f32 %v736_v60, %v735_v58 }
  0xef   :  { %v738_v62 = vpop.f32.mrf.mxu0  ;;  %v765_v5 = vadd.f32 %v764_v61, %v763_v59 }
  0xf0   :  { %v766_v63 = vpop.f32.mrf.mxu1 }
  0xf1   :  { %v739_v0 = vpop.f32.mrf.mxu0  ;;  %v506_v11 = vadd.f32 %v765_v5, %v737_v4 }
  0xf2   :  { %v767_v1 = vpop.f32.mrf.mxu1  ;;  %v740_v6 = vadd.f32 %v739_v0, %v738_v62 }
  0xf3   :  { %v768_v7 = vadd.f32 %v767_v1, %v766_v63 }
  0xf5   :  { %v509_v16 = vadd.f32 %v768_v7, %v740_v6 }
 0x103   :  { %v797_v8 = vpop.f32.mrf.mxu0 }
 0x104   :  { %v555_v14 = vadd.f32 %v797_v8, %v506_v11 }
 0x105   :  { %v546_v13 = vpop.f32.mrf.mxu0 }
 0x106   :  { %v547_v15 = vadd.f32 %v546_v13, %v498_v12  ;;  %v585_v22 = vadd.f32 %v693_v17, %v555_v14 }
 0x107   :  { %v798_v18 = vpop.f32.mrf.mxu0 }
 0x108   :  { %v558_v19 = vadd.f32 %v798_v18, %v509_v16  ;;  %v583_v23 = vadd.f32 %v693_v17, %v547_v15  ;;  %v619_v32 = vmul.f32 %v585_v22, %v585_v22 }
 0x109   :  { %v549_v21 = vpop.f32.mrf.mxu0 }
 0x10a   :  { %v586_v24 = vadd.f32 %v693_v17, %v558_v19  ;;  %v550_v25 = vadd.f32 %v549_v21, %v501_v20  ;;  %v617_v28 = vmul.f32 %v583_v23, %v583_v23 }
 0x10c   :  { %v710_v26 = vpack.c.bf16 %v586_v24, %v585_v22  ;;  %v584_v27 = vadd.f32 %v693_v17, %v550_v25  ;;  %v620_v35 = vmul.f32 %v586_v24, %v586_v24 }
 0x10e   :  { %712 = vst [vmem:[%s1051_s3 + $0x8] sm:$0xff] %v710_v26   ;;  %v705_v29 = vpack.c.bf16 %v584_v27, %v583_v23  ;;  %v607_v30 = vadd.f32 %v584_v27, %v583_v23  ;;  %v618_v31 = vmul.f32 %v584_v27, %v584_v27 }
 0x110   :  { %706 = vst [vmem:[%s1051_s3] sm:$0xff] %v705_v29   ;;  %v608_v33 = vadd.f32 %v607_v30, %v585_v22  ;;  %v621_v34 = vadd.f32 %v618_v31, %v617_v28 }
 0x112   :  { %v609_v36 = vadd.f32 %v608_v33, %v586_v24  ;;  %v622_v37 = vadd.f32 %v621_v34, %v619_v32 }
 0x114   :  { %v610_v38 = vrot.slane %v609_v36, 4  ;;  %v623_v39 = vadd.f32 %v622_v37, %v620_v35 }
 0x116   :  { %v611_v40 = vadd.f32 %v610_v38, %v609_v36  ;;  %v624_v41 = vrot.slane %v623_v39, 4 }
 0x118   :  { %v612_v42 = vrot.slane %v611_v40, 2  ;;  %v625_v43 = vadd.f32 %v624_v41, %v623_v39 }
 0x11a   :  { %v613_v44 = vadd.f32 %v612_v42, %v611_v40  ;;  %v626_v45 = vrot.slane %v625_v43, 2 }
 0x11c   :  { %v614_v46 = vrot.slane %v613_v44, 1  ;;  %v627_v47 = vadd.f32 %v626_v45, %v625_v43 }
 0x11e   :  { %v615_v48 = vadd.f32 %v614_v46, %v613_v44  ;;  %v628_v49 = vrot.slane %v627_v47, 1 }
 0x120   :  { %616 = vst [vmem:[%s1052_s4] sm:$0xff] %v615_v48  ;;  %v629_v50 = vadd.f32 %v628_v49, %v627_v47 }
 0x122   :  { %630 = vst [vmem:[%s1053_s5] sm:$0xff] %v629_v50 }

// kernel: _lambda_.18
= control target key start
LH: loop header
LB: loop body
LE: loop exit
PB: predicated region body
PF: predicated region fallthrough
CT: control target
= control target key end

     0   :  { %vm131_vm0 = vcmask 125952   ;;  %s722_s0 = inlined_call_operand.vmem [shape: bf16[128,16], index: 0, kind: input, shape index: {}]   ;;  %s723_s4 = inlined_call_operand.vmem [shape: bf16[128,16], index: 4, kind: output, shape index: {0}]   ;;  %s724_s1 = inlined_call_operand.vmem [shape: bf16[128,16], index: 1, kind: input, shape index: {}]   ;;  %s725_s2 = inlined_call_operand.vmem [shape: f32[1,16], index: 2, kind: input, shape index: {}]   ;;  %s726_s3 = inlined_call_operand.vmem [shape: f32[1,16], index: 3, kind: input, shape index: {}]   ;;  %s727_s5 = inlined_call_operand.vmem [shape: bf16[128,16], index: 5, kind: output, shape index: {1}]  }
   0x1   :  { %v397_v0 = vld [vmem:[%s722_s0] sm:$0xff]   ;;  %v460_v1 = vld [vmem:[%s722_s0 + $0x8] sm:$0xff]   ;;  %v461_v2 = vld [vmem:[%s722_s0 + $0x10] sm:$0xff]  }
   0x2   :  { %v398_v3 = vunpack.c.l.bf16 %v397_v0  ;;  %v399_v4 = vunpack.c.h.bf16 %v397_v0  ;;  %v402_v5 = vunpack.c.l.bf16 %v460_v1  ;;  %v403_v6 = vunpack.c.h.bf16 %v460_v1  ;;  %v462_v7 = vld [vmem:[%s722_s0 + $0x18] sm:$0xff]   ;;  %v463_v20 = vld [vmem:[%s722_s0 + $0x20] sm:$0xff]   ;;  %v464_v21 = vld [vmem:[%s722_s0 + $0x28] sm:$0xff]  }
   0x3   :  { %v406_v8 = vunpack.c.l.bf16 %v461_v2  ;;  %v407_v9 = vunpack.c.h.bf16 %v461_v2  ;;  %v410_v10 = vunpack.c.l.bf16 %v462_v7  ;;  %v411_v11 = vunpack.c.h.bf16 %v462_v7  ;;  %v465_v26 = vld [vmem:[%s722_s0 + $0x30] sm:$0xff]   ;;  %v466_v27 = vld [vmem:[%s722_s0 + $0x38] sm:$0xff]   ;;  %v429_v48 = vld [vmem:[%s724_s1] sm:$0xff]  }
   0x4   :  { %v51_v12 = vmax.f32 %v398_v3, 0.0  ;;  %v52_v13 = vmax.f32 %v399_v4, 0.0  ;;  %v53_v14 = vmax.f32 %v402_v5, 0.0  ;;  %v54_v15 = vmax.f32 %v403_v6, 0.0  ;;  %v467_v49 = vld [vmem:[%s724_s1 + $0x8] sm:$0xff]   ;;  %v468_v54 = vld [vmem:[%s724_s1 + $0x10] sm:$0xff]  }
   0x5   :  { %v55_v16 = vmax.f32 %v406_v8, 0.0  ;;  %v56_v17 = vmax.f32 %v407_v9, 0.0  ;;  %v57_v18 = vmax.f32 %v410_v10, 0.0  ;;  %v58_v19 = vmax.f32 %v411_v11, 0.0  ;;  %v469_v55 = vld [vmem:[%s724_s1 + $0x18] sm:$0xff]  }
   0x6   :  { %v364_v22 = vpack.c.bf16 %v51_v12, %v51_v12  ;;  %v365_v23 = vpack.c.bf16 %v52_v13, %v52_v13  ;;  %v366_v24 = vpack.c.bf16 %v53_v14, %v53_v14  ;;  %v367_v25 = vpack.c.bf16 %v54_v15, %v54_v15  ;;  %v575_v60 = vld [vmem:[%s725_s2] ss:$0 sm:$0xff] }
   0x7   :  { %v368_v28 = vpack.c.bf16 %v55_v16, %v55_v16  ;;  %v369_v29 = vpack.c.bf16 %v56_v17, %v56_v17  ;;  %v370_v30 = vpack.c.bf16 %v57_v18, %v57_v18  ;;  %v371_v31 = vpack.c.bf16 %v58_v19, %v58_v19  ;;  %v612_v1 = vld [vmem:[%s726_s3] ss:$0 sm:$0xff] }
   0x8   :  { %132 = vst.msk [vmem:[%s723_s4] sm:$0xf] %vm131_vm0, %v364_v22  ;;  %133 = vst.msk [vmem:[%s723_s4 + $0x4] sm:$0xf] %vm131_vm0, %v365_v23  ;;  %v414_v32 = vunpack.c.l.bf16 %v463_v20  ;;  %v415_v33 = vunpack.c.h.bf16 %v463_v20  ;;  %v418_v34 = vunpack.c.l.bf16 %v464_v21  ;;  %v419_v35 = vunpack.c.h.bf16 %v464_v21 }
   0x9   :  { %134 = vst.msk [vmem:[%s723_s4 + $0x8] sm:$0xf] %vm131_vm0, %v366_v24  ;;  %135 = vst.msk [vmem:[%s723_s4 + $0xc] sm:$0xf] %vm131_vm0, %v367_v25  ;;  %v422_v36 = vunpack.c.l.bf16 %v465_v26  ;;  %v423_v37 = vunpack.c.h.bf16 %v465_v26  ;;  %v426_v38 = vunpack.c.l.bf16 %v466_v27  ;;  %v427_v39 = vunpack.c.h.bf16 %v466_v27 }
   0xa   :  { %136 = vst.msk [vmem:[%s723_s4 + $0x10] sm:$0xf] %vm131_vm0, %v368_v28  ;;  %137 = vst.msk [vmem:[%s723_s4 + $0x14] sm:$0xf] %vm131_vm0, %v369_v29  ;;  %v59_v40 = vmax.f32 %v414_v32, 0.0  ;;  %v60_v41 = vmax.f32 %v415_v33, 0.0  ;;  %v430_v61 = vunpack.c.l.bf16 %v429_v48  ;;  %v431_v62 = vunpack.c.h.bf16 %v429_v48 }
   0xb   :  { %138 = vst.msk [vmem:[%s723_s4 + $0x18] sm:$0xf] %vm131_vm0, %v370_v30  ;;  %139 = vst.msk [vmem:[%s723_s4 + $0x1c] sm:$0xf] %vm131_vm0, %v371_v31  ;;  %v61_v42 = vmax.f32 %v418_v34, 0.0  ;;  %v62_v43 = vmax.f32 %v419_v35, 0.0  ;;  %v434_v63 = vunpack.c.l.bf16 %v467_v49  ;;  %v435_v0 = vunpack.c.h.bf16 %v467_v49 }
   0xc   :  { %v63_v44 = vmax.f32 %v422_v36, 0.0  ;;  %v64_v45 = vmax.f32 %v423_v37, 0.0  ;;  %v65_v46 = vmax.f32 %v426_v38, 0.0  ;;  %v66_v47 = vmax.f32 %v427_v39, 0.0  ;;  %v470_v30 = vld [vmem:[%s724_s1 + $0x20] sm:$0xff]   ;;  %v471_v31 = vld [vmem:[%s724_s1 + $0x28] sm:$0xff]  }
   0xd   :  { %v372_v50 = vpack.c.bf16 %v59_v40, %v59_v40  ;;  %v373_v51 = vpack.c.bf16 %v60_v41, %v60_v41  ;;  %v374_v52 = vpack.c.bf16 %v61_v42, %v61_v42  ;;  %v375_v53 = vpack.c.bf16 %v62_v43, %v62_v43  ;;  %v472_v36 = vld [vmem:[%s724_s1 + $0x30] sm:$0xff]   ;;  %v473_v37 = vld [vmem:[%s724_s1 + $0x38] sm:$0xff]  }
   0xe   :  { %v376_v56 = vpack.c.bf16 %v63_v44, %v63_v44  ;;  %v377_v57 = vpack.c.bf16 %v64_v45, %v64_v45  ;;  %v378_v58 = vpack.c.bf16 %v65_v46, %v65_v46  ;;  %v379_v59 = vpack.c.bf16 %v66_v47, %v66_v47 }
   0xf   :  { %140 = vst.msk [vmem:[%s723_s4 + $0x20] sm:$0xf] %vm131_vm0, %v372_v50  ;;  %141 = vst.msk [vmem:[%s723_s4 + $0x24] sm:$0xf] %vm131_vm0, %v373_v51  ;;  %v438_v2 = vunpack.c.l.bf16 %v468_v54  ;;  %v439_v3 = vunpack.c.h.bf16 %v468_v54  ;;  %v442_v4 = vunpack.c.l.bf16 %v469_v55  ;;  %v443_v5 = vunpack.c.h.bf16 %v469_v55 }
  0x10   :  { %142 = vst.msk [vmem:[%s723_s4 + $0x28] sm:$0xf] %vm131_vm0, %v374_v52  ;;  %143 = vst.msk [vmem:[%s723_s4 + $0x2c] sm:$0xf] %vm131_vm0, %v375_v53  ;;  %v187_v6 = vmul.f32 %v430_v61, %v575_v60  ;;  %v188_v7 = vmul.f32 %v431_v62, %v575_v60  ;;  %v189_v8 = vmul.f32 %v434_v63, %v575_v60  ;;  %v446_v42 = vunpack.c.l.bf16 %v470_v30 }
  0x11   :  { %144 = vst.msk [vmem:[%s723_s4 + $0x30] sm:$0xf] %vm131_vm0, %v376_v56  ;;  %145 = vst.msk [vmem:[%s723_s4 + $0x34] sm:$0xf] %vm131_vm0, %v377_v57  ;;  %v190_v9 = vmul.f32 %v435_v0, %v575_v60  ;;  %v191_v10 = vmul.f32 %v438_v2, %v575_v60  ;;  %v192_v11 = vmul.f32 %v439_v3, %v575_v60  ;;  %v447_v43 = vunpack.c.h.bf16 %v470_v30 }
  0x12   :  { %146 = vst.msk [vmem:[%s723_s4 + $0x38] sm:$0xf] %vm131_vm0, %v378_v58  ;;  %147 = vst.msk [vmem:[%s723_s4 + $0x3c] sm:$0xf] %vm131_vm0, %v379_v59  ;;  %v193_v12 = vmul.f32 %v442_v4, %v575_v60  ;;  %v194_v13 = vmul.f32 %v443_v5, %v575_v60  ;;  %v210_v14 = vadd.f32 %v612_v1, %v187_v6  ;;  %v450_v44 = vunpack.c.l.bf16 %v471_v31 }
  0x13   :  { %v211_v15 = vadd.f32 %v612_v1, %v188_v7  ;;  %v212_v16 = vadd.f32 %v612_v1, %v189_v8  ;;  %v213_v17 = vadd.f32 %v612_v1, %v190_v9  ;;  %v214_v18 = vadd.f32 %v612_v1, %v191_v10 }
  0x14   :  { %v215_v19 = vadd.f32 %v612_v1, %v192_v11  ;;  %v216_v20 = vadd.f32 %v612_v1, %v193_v12  ;;  %v217_v21 = vadd.f32 %v612_v1, %v194_v13  ;;  %v226_v22 = vmax.f32 %v210_v14, 0.0 }
  0x15   :  { %v227_v23 = vmax.f32 %v211_v15, 0.0  ;;  %v228_v24 = vmax.f32 %v212_v16, 0.0  ;;  %v229_v25 = vmax.f32 %v213_v17, 0.0  ;;  %v230_v26 = vmax.f32 %v214_v18, 0.0 }
  0x16   :  { %v231_v27 = vmax.f32 %v215_v19, 0.0  ;;  %v232_v28 = vmax.f32 %v216_v20, 0.0  ;;  %v233_v29 = vmax.f32 %v217_v21, 0.0  ;;  %v380_v32 = vpack.c.bf16 %v226_v22, %v226_v22 }
  0x17   :  { %v381_v33 = vpack.c.bf16 %v227_v23, %v227_v23  ;;  %v382_v34 = vpack.c.bf16 %v228_v24, %v228_v24  ;;  %v383_v35 = vpack.c.bf16 %v229_v25, %v229_v25  ;;  %v384_v38 = vpack.c.bf16 %v230_v26, %v230_v26 }
  0x18   :  { %v385_v39 = vpack.c.bf16 %v231_v27, %v231_v27  ;;  %v386_v40 = vpack.c.bf16 %v232_v28, %v232_v28  ;;  %v387_v41 = vpack.c.bf16 %v233_v29, %v233_v29  ;;  %306 = vst.msk [vmem:[%s727_s5] sm:$0xf] %vm131_vm0, %v380_v32  ;;  %v451_v45 = vunpack.c.h.bf16 %v471_v31 }
  0x19   :  { %307 = vst.msk [vmem:[%s727_s5 + $0x4] sm:$0xf] %vm131_vm0, %v381_v33  ;;  %308 = vst.msk [vmem:[%s727_s5 + $0x8] sm:$0xf] %vm131_vm0, %v382_v34  ;;  %v454_v46 = vunpack.c.l.bf16 %v472_v36  ;;  %v455_v47 = vunpack.c.h.bf16 %v472_v36  ;;  %v458_v48 = vunpack.c.l.bf16 %v473_v37  ;;  %v459_v49 = vunpack.c.h.bf16 %v473_v37 }
  0x1a   :  { %309 = vst.msk [vmem:[%s727_s5 + $0xc] sm:$0xf] %vm131_vm0, %v383_v35  ;;  %310 = vst.msk [vmem:[%s727_s5 + $0x10] sm:$0xf] %vm131_vm0, %v384_v38  ;;  %v195_v50 = vmul.f32 %v446_v42, %v575_v60  ;;  %v196_v51 = vmul.f32 %v447_v43, %v575_v60  ;;  %v197_v52 = vmul.f32 %v450_v44, %v575_v60 }
  0x1b   :  { %311 = vst.msk [vmem:[%s727_s5 + $0x14] sm:$0xf] %vm131_vm0, %v385_v39  ;;  %312 = vst.msk [vmem:[%s727_s5 + $0x18] sm:$0xf] %vm131_vm0, %v386_v40  ;;  %v198_v53 = vmul.f32 %v451_v45, %v575_v60  ;;  %v199_v54 = vmul.f32 %v454_v46, %v575_v60  ;;  %v200_v55 = vmul.f32 %v455_v47, %v575_v60 }
  0x1c   :  { %313 = vst.msk [vmem:[%s727_s5 + $0x1c] sm:$0xf] %vm131_vm0, %v387_v41  ;;  %v201_v56 = vmul.f32 %v458_v48, %v575_v60  ;;  %v202_v57 = vmul.f32 %v459_v49, %v575_v60  ;;  %v218_v58 = vadd.f32 %v612_v1, %v195_v50  ;;  %v219_v59 = vadd.f32 %v612_v1, %v196_v51 }
  0x1d   :  { %v220_v61 = vadd.f32 %v612_v1, %v197_v52  ;;  %v221_v62 = vadd.f32 %v612_v1, %v198_v53  ;;  %v222_v63 = vadd.f32 %v612_v1, %v199_v54  ;;  %v223_v0 = vadd.f32 %v612_v1, %v200_v55 }
  0x1e   :  { %v224_v2 = vadd.f32 %v612_v1, %v201_v56  ;;  %v225_v3 = vadd.f32 %v612_v1, %v202_v57  ;;  %v234_v4 = vmax.f32 %v218_v58, 0.0  ;;  %v235_v5 = vmax.f32 %v219_v59, 0.0 }
  0x1f   :  { %v236_v6 = vmax.f32 %v220_v61, 0.0  ;;  %v237_v60 = vmax.f32 %v221_v62, 0.0  ;;  %v238_v7 = vmax.f32 %v222_v63, 0.0  ;;  %v239_v8 = vmax.f32 %v223_v0, 0.0 }
  0x20   :  { %v240_v9 = vmax.f32 %v224_v2, 0.0  ;;  %v241_v10 = vmax.f32 %v225_v3, 0.0  ;;  %v388_v11 = vpack.c.bf16 %v234_v4, %v234_v4  ;;  %v389_v12 = vpack.c.bf16 %v235_v5, %v235_v5 }
  0x21   :  { %v390_v13 = vpack.c.bf16 %v236_v6, %v236_v6  ;;  %v391_v14 = vpack.c.bf16 %v237_v60, %v237_v60  ;;  %v392_v15 = vpack.c.bf16 %v238_v7, %v238_v7  ;;  %v393_v16 = vpack.c.bf16 %v239_v8, %v239_v8 }
  0x22   :  { %v394_v17 = vpack.c.bf16 %v240_v9, %v240_v9  ;;  %v395_v18 = vpack.c.bf16 %v241_v10, %v241_v10  ;;  %314 = vst.msk [vmem:[%s727_s5 + $0x20] sm:$0xf] %vm131_vm0, %v388_v11  ;;  %315 = vst.msk [vmem:[%s727_s5 + $0x24] sm:$0xf] %vm131_vm0, %v389_v12 }
  0x23   :  { %316 = vst.msk [vmem:[%s727_s5 + $0x28] sm:$0xf] %vm131_vm0, %v390_v13  ;;  %317 = vst.msk [vmem:[%s727_s5 + $0x2c] sm:$0xf] %vm131_vm0, %v391_v14 }
  0x24   :  { %318 = vst.msk [vmem:[%s727_s5 + $0x30] sm:$0xf] %vm131_vm0, %v392_v15  ;;  %319 = vst.msk [vmem:[%s727_s5 + $0x34] sm:$0xf] %vm131_vm0, %v393_v16 }
  0x25   :  { %320 = vst.msk [vmem:[%s727_s5 + $0x38] sm:$0xf] %vm131_vm0, %v394_v17  ;;  %321 = vst.msk [vmem:[%s727_s5 + $0x3c] sm:$0xf] %vm131_vm0, %v395_v18 }

// kernel: _lambda_.19
= control target key start
LH: loop header
LB: loop body
LE: loop exit
PB: predicated region body
PF: predicated region fallthrough
CT: control target
= control target key end

     0   :  { %s1347_s1 = inlined_call_operand.vmem [shape: bf16[384,128], index: 1, kind: input, shape index: {}]   ;;  %s1348_s0 = inlined_call_operand.vmem [shape: bf16[128,384], index: 0, kind: input, shape index: {}]   ;;  %s1349_s2 = inlined_call_operand.vmem [shape: f32[1,128], index: 2, kind: input, shape index: {}]   ;;  %s1350_s3 = inlined_call_operand.vmem [shape: bf16[128,128], index: 3, kind: output, shape index: {0}]   ;;  %s1351_s4 = inlined_call_operand.vmem [shape: f32[8,128], index: 4, kind: output, shape index: {1}]   ;;  %s1352_s5 = inlined_call_operand.vmem [shape: f32[8,128], index: 5, kind: output, shape index: {2}]  }
   0x1   :  { %v1066_v0 = vld [vmem:[%s1347_s1 + $0x78] sm:$0xff]   ;;  %v1069_v3 = vld [vmem:[%s1347_s1 + $0x70] sm:$0xff]   ;;  %v1072_v6 = vld [vmem:[%s1347_s1 + $0x68] sm:$0xff]  }
   0x2   :  { %v1067_v1 = vld [vmem:[%s1347_s1 + $0x38] sm:$0xff]   ;;  %954 = vmatprep.subr.bf16.mxu0 %v1066_v0  ;;  %v1070_v4 = vld [vmem:[%s1347_s1 + $0x30] sm:$0xff]   ;;  %v1073_v7 = vld [vmem:[%s1347_s1 + $0x28] sm:$0xff]  }
   0x3   :  { %v1068_v2 = vld [vmem:[%s1347_s1 + $0xb8] sm:$0xff]   ;;  %955 = vmatpush3.bf16.msra.mxu0 %v1067_v1  ;;  %v1071_v5 = vld [vmem:[%s1347_s1 + $0xb0] sm:$0xff]   ;;  %v1074_v8 = vld [vmem:[%s1347_s1 + $0xa8] sm:$0xff]  }
   0x4   :  { %1034 = vmatprep.subr.bf16.mxu1 %v1068_v2  ;;  %956 = vmatprep.subr.bf16.mxu0 %v1069_v3  ;;  %v1075_v9 = vld [vmem:[%s1347_s1 + $0x60] sm:$0xff]   ;;  %v1078_v12 = vld [vmem:[%s1347_s1 + $0x58] sm:$0xff]   ;;  %v1081_v15 = vld [vmem:[%s1347_s1 + $0x50] sm:$0xff]  }
   0x5   :  { %1035 = vmatpush3.bf16.msra.mxu1 %v1068_v2  ;;  %v1076_v10 = vld [vmem:[%s1347_s1 + $0x20] sm:$0xff]   ;;  %v1080_v13 = vld [vmem:[%s1347_s1 + $0x98] sm:$0xff]   ;;  %v1083_v16 = vld [vmem:[%s1347_s1 + $0x90] sm:$0xff]  }
   0x6   :  { %1036 = vmatprep.subr.bf16.mxu1 %v1071_v5  ;;  %v1077_v11 = vld [vmem:[%s1347_s1 + $0xa0] sm:$0xff]   ;;  %v1079_v14 = vld [vmem:[%s1347_s1 + $0x18] sm:$0xff]   ;;  %v1082_v17 = vld [vmem:[%s1347_s1 + $0x10] sm:$0xff]  }
   0x7   :  { %957 = vmatpush3.bf16.msra.mxu0 %v1070_v4  ;;  %v1084_v18 = vld [vmem:[%s1347_s1 + $0x48] sm:$0xff]   ;;  %v1087_v21 = vld [vmem:[%s1347_s1 + $0x40] sm:$0xff]   ;;  %v1102_v32 = vld [vmem:[%s1348_s0 + $0x50] ss:$12 sps:$4 sm:$0xff]  }
   0x8   :  { %958 = vmatprep.subr.bf16.mxu0 %v1072_v6  ;;  %v1085_v19 = vld [vmem:[%s1347_s1 + $0x8] sm:$0xff]   ;;  %v1089_v22 = vld [vmem:[%s1347_s1 + $0x80] sm:$0xff]   ;;  %v1100_v34 = vld [vmem:[%s1348_s0 + $0x30] ss:$12 sps:$4 sm:$0xff]  }
   0x9   :  { %1037 = vmatpush3.bf16.msra.mxu1 %v1071_v5  ;;  %v1086_v20 = vld [vmem:[%s1347_s1 + $0x88] sm:$0xff]   ;;  %v1092_v23 = vld [vmem:[%s1348_s0 + $0x4] ss:$12 sps:$4 sm:$0xff]   ;;  %v1098_v31 = vld [vmem:[%s1348_s0 + $0x34] ss:$12 sps:$4 sm:$0xff]  }
   0xa   :  { %1038 = vmatprep.subr.bf16.mxu1 %v1074_v8  ;;  %v1093_v24 = vld [vmem:[%s1348_s0 + $0x8] ss:$12 sps:$4 sm:$0xff]   ;;  %v1088_v25 = vld [vmem:[%s1347_s1] sm:$0xff]   ;;  %438 = vmatprep.mubr.bf16.mxu0 %v1092_v23  ;;  %v1103_v35 = vld [vmem:[%s1348_s0 + $0x4c] ss:$12 sps:$4 sm:$0xff]  }
   0xb   :  { %959 = vmatpush3.bf16.msra.mxu0 %v1073_v7  ;;  %1050 = vmatprep.mubr.bf16.mxu1 %v1093_v24  ;;  %v1090_v26 = vld [vmem:[%s1348_s0] ss:$12 sps:$4 sm:$0xff]   ;;  %v1095_v27 = vld [vmem:[%s1348_s0 + $0x1c] ss:$12 sps:$4 sm:$0xff]   ;;  %v1101_v29 = vld [vmem:[%s1348_s0 + $0x38] ss:$12 sps:$4 sm:$0xff]  }
   0xc   :  { %960 = vmatprep.subr.bf16.mxu0 %v1075_v9  ;;  %v1094_v28 = vld [vmem:[%s1348_s0 + $0x20] ss:$12 sps:$4 sm:$0xff]   ;;  %v1097_v30 = vld [vmem:[%s1348_s0 + $0x18] ss:$12 sps:$4 sm:$0xff]   ;;  %v1109_v33 = vld [vmem:[%s1348_s0 + $0x68] ss:$12 sps:$4 sm:$0xff]  }
   0xd   :  { %1039 = vmatpush3.bf16.msra.mxu1 %v1074_v8  ;;  %v1110_v36 = vld [vmem:[%s1348_s0 + $0x80] ss:$12 sps:$4 sm:$0xff]   ;;  %v1116_v37 = vld [vmem:[%s1348_s0 + $0x98] ss:$12 sps:$4 sm:$0xff]   ;;  %v1105_v38 = vld [vmem:[%s1348_s0 + $0x48] ss:$12 sps:$4 sm:$0xff]  }
   0xe   :  { %1040 = vmatprep.subr.bf16.mxu1 %v1077_v11  ;;  %v1106_v39 = vld [vmem:[%s1348_s0 + $0x64] ss:$12 sps:$4 sm:$0xff]   ;;  %v1108_v41 = vld [vmem:[%s1348_s0 + $0x60] ss:$12 sps:$4 sm:$0xff]   ;;  %v1111_v42 = vld [vmem:[%s1348_s0 + $0x7c] ss:$12 sps:$4 sm:$0xff]  }
   0xf   :  { %961 = vmatpush3.bf16.msra.mxu0 %v1076_v10  ;;  %v1118_v40 = vld [vmem:[%s1348_s0 + $0xb0] ss:$12 sps:$4 sm:$0xff]   ;;  %v1113_v43 = vld [vmem:[%s1348_s0 + $0x78] ss:$12 sps:$4 sm:$0xff]   ;;  %v1114_v44 = vld [vmem:[%s1348_s0 + $0x94] ss:$12 sps:$4 sm:$0xff]  }
  0x10   :  { %962 = vmatprep.subr.bf16.mxu0 %v1078_v12  ;;  %v1117_v45 = vld [vmem:[%s1348_s0 + $0x90] ss:$12 sps:$4 sm:$0xff]   ;;  %v1119_v46 = vld [vmem:[%s1348_s0 + $0xac] ss:$12 sps:$4 sm:$0xff]   ;;  %v1121_v47 = vld [vmem:[%s1348_s0 + $0xa8] ss:$12 sps:$4 sm:$0xff]  }
  0x11   :  { %1041 = vmatpush3.bf16.msra.mxu1 %v1077_v11  ;;  %v1299_v58 = vld [vmem:[%s1349_s2] ss:$0 sm:$0xff] }
  0x12   :  { %1042 = vmatprep.subr.bf16.mxu1 %v1080_v13 }
  0x13   :  { %963 = vmatpush3.bf16.msra.mxu0 %v1079_v14 }
  0x14   :  { %964 = vmatprep.subr.bf16.mxu0 %v1081_v15 }
  0x15   :  { %1043 = vmatpush3.bf16.msra.mxu1 %v1080_v13 }
  0x16   :  { %1044 = vmatprep.subr.bf16.mxu1 %v1083_v16 }
  0x17   :  { %965 = vmatpush3.bf16.msra.mxu0 %v1082_v17 }
  0x18   :  { %966 = vmatprep.subr.bf16.mxu0 %v1084_v18 }
  0x19   :  { %1045 = vmatpush3.bf16.msra.mxu1 %v1083_v16 }
  0x1a   :  { %1046 = vmatprep.subr.bf16.mxu1 %v1086_v20 }
  0x1b   :  { %967 = vmatpush3.bf16.msra.mxu0 %v1085_v19 }
  0x1c   :  { %968 = vmatprep.subr.bf16.mxu0 %v1087_v21 }
  0x1d   :  { %1047 = vmatpush3.bf16.msra.mxu1 %v1086_v20 }
  0x1e   :  { %1048 = vmatprep.subr.bf16.mxu1 %v1089_v22 }
  0x1f   :  { %969 = vmatpush3.bf16.msra.mxu0 %v1088_v25 }
  0x21   :  { %1049 = vmatpush3.bf16.msra.mxu1 %v1089_v22 }
  0x22   :  { %439 = vmatmul.mubr.bf16.vlgmr.msra.gmra.mxu0 %v1090_v26 }
  0x23   :  { %446 = vmatprep.mubr.bf16.mxu0 %v1095_v27 }
  0x24   :  { %1051 = vmatmul.mubr.bf16.vlgmr.msra.gmra.mxu1 %v1094_v28 }
  0x25   :  { %1054 = vmatprep.mubr.bf16.mxu1 %v1101_v29 }
  0x2a   :  { %447 = vmatmul.mubr.bf16.gmra.mxu0 %v1097_v30 }
  0x2b   :  { %454 = vmatprep.mubr.bf16.mxu0 %v1098_v31 }
  0x2c   :  { %1055 = vmatmul.mubr.bf16.gmra.mxu1 %v1102_v32 }
  0x2d   :  { %1058 = vmatprep.mubr.bf16.mxu1 %v1109_v33 }
  0x32   :  { %455 = vmatmul.mubr.bf16.gmra.mxu0 %v1100_v34 }
  0x33   :  { %462 = vmatprep.mubr.bf16.mxu0 %v1103_v35 }
  0x34   :  { %1059 = vmatmul.mubr.bf16.gmra.mxu1 %v1110_v36 }
  0x35   :  { %1062 = vmatprep.mubr.bf16.mxu1 %v1116_v37 }
  0x3a   :  { %463 = vmatmul.mubr.bf16.gmra.mxu0 %v1105_v38 }
  0x3b   :  { %470 = vmatprep.mubr.bf16.mxu0 %v1106_v39 }
  0x3c   :  { %1063 = vmatmul.mubr.bf16.gmra.mxu1 %v1118_v40 }
  0x42   :  { %471 = vmatmul.mubr.bf16.gmra.mxu0 %v1108_v41 }
  0x43   :  { %478 = vmatprep.mubr.bf16.mxu0 %v1111_v42 }
  0x4a   :  { %479 = vmatmul.mubr.bf16.gmra.mxu0 %v1113_v43 }
  0x4b   :  { %486 = vmatprep.mubr.bf16.mxu0 %v1114_v44 }
  0x52   :  { %487 = vmatmul.mubr.bf16.gmra.mxu0 %v1117_v45 }
  0x53   :  { %494 = vmatprep.mubr.bf16.mxu0 %v1119_v46 }
  0x5a   :  { %495 = vmatmul.mubr.bf16.gmra.mxu0 %v1121_v47 }
  0xe2   :  { %v970_v48 = vpop.f32.mrf.mxu0 }
  0xe4   :  { %v971_v49 = vpop.f32.mrf.mxu0  ;;  %v1052_v50 = vpop.f32.mrf.mxu1 }
  0xe5   :  { %v972_v51 = vadd.f32 %v971_v49, %v970_v48 }
  0xe6   :  { %v973_v52 = vpop.f32.mrf.mxu0  ;;  %v537_v53 = vpop.f32.mrf.mxu1 }
  0xe7   :  { %v538_v56 = vadd.f32 %v972_v51, %v537_v53 }
  0xe8   :  { %v974_v54 = vpop.f32.mrf.mxu0  ;;  %v1053_v55 = vpop.f32.mrf.mxu1 }
  0xe9   :  { %v975_v57 = vadd.f32 %v974_v54, %v973_v52  ;;  %v658_v0 = vadd.f32 %v1299_v58, %v538_v56 }
  0xea   :  { %v976_v59 = vpop.f32.mrf.mxu0  ;;  %v540_v60 = vpop.f32.mrf.mxu1 }
  0xeb   :  { %v541_v61 = vadd.f32 %v975_v57, %v540_v60  ;;  %v776_v49 = vmul.f32 %v658_v0, %v658_v0 }
  0xec   :  { %v977_v62 = vpop.f32.mrf.mxu0  ;;  %v1056_v63 = vpop.f32.mrf.mxu1 }
  0xed   :  { %v659_v1 = vadd.f32 %v1299_v58, %v541_v61  ;;  %v978_v2 = vadd.f32 %v977_v62, %v976_v59 }
  0xee   :  { %v979_v3 = vpop.f32.mrf.mxu0  ;;  %v553_v6 = vpop.f32.mrf.mxu1 }
  0xef   :  { %v910_v4 = vpack.c.bf16 %v659_v1, %v658_v0  ;;  %v546_v7 = vadd.f32 %v1052_v50, %v978_v2  ;;  %v777_v44 = vmul.f32 %v659_v1, %v659_v1  ;;  %v754_v52 = vadd.f32 %v659_v1, %v658_v0 }
  0xf0   :  { %v980_v5 = vpop.f32.mrf.mxu0  ;;  %v1057_v12 = vpop.f32.mrf.mxu1 }
  0xf1   :  { %911 = vst [vmem:[%s1350_s3] sm:$0xff] %v910_v4   ;;  %v981_v8 = vadd.f32 %v980_v5, %v979_v3  ;;  %v660_v13 = vadd.f32 %v1299_v58, %v546_v7  ;;  %v792_v54 = vadd.f32 %v777_v44, %v776_v49 }
  0xf2   :  { %v982_v9 = vpop.f32.mrf.mxu0  ;;  %v556_v19 = vpop.f32.mrf.mxu1 }
  0xf3   :  { %v549_v10 = vadd.f32 %v1053_v55, %v981_v8  ;;  %v778_v50 = vmul.f32 %v660_v13, %v660_v13  ;;  %v755_v57 = vadd.f32 %v754_v52, %v660_v13 }
  0xf4   :  { %v983_v11 = vpop.f32.mrf.mxu0  ;;  %v1060_v25 = vpop.f32.mrf.mxu1 }
  0xf5   :  { %v661_v14 = vadd.f32 %v1299_v58, %v549_v10  ;;  %v984_v15 = vadd.f32 %v983_v11, %v982_v9  ;;  %v793_v62 = vadd.f32 %v792_v54, %v778_v50 }
  0xf6   :  { %v985_v16 = vpop.f32.mrf.mxu0  ;;  %v569_v32 = vpop.f32.mrf.mxu1 }
  0xf7   :  { %v915_v17 = vpack.c.bf16 %v661_v14, %v660_v13  ;;  %v554_v20 = vadd.f32 %v984_v15, %v553_v6  ;;  %v779_v55 = vmul.f32 %v661_v14, %v661_v14  ;;  %v756_v4 = vadd.f32 %v755_v57, %v661_v14 }
  0xf8   :  { %v986_v18 = vpop.f32.mrf.mxu0  ;;  %v1061_v38 = vpop.f32.mrf.mxu1 }
  0xf9   :  { %947 = vst [vmem:[%s1350_s3 + $0x8] sm:$0xff] %v915_v17   ;;  %v987_v21 = vadd.f32 %v986_v18, %v985_v16  ;;  %v662_v26 = vadd.f32 %v1299_v58, %v554_v20  ;;  %v794_v6 = vadd.f32 %v793_v62, %v779_v55 }
  0xfa   :  { %v988_v22 = vpop.f32.mrf.mxu0  ;;  %v572_v46 = vpop.f32.mrf.mxu1 }
  0xfb   :  { %v557_v23 = vadd.f32 %v987_v21, %v556_v19  ;;  %v757_v0 = vadd.f32 %v756_v4, %v662_v26 }
  0xfc   :  { %v989_v24 = vpop.f32.mrf.mxu0  ;;  %v1064_v3 = vpop.f32.mrf.mxu1 }
  0xfd   :  { %v663_v27 = vadd.f32 %v1299_v58, %v557_v23  ;;  %v990_v28 = vadd.f32 %v989_v24, %v988_v22 }
  0xfe   :  { %v991_v29 = vpop.f32.mrf.mxu0  ;;  %v585_v13 = vpop.f32.mrf.mxu1 }
  0xff   :  { %v920_v30 = vpack.c.bf16 %v663_v27, %v662_v26  ;;  %v562_v33 = vadd.f32 %v1056_v63, %v990_v28  ;;  %v780_v63 = vmul.f32 %v662_v26, %v662_v26  ;;  %v781_v7 = vmul.f32 %v663_v27, %v663_v27 }
 0x100   :  { %v992_v31 = vpop.f32.mrf.mxu0  ;;  %v758_v15 = vadd.f32 %v757_v0, %v663_v27 }
 0x101   :  { %948 = vst [vmem:[%s1350_s3 + $0x10] sm:$0xff] %v920_v30   ;;  %v993_v34 = vadd.f32 %v992_v31, %v991_v29  ;;  %v664_v39 = vadd.f32 %v1299_v58, %v562_v33  ;;  %v795_v10 = vadd.f32 %v794_v6, %v780_v63 }
 0x102   :  { %v994_v35 = vpop.f32.mrf.mxu0 }
 0x103   :  { %v565_v36 = vadd.f32 %v1057_v12, %v993_v34  ;;  %v782_v11 = vmul.f32 %v664_v39, %v664_v39  ;;  %v796_v17 = vadd.f32 %v795_v10, %v781_v7  ;;  %v759_v19 = vadd.f32 %v758_v15, %v664_v39 }
 0x104   :  { %v995_v37 = vpop.f32.mrf.mxu0 }
 0x105   :  { %v665_v40 = vadd.f32 %v1299_v58, %v565_v36  ;;  %v996_v41 = vadd.f32 %v995_v37, %v994_v35  ;;  %v797_v23 = vadd.f32 %v796_v17, %v782_v11 }
 0x106   :  { %v997_v42 = vpop.f32.mrf.mxu0 }
 0x107   :  { %v925_v43 = vpack.c.bf16 %v665_v40, %v664_v39  ;;  %v570_v47 = vadd.f32 %v996_v41, %v569_v32  ;;  %v783_v18 = vmul.f32 %v665_v40, %v665_v40  ;;  %v760_v28 = vadd.f32 %v759_v19, %v665_v40 }
 0x108   :  { %v998_v45 = vpop.f32.mrf.mxu0 }
 0x109   :  { %949 = vst [vmem:[%s1350_s3 + $0x18] sm:$0xff] %v925_v43   ;;  %v999_v48 = vadd.f32 %v998_v45, %v997_v42  ;;  %v666_v59 = vadd.f32 %v1299_v58, %v570_v47  ;;  %v798_v31 = vadd.f32 %v797_v23, %v783_v18 }
 0x10a   :  { %v1000_v51 = vpop.f32.mrf.mxu0 }
 0x10b   :  { %v573_v53 = vadd.f32 %v999_v48, %v572_v46  ;;  %v784_v24 = vmul.f32 %v666_v59, %v666_v59  ;;  %v761_v33 = vadd.f32 %v760_v28, %v666_v59 }
 0x10c   :  { %v1001_v56 = vpop.f32.mrf.mxu0 }
 0x10d   :  { %v667_v60 = vadd.f32 %v1299_v58, %v573_v53  ;;  %v1002_v61 = vadd.f32 %v1001_v56, %v1000_v51  ;;  %v799_v35 = vadd.f32 %v798_v31, %v784_v24 }
 0x10e   :  { %v1003_v2 = vpop.f32.mrf.mxu0 }
 0x10f   :  { %v930_v5 = vpack.c.bf16 %v667_v60, %v666_v59  ;;  %v578_v1 = vadd.f32 %v1060_v25, %v1002_v61  ;;  %v1065_v25 = vpop.f32.mrf.mxu1  ;;  %v785_v32 = vmul.f32 %v667_v60, %v667_v60  ;;  %v762_v39 = vadd.f32 %v761_v33, %v667_v60 }
 0x110   :  { %v1004_v8 = vpop.f32.mrf.mxu0 }
 0x111   :  { %950 = vst [vmem:[%s1350_s3 + $0x20] sm:$0xff] %v930_v5   ;;  %v1005_v9 = vadd.f32 %v1004_v8, %v1003_v2  ;;  %v668_v20 = vadd.f32 %v1299_v58, %v578_v1  ;;  %v588_v37 = vpop.f32.mrf.mxu1  ;;  %v800_v40 = vadd.f32 %v799_v35, %v785_v32 }
 0x112   :  { %v1006_v12 = vpop.f32.mrf.mxu0 }
 0x113   :  { %v581_v16 = vadd.f32 %v1061_v38, %v1005_v9  ;;  %v786_v36 = vmul.f32 %v668_v20, %v668_v20  ;;  %v763_v45 = vadd.f32 %v762_v39, %v668_v20 }
 0x114   :  { %v1007_v14 = vpop.f32.mrf.mxu0 }
 0x115   :  { %v669_v21 = vadd.f32 %v1299_v58, %v581_v16  ;;  %v1008_v22 = vadd.f32 %v1007_v14, %v1006_v12  ;;  %v801_v48 = vadd.f32 %v800_v40, %v786_v36 }
 0x116   :  { %v1009_v26 = vpop.f32.mrf.mxu0 }
 0x117   :  { %v935_v29 = vpack.c.bf16 %v669_v21, %v668_v20  ;;  %v586_v30 = vadd.f32 %v1008_v22, %v585_v13  ;;  %v787_v43 = vmul.f32 %v669_v21, %v669_v21  ;;  %v764_v50 = vadd.f32 %v763_v45, %v669_v21 }
 0x118   :  { %v1010_v27 = vpop.f32.mrf.mxu0 }
 0x119   :  { %951 = vst [vmem:[%s1350_s3 + $0x28] sm:$0xff] %v935_v29   ;;  %v1011_v34 = vadd.f32 %v1010_v27, %v1009_v26  ;;  %v670_v41 = vadd.f32 %v1299_v58, %v586_v30  ;;  %v802_v54 = vadd.f32 %v801_v48, %v787_v43 }
 0x11a   :  { %v1012_v38 = vpop.f32.mrf.mxu0 }
 0x11b   :  { %v589_v42 = vadd.f32 %v1011_v34, %v588_v37  ;;  %v788_v51 = vmul.f32 %v670_v41, %v670_v41  ;;  %v765_v56 = vadd.f32 %v764_v50, %v670_v41 }
 0x11c   :  { %v1013_v44 = vpop.f32.mrf.mxu0 }
 0x11d   :  { %v671_v46 = vadd.f32 %v1299_v58, %v589_v42  ;;  %v1014_v47 = vadd.f32 %v1013_v44, %v1012_v38  ;;  %v803_v61 = vadd.f32 %v802_v54, %v788_v51 }
 0x11e   :  { %v1015_v49 = vpop.f32.mrf.mxu0 }
 0x11f   :  { %v940_v52 = vpack.c.bf16 %v671_v46, %v670_v41  ;;  %v594_v53 = vadd.f32 %v1064_v3, %v1014_v47  ;;  %v789_v57 = vmul.f32 %v671_v46, %v671_v46  ;;  %v766_v62 = vadd.f32 %v765_v56, %v671_v46 }
 0x120   :  { %v1016_v55 = vpop.f32.mrf.mxu0 }
 0x121   :  { %952 = vst [vmem:[%s1350_s3 + $0x30] sm:$0xff] %v940_v52   ;;  %v672_v59 = vadd.f32 %v1299_v58, %v594_v53  ;;  %v1017_v60 = vadd.f32 %v1016_v55, %v1015_v49  ;;  %v804_v4 = vadd.f32 %v803_v61, %v789_v57 }
 0x123   :  { %v790_v63 = vmul.f32 %v672_v59, %v672_v59  ;;  %v597_v2 = vadd.f32 %v1065_v25, %v1017_v60  ;;  %v767_v5 = vadd.f32 %v766_v62, %v672_v59 }
 0x125   :  { %v673_v6 = vadd.f32 %v1299_v58, %v597_v2  ;;  %v805_v3 = vadd.f32 %v804_v4, %v790_v63 }
 0x127   :  { %v945_v7 = vpack.c.bf16 %v673_v6, %v672_v59  ;;  %v768_v8 = vadd.f32 %v767_v5, %v673_v6  ;;  %v791_v0 = vmul.f32 %v673_v6, %v673_v6 }
 0x129   :  { %953 = vst [vmem:[%s1350_s3 + $0x38] sm:$0xff] %v945_v7   ;;  %v769_v1 = vrot.slane %v768_v8, 4  ;;  %v806_v9 = vadd.f32 %v805_v3, %v791_v0 }
 0x12b   :  { %v770_v10 = vadd.f32 %v769_v1, %v768_v8  ;;  %v807_v11 = vrot.slane %v806_v9, 4 }
 0x12d   :  { %v771_v12 = vrot.slane %v770_v10, 2  ;;  %v808_v13 = vadd.f32 %v807_v11, %v806_v9 }
 0x12f   :  { %v772_v15 = vadd.f32 %v771_v12, %v770_v10  ;;  %v809_v16 = vrot.slane %v808_v13, 2 }
 0x131   :  { %v773_v17 = vrot.slane %v772_v15, 1  ;;  %v810_v18 = vadd.f32 %v809_v16, %v808_v13 }
 0x133   :  { %v774_v14 = vadd.f32 %v773_v17, %v772_v15  ;;  %v811_v58 = vrot.slane %v810_v18, 1 }
 0x135   :  { %775 = vst [vmem:[%s1351_s4] sm:$0xff] %v774_v14  ;;  %v812_v19 = vadd.f32 %v811_v58, %v810_v18 }
 0x137   :  { %813 = vst [vmem:[%s1352_s5] sm:$0xff] %v812_v19 }

// kernel: _lambda_.20
= control target key start
LH: loop header
LB: loop body
LE: loop exit
PB: predicated region body
PF: predicated region fallthrough
CT: control target
= control target key end

     0   :  { %vm467_vm0 = vcmask 60416   ;;  %s2642_s0 = inlined_call_operand.vmem [shape: bf16[512,8], index: 0, kind: input, shape index: {}]   ;;  %s2643_s4 = inlined_call_operand.vmem [shape: bf16[512,8], index: 4, kind: output, shape index: {0}]   ;;  %s2644_s1 = inlined_call_operand.vmem [shape: bf16[512,8], index: 1, kind: input, shape index: {}]   ;;  %s2645_s2 = inlined_call_operand.vmem [shape: f32[1,8], index: 2, kind: input, shape index: {}]   ;;  %s2646_s3 = inlined_call_operand.vmem [shape: f32[1,8], index: 3, kind: input, shape index: {}]   ;;  %s2647_s5 = inlined_call_operand.vmem [shape: bf16[512,8], index: 5, kind: output, shape index: {1}]  }
   0x1   :  { %v1453_v0 = vld [vmem:[%s2642_s0] sm:$0xff]   ;;  %v1708_v1 = vld [vmem:[%s2642_s0 + $0x8] sm:$0xff]   ;;  %v1709_v2 = vld [vmem:[%s2642_s0 + $0x10] sm:$0xff]  }
   0x2   :  { %v1454_v3 = vunpack.c.l.bf16 %v1453_v0  ;;  %v1455_v4 = vunpack.c.h.bf16 %v1453_v0  ;;  %v1458_v5 = vunpack.c.l.bf16 %v1708_v1  ;;  %v1459_v6 = vunpack.c.h.bf16 %v1708_v1  ;;  %v1710_v7 = vld [vmem:[%s2642_s0 + $0x18] sm:$0xff]   ;;  %v1711_v20 = vld [vmem:[%s2642_s0 + $0x20] sm:$0xff]   ;;  %v1712_v21 = vld [vmem:[%s2642_s0 + $0x28] sm:$0xff]  }
   0x3   :  { %v1462_v8 = vunpack.c.l.bf16 %v1709_v2  ;;  %v1463_v9 = vunpack.c.h.bf16 %v1709_v2  ;;  %v1466_v10 = vunpack.c.l.bf16 %v1710_v7  ;;  %v1467_v11 = vunpack.c.h.bf16 %v1710_v7  ;;  %v1713_v26 = vld [vmem:[%s2642_s0 + $0x30] sm:$0xff]   ;;  %v1714_v27 = vld [vmem:[%s2642_s0 + $0x38] sm:$0xff]   ;;  %v1715_v48 = vld [vmem:[%s2642_s0 + $0x40] sm:$0xff]  }
   0x4   :  { %v147_v12 = vmax.f32 %v1454_v3, 0.0  ;;  %v148_v13 = vmax.f32 %v1455_v4, 0.0  ;;  %v149_v14 = vmax.f32 %v1458_v5, 0.0  ;;  %v150_v15 = vmax.f32 %v1459_v6, 0.0  ;;  %v1716_v49 = vld [vmem:[%s2642_s0 + $0x48] sm:$0xff]   ;;  %v1717_v54 = vld [vmem:[%s2642_s0 + $0x50] sm:$0xff]  }
   0x5   :  { %v151_v16 = vmax.f32 %v1462_v8, 0.0  ;;  %v152_v17 = vmax.f32 %v1463_v9, 0.0  ;;  %v153_v18 = vmax.f32 %v1466_v10, 0.0  ;;  %v154_v19 = vmax.f32 %v1467_v11, 0.0  ;;  %v1718_v55 = vld [vmem:[%s2642_s0 + $0x58] sm:$0xff]  }
   0x6   :  { %v1324_v22 = vpack.c.bf16 %v147_v12, %v147_v12  ;;  %v1325_v23 = vpack.c.bf16 %v148_v13, %v148_v13  ;;  %v1326_v24 = vpack.c.bf16 %v149_v14, %v149_v14  ;;  %v1327_v25 = vpack.c.bf16 %v150_v15, %v150_v15  ;;  %v1719_v12 = vld [vmem:[%s2642_s0 + $0x60] sm:$0xff]   ;;  %v1720_v13 = vld [vmem:[%s2642_s0 + $0x68] sm:$0xff]  }
   0x7   :  { %v1328_v28 = vpack.c.bf16 %v151_v16, %v151_v16  ;;  %v1329_v29 = vpack.c.bf16 %v152_v17, %v152_v17  ;;  %v1330_v30 = vpack.c.bf16 %v153_v18, %v153_v18  ;;  %v1331_v31 = vpack.c.bf16 %v154_v19, %v154_v19  ;;  %v1721_v18 = vld [vmem:[%s2642_s0 + $0x70] sm:$0xff]   ;;  %v1722_v19 = vld [vmem:[%s2642_s0 + $0x78] sm:$0xff]  }
   0x8   :  { %468 = vst.msk [vmem:[%s2643_s4] sm:$0xf] %vm467_vm0, %v1324_v22  ;;  %469 = vst.msk [vmem:[%s2643_s4 + $0x4] sm:$0xf] %vm467_vm0, %v1325_v23  ;;  %v1470_v32 = vunpack.c.l.bf16 %v1711_v20  ;;  %v1471_v33 = vunpack.c.h.bf16 %v1711_v20  ;;  %v1474_v34 = vunpack.c.l.bf16 %v1712_v21  ;;  %v1475_v35 = vunpack.c.h.bf16 %v1712_v21 }
   0x9   :  { %470 = vst.msk [vmem:[%s2643_s4 + $0x8] sm:$0xf] %vm467_vm0, %v1326_v24  ;;  %471 = vst.msk [vmem:[%s2643_s4 + $0xc] sm:$0xf] %vm467_vm0, %v1327_v25  ;;  %v1478_v36 = vunpack.c.l.bf16 %v1713_v26  ;;  %v1479_v37 = vunpack.c.h.bf16 %v1713_v26  ;;  %v1482_v38 = vunpack.c.l.bf16 %v1714_v27  ;;  %v1483_v39 = vunpack.c.h.bf16 %v1714_v27 }
   0xa   :  { %472 = vst.msk [vmem:[%s2643_s4 + $0x10] sm:$0xf] %vm467_vm0, %v1328_v28  ;;  %473 = vst.msk [vmem:[%s2643_s4 + $0x14] sm:$0xf] %vm467_vm0, %v1329_v29  ;;  %v155_v40 = vmax.f32 %v1470_v32, 0.0  ;;  %v156_v41 = vmax.f32 %v1471_v33, 0.0  ;;  %v1486_v60 = vunpack.c.l.bf16 %v1715_v48  ;;  %v1487_v61 = vunpack.c.h.bf16 %v1715_v48 }
   0xb   :  { %474 = vst.msk [vmem:[%s2643_s4 + $0x18] sm:$0xf] %vm467_vm0, %v1330_v30  ;;  %475 = vst.msk [vmem:[%s2643_s4 + $0x1c] sm:$0xf] %vm467_vm0, %v1331_v31  ;;  %v157_v42 = vmax.f32 %v1474_v34, 0.0  ;;  %v158_v43 = vmax.f32 %v1475_v35, 0.0  ;;  %v1490_v62 = vunpack.c.l.bf16 %v1716_v49  ;;  %v1491_v63 = vunpack.c.h.bf16 %v1716_v49 }
   0xc   :  { %v159_v44 = vmax.f32 %v1478_v36, 0.0  ;;  %v160_v45 = vmax.f32 %v1479_v37, 0.0  ;;  %v161_v46 = vmax.f32 %v1482_v38, 0.0  ;;  %v162_v47 = vmax.f32 %v1483_v39, 0.0 }
   0xd   :  { %v1332_v50 = vpack.c.bf16 %v155_v40, %v155_v40  ;;  %v1333_v51 = vpack.c.bf16 %v156_v41, %v156_v41  ;;  %v1334_v52 = vpack.c.bf16 %v157_v42, %v157_v42  ;;  %v1335_v53 = vpack.c.bf16 %v158_v43, %v158_v43  ;;  %v1723_v40 = vld [vmem:[%s2642_s0 + $0x80] sm:$0xff]   ;;  %v1724_v41 = vld [vmem:[%s2642_s0 + $0x88] sm:$0xff]  }
   0xe   :  { %v1336_v56 = vpack.c.bf16 %v159_v44, %v159_v44  ;;  %v1337_v57 = vpack.c.bf16 %v160_v45, %v160_v45  ;;  %v1338_v58 = vpack.c.bf16 %v161_v46, %v161_v46  ;;  %v1339_v59 = vpack.c.bf16 %v162_v47, %v162_v47  ;;  %v1725_v46 = vld [vmem:[%s2642_s0 + $0x90] sm:$0xff]   ;;  %v1726_v47 = vld [vmem:[%s2642_s0 + $0x98] sm:$0xff]  }
   0xf   :  { %476 = vst.msk [vmem:[%s2643_s4 + $0x20] sm:$0xf] %vm467_vm0, %v1332_v50  ;;  %477 = vst.msk [vmem:[%s2643_s4 + $0x24] sm:$0xf] %vm467_vm0, %v1333_v51  ;;  %v1494_v0 = vunpack.c.l.bf16 %v1717_v54  ;;  %v1495_v1 = vunpack.c.h.bf16 %v1717_v54  ;;  %v1498_v2 = vunpack.c.l.bf16 %v1718_v55  ;;  %v1499_v3 = vunpack.c.h.bf16 %v1718_v55 }
  0x10   :  { %478 = vst.msk [vmem:[%s2643_s4 + $0x28] sm:$0xf] %vm467_vm0, %v1334_v52  ;;  %479 = vst.msk [vmem:[%s2643_s4 + $0x2c] sm:$0xf] %vm467_vm0, %v1335_v53  ;;  %v163_v4 = vmax.f32 %v1486_v60, 0.0  ;;  %v164_v5 = vmax.f32 %v1487_v61, 0.0  ;;  %v1502_v24 = vunpack.c.l.bf16 %v1719_v12  ;;  %v1503_v25 = vunpack.c.h.bf16 %v1719_v12 }
  0x11   :  { %480 = vst.msk [vmem:[%s2643_s4 + $0x30] sm:$0xf] %vm467_vm0, %v1336_v56  ;;  %481 = vst.msk [vmem:[%s2643_s4 + $0x34] sm:$0xf] %vm467_vm0, %v1337_v57  ;;  %v165_v6 = vmax.f32 %v1490_v62, 0.0  ;;  %v166_v7 = vmax.f32 %v1491_v63, 0.0  ;;  %v1506_v26 = vunpack.c.l.bf16 %v1720_v13  ;;  %v1507_v27 = vunpack.c.h.bf16 %v1720_v13 }
  0x12   :  { %482 = vst.msk [vmem:[%s2643_s4 + $0x38] sm:$0xf] %vm467_vm0, %v1338_v58  ;;  %483 = vst.msk [vmem:[%s2643_s4 + $0x3c] sm:$0xf] %vm467_vm0, %v1339_v59  ;;  %v167_v8 = vmax.f32 %v1494_v0, 0.0  ;;  %v168_v9 = vmax.f32 %v1495_v1, 0.0  ;;  %v1340_v14 = vpack.c.bf16 %v163_v4, %v163_v4  ;;  %v1341_v15 = vpack.c.bf16 %v164_v5, %v164_v5 }
  0x13   :  { %v169_v10 = vmax.f32 %v1498_v2, 0.0  ;;  %v170_v11 = vmax.f32 %v1499_v3, 0.0  ;;  %v1342_v16 = vpack.c.bf16 %v165_v6, %v165_v6  ;;  %v1343_v17 = vpack.c.bf16 %v166_v7, %v166_v7  ;;  %v1727_v4 = vld [vmem:[%s2642_s0 + $0xa0] sm:$0xff]   ;;  %v1728_v5 = vld [vmem:[%s2642_s0 + $0xa8] sm:$0xff]  }
  0x14   :  { %v1344_v20 = vpack.c.bf16 %v167_v8, %v167_v8  ;;  %v1345_v21 = vpack.c.bf16 %v168_v9, %v168_v9  ;;  %484 = vst.msk [vmem:[%s2643_s4 + $0x40] sm:$0xf] %vm467_vm0, %v1340_v14  ;;  %485 = vst.msk [vmem:[%s2643_s4 + $0x44] sm:$0xf] %vm467_vm0, %v1341_v15  ;;  %v1510_v28 = vunpack.c.l.bf16 %v1721_v18  ;;  %v1511_v29 = vunpack.c.h.bf16 %v1721_v18 }
  0x15   :  { %v1346_v22 = vpack.c.bf16 %v169_v10, %v169_v10  ;;  %v1347_v23 = vpack.c.bf16 %v170_v11, %v170_v11  ;;  %486 = vst.msk [vmem:[%s2643_s4 + $0x48] sm:$0xf] %vm467_vm0, %v1342_v16  ;;  %487 = vst.msk [vmem:[%s2643_s4 + $0x4c] sm:$0xf] %vm467_vm0, %v1343_v17  ;;  %v1514_v30 = vunpack.c.l.bf16 %v1722_v19  ;;  %v1515_v31 = vunpack.c.h.bf16 %v1722_v19  ;;  %v1729_v10 = vld [vmem:[%s2642_s0 + $0xb0] sm:$0xff]   ;;  %v1730_v11 = vld [vmem:[%s2642_s0 + $0xb8] sm:$0xff]  }
  0x16   :  { %488 = vst.msk [vmem:[%s2643_s4 + $0x50] sm:$0xf] %vm467_vm0, %v1344_v20  ;;  %489 = vst.msk [vmem:[%s2643_s4 + $0x54] sm:$0xf] %vm467_vm0, %v1345_v21  ;;  %v171_v32 = vmax.f32 %v1502_v24, 0.0  ;;  %v172_v33 = vmax.f32 %v1503_v25, 0.0  ;;  %v1518_v52 = vunpack.c.l.bf16 %v1723_v40  ;;  %v1519_v53 = vunpack.c.h.bf16 %v1723_v40 }
  0x17   :  { %490 = vst.msk [vmem:[%s2643_s4 + $0x58] sm:$0xf] %vm467_vm0, %v1346_v22  ;;  %491 = vst.msk [vmem:[%s2643_s4 + $0x5c] sm:$0xf] %vm467_vm0, %v1347_v23  ;;  %v173_v34 = vmax.f32 %v1506_v26, 0.0  ;;  %v174_v35 = vmax.f32 %v1507_v27, 0.0  ;;  %v1522_v54 = vunpack.c.l.bf16 %v1724_v41  ;;  %v1523_v55 = vunpack.c.h.bf16 %v1724_v41 }
  0x18   :  { %v175_v36 = vmax.f32 %v1510_v28, 0.0  ;;  %v176_v37 = vmax.f32 %v1511_v29, 0.0  ;;  %v177_v38 = vmax.f32 %v1514_v30, 0.0  ;;  %v178_v39 = vmax.f32 %v1515_v31, 0.0 }
  0x19   :  { %v1348_v42 = vpack.c.bf16 %v171_v32, %v171_v32  ;;  %v1349_v43 = vpack.c.bf16 %v172_v33, %v172_v33  ;;  %v1350_v44 = vpack.c.bf16 %v173_v34, %v173_v34  ;;  %v1351_v45 = vpack.c.bf16 %v174_v35, %v174_v35  ;;  %v1731_v32 = vld [vmem:[%s2642_s0 + $0xc0] sm:$0xff]   ;;  %v1732_v33 = vld [vmem:[%s2642_s0 + $0xc8] sm:$0xff]  }
  0x1a   :  { %v1352_v48 = vpack.c.bf16 %v175_v36, %v175_v36  ;;  %v1353_v49 = vpack.c.bf16 %v176_v37, %v176_v37  ;;  %v1354_v50 = vpack.c.bf16 %v177_v38, %v177_v38  ;;  %v1355_v51 = vpack.c.bf16 %v178_v39, %v178_v39  ;;  %v1733_v38 = vld [vmem:[%s2642_s0 + $0xd0] sm:$0xff]   ;;  %v1734_v39 = vld [vmem:[%s2642_s0 + $0xd8] sm:$0xff]  }
  0x1b   :  { %492 = vst.msk [vmem:[%s2643_s4 + $0x60] sm:$0xf] %vm467_vm0, %v1348_v42  ;;  %493 = vst.msk [vmem:[%s2643_s4 + $0x64] sm:$0xf] %vm467_vm0, %v1349_v43  ;;  %v1526_v56 = vunpack.c.l.bf16 %v1725_v46  ;;  %v1527_v57 = vunpack.c.h.bf16 %v1725_v46  ;;  %v1530_v58 = vunpack.c.l.bf16 %v1726_v47  ;;  %v1531_v59 = vunpack.c.h.bf16 %v1726_v47 }
  0x1c   :  { %494 = vst.msk [vmem:[%s2643_s4 + $0x68] sm:$0xf] %vm467_vm0, %v1350_v44  ;;  %495 = vst.msk [vmem:[%s2643_s4 + $0x6c] sm:$0xf] %vm467_vm0, %v1351_v45  ;;  %v179_v60 = vmax.f32 %v1518_v52, 0.0  ;;  %v180_v61 = vmax.f32 %v1519_v53, 0.0  ;;  %v1534_v16 = vunpack.c.l.bf16 %v1727_v4  ;;  %v1535_v17 = vunpack.c.h.bf16 %v1727_v4 }
  0x1d   :  { %496 = vst.msk [vmem:[%s2643_s4 + $0x70] sm:$0xf] %vm467_vm0, %v1352_v48  ;;  %497 = vst.msk [vmem:[%s2643_s4 + $0x74] sm:$0xf] %vm467_vm0, %v1353_v49  ;;  %v181_v62 = vmax.f32 %v1522_v54, 0.0  ;;  %v182_v63 = vmax.f32 %v1523_v55, 0.0  ;;  %v1538_v18 = vunpack.c.l.bf16 %v1728_v5  ;;  %v1539_v19 = vunpack.c.h.bf16 %v1728_v5 }
  0x1e   :  { %498 = vst.msk [vmem:[%s2643_s4 + $0x78] sm:$0xf] %vm467_vm0, %v1354_v50  ;;  %499 = vst.msk [vmem:[%s2643_s4 + $0x7c] sm:$0xf] %vm467_vm0, %v1355_v51  ;;  %v183_v0 = vmax.f32 %v1526_v56, 0.0  ;;  %v184_v1 = vmax.f32 %v1527_v57, 0.0  ;;  %v1356_v6 = vpack.c.bf16 %v179_v60, %v179_v60  ;;  %v1357_v7 = vpack.c.bf16 %v180_v61, %v180_v61 }
  0x1f   :  { %v185_v2 = vmax.f32 %v1530_v58, 0.0  ;;  %v186_v3 = vmax.f32 %v1531_v59, 0.0  ;;  %v1358_v8 = vpack.c.bf16 %v181_v62, %v181_v62  ;;  %v1359_v9 = vpack.c.bf16 %v182_v63, %v182_v63  ;;  %v1735_v60 = vld [vmem:[%s2642_s0 + $0xe0] sm:$0xff]   ;;  %v1736_v61 = vld [vmem:[%s2642_s0 + $0xe8] sm:$0xff]  }
  0x20   :  { %v1360_v12 = vpack.c.bf16 %v183_v0, %v183_v0  ;;  %v1361_v13 = vpack.c.bf16 %v184_v1, %v184_v1  ;;  %500 = vst.msk [vmem:[%s2643_s4 + $0x80] sm:$0xf] %vm467_vm0, %v1356_v6  ;;  %501 = vst.msk [vmem:[%s2643_s4 + $0x84] sm:$0xf] %vm467_vm0, %v1357_v7  ;;  %v1542_v20 = vunpack.c.l.bf16 %v1729_v10  ;;  %v1543_v21 = vunpack.c.h.bf16 %v1729_v10 }
  0x21   :  { %v1362_v14 = vpack.c.bf16 %v185_v2, %v185_v2  ;;  %v1363_v15 = vpack.c.bf16 %v186_v3, %v186_v3  ;;  %502 = vst.msk [vmem:[%s2643_s4 + $0x88] sm:$0xf] %vm467_vm0, %v1358_v8  ;;  %503 = vst.msk [vmem:[%s2643_s4 + $0x8c] sm:$0xf] %vm467_vm0, %v1359_v9  ;;  %v1546_v22 = vunpack.c.l.bf16 %v1730_v11  ;;  %v1547_v23 = vunpack.c.h.bf16 %v1730_v11  ;;  %v1737_v2 = vld [vmem:[%s2642_s0 + $0xf0] sm:$0xff]   ;;  %v1738_v3 = vld [vmem:[%s2642_s0 + $0xf8] sm:$0xff]  }
  0x22   :  { %504 = vst.msk [vmem:[%s2643_s4 + $0x90] sm:$0xf] %vm467_vm0, %v1360_v12  ;;  %505 = vst.msk [vmem:[%s2643_s4 + $0x94] sm:$0xf] %vm467_vm0, %v1361_v13  ;;  %v187_v24 = vmax.f32 %v1534_v16, 0.0  ;;  %v188_v25 = vmax.f32 %v1535_v17, 0.0  ;;  %v1550_v44 = vunpack.c.l.bf16 %v1731_v32  ;;  %v1551_v45 = vunpack.c.h.bf16 %v1731_v32 }
  0x23   :  { %506 = vst.msk [vmem:[%s2643_s4 + $0x98] sm:$0xf] %vm467_vm0, %v1362_v14  ;;  %507 = vst.msk [vmem:[%s2643_s4 + $0x9c] sm:$0xf] %vm467_vm0, %v1363_v15  ;;  %v189_v26 = vmax.f32 %v1538_v18, 0.0  ;;  %v190_v27 = vmax.f32 %v1539_v19, 0.0  ;;  %v1554_v46 = vunpack.c.l.bf16 %v1732_v33  ;;  %v1555_v47 = vunpack.c.h.bf16 %v1732_v33 }
  0x24   :  { %v191_v28 = vmax.f32 %v1542_v20, 0.0  ;;  %v192_v29 = vmax.f32 %v1543_v21, 0.0  ;;  %v193_v30 = vmax.f32 %v1546_v22, 0.0  ;;  %v194_v31 = vmax.f32 %v1547_v23, 0.0 }
  0x25   :  { %v1364_v34 = vpack.c.bf16 %v187_v24, %v187_v24  ;;  %v1365_v35 = vpack.c.bf16 %v188_v25, %v188_v25  ;;  %v1366_v36 = vpack.c.bf16 %v189_v26, %v189_v26  ;;  %v1367_v37 = vpack.c.bf16 %v190_v27, %v190_v27  ;;  %v1581_v24 = vld [vmem:[%s2644_s1] sm:$0xff]   ;;  %v1739_v25 = vld [vmem:[%s2644_s1 + $0x8] sm:$0xff]  }
  0x26   :  { %v1368_v40 = vpack.c.bf16 %v191_v28, %v191_v28  ;;  %v1369_v41 = vpack.c.bf16 %v192_v29, %v192_v29  ;;  %v1370_v42 = vpack.c.bf16 %v193_v30, %v193_v30  ;;  %v1371_v43 = vpack.c.bf16 %v194_v31, %v194_v31  ;;  %v1740_v30 = vld [vmem:[%s2644_s1 + $0x10] sm:$0xff]   ;;  %v1741_v31 = vld [vmem:[%s2644_s1 + $0x18] sm:$0xff]  }
  0x27   :  { %508 = vst.msk [vmem:[%s2643_s4 + $0xa0] sm:$0xf] %vm467_vm0, %v1364_v34  ;;  %509 = vst.msk [vmem:[%s2643_s4 + $0xa4] sm:$0xf] %vm467_vm0, %v1365_v35  ;;  %v1558_v48 = vunpack.c.l.bf16 %v1733_v38  ;;  %v1559_v49 = vunpack.c.h.bf16 %v1733_v38  ;;  %v1562_v50 = vunpack.c.l.bf16 %v1734_v39  ;;  %v1563_v51 = vunpack.c.h.bf16 %v1734_v39 }
  0x28   :  { %510 = vst.msk [vmem:[%s2643_s4 + $0xa8] sm:$0xf] %vm467_vm0, %v1366_v36  ;;  %511 = vst.msk [vmem:[%s2643_s4 + $0xac] sm:$0xf] %vm467_vm0, %v1367_v37  ;;  %v195_v52 = vmax.f32 %v1550_v44, 0.0  ;;  %v196_v53 = vmax.f32 %v1551_v45, 0.0  ;;  %v1566_v8 = vunpack.c.l.bf16 %v1735_v60  ;;  %v1567_v9 = vunpack.c.h.bf16 %v1735_v60 }
  0x29   :  { %512 = vst.msk [vmem:[%s2643_s4 + $0xb0] sm:$0xf] %vm467_vm0, %v1368_v40  ;;  %513 = vst.msk [vmem:[%s2643_s4 + $0xb4] sm:$0xf] %vm467_vm0, %v1369_v41  ;;  %v197_v54 = vmax.f32 %v1554_v46, 0.0  ;;  %v198_v55 = vmax.f32 %v1555_v47, 0.0  ;;  %v1570_v10 = vunpack.c.l.bf16 %v1736_v61  ;;  %v1571_v11 = vunpack.c.h.bf16 %v1736_v61 }
  0x2a   :  { %514 = vst.msk [vmem:[%s2643_s4 + $0xb8] sm:$0xf] %vm467_vm0, %v1370_v42  ;;  %515 = vst.msk [vmem:[%s2643_s4 + $0xbc] sm:$0xf] %vm467_vm0, %v1371_v43  ;;  %v199_v56 = vmax.f32 %v1558_v48, 0.0  ;;  %v200_v57 = vmax.f32 %v1559_v49, 0.0  ;;  %v1372_v62 = vpack.c.bf16 %v195_v52, %v195_v52  ;;  %v1373_v63 = vpack.c.bf16 %v196_v53, %v196_v53 }
  0x2b   :  { %v201_v58 = vmax.f32 %v1562_v50, 0.0  ;;  %v202_v59 = vmax.f32 %v1563_v51, 0.0  ;;  %v1374_v0 = vpack.c.bf16 %v197_v54, %v197_v54  ;;  %v1375_v1 = vpack.c.bf16 %v198_v55, %v198_v55  ;;  %v2135_v36 = vld [vmem:[%s2645_s2] ss:$0 sm:$0xff] }
  0x2c   :  { %v1376_v4 = vpack.c.bf16 %v199_v56, %v199_v56  ;;  %v1377_v5 = vpack.c.bf16 %v200_v57, %v200_v57  ;;  %516 = vst.msk [vmem:[%s2643_s4 + $0xc0] sm:$0xf] %vm467_vm0, %v1372_v62  ;;  %517 = vst.msk [vmem:[%s2643_s4 + $0xc4] sm:$0xf] %vm467_vm0, %v1373_v63  ;;  %v1574_v12 = vunpack.c.l.bf16 %v1737_v2  ;;  %v1575_v13 = vunpack.c.h.bf16 %v1737_v2  ;;  %v2172_v41 = vld [vmem:[%s2646_s3] ss:$0 sm:$0xff] }
  0x2d   :  { %v1378_v6 = vpack.c.bf16 %v201_v58, %v201_v58  ;;  %v1379_v7 = vpack.c.bf16 %v202_v59, %v202_v59  ;;  %518 = vst.msk [vmem:[%s2643_s4 + $0xc8] sm:$0xf] %vm467_vm0, %v1374_v0  ;;  %519 = vst.msk [vmem:[%s2643_s4 + $0xcc] sm:$0xf] %vm467_vm0, %v1375_v1  ;;  %v1578_v14 = vunpack.c.l.bf16 %v1738_v3  ;;  %v1579_v15 = vunpack.c.h.bf16 %v1738_v3 }
  0x2e   :  { %520 = vst.msk [vmem:[%s2643_s4 + $0xd0] sm:$0xf] %vm467_vm0, %v1376_v4  ;;  %521 = vst.msk [vmem:[%s2643_s4 + $0xd4] sm:$0xf] %vm467_vm0, %v1377_v5  ;;  %v203_v16 = vmax.f32 %v1566_v8, 0.0  ;;  %v204_v17 = vmax.f32 %v1567_v9, 0.0  ;;  %v1582_v37 = vunpack.c.l.bf16 %v1581_v24  ;;  %v1583_v38 = vunpack.c.h.bf16 %v1581_v24 }
  0x2f   :  { %522 = vst.msk [vmem:[%s2643_s4 + $0xd8] sm:$0xf] %vm467_vm0, %v1378_v6  ;;  %523 = vst.msk [vmem:[%s2643_s4 + $0xdc] sm:$0xf] %vm467_vm0, %v1379_v7  ;;  %v205_v18 = vmax.f32 %v1570_v10, 0.0  ;;  %v206_v19 = vmax.f32 %v1571_v11, 0.0  ;;  %v1586_v39 = vunpack.c.l.bf16 %v1739_v25  ;;  %v1587_v40 = vunpack.c.h.bf16 %v1739_v25 }
  0x30   :  { %v207_v20 = vmax.f32 %v1574_v12, 0.0  ;;  %v208_v21 = vmax.f32 %v1575_v13, 0.0  ;;  %v209_v22 = vmax.f32 %v1578_v14, 0.0  ;;  %v210_v23 = vmax.f32 %v1579_v15, 0.0  ;;  %v1742_v6 = vld [vmem:[%s2644_s1 + $0x20] sm:$0xff]   ;;  %v1743_v7 = vld [vmem:[%s2644_s1 + $0x28] sm:$0xff]  }
  0x31   :  { %v1380_v26 = vpack.c.bf16 %v203_v16, %v203_v16  ;;  %v1381_v27 = vpack.c.bf16 %v204_v17, %v204_v17  ;;  %v1382_v28 = vpack.c.bf16 %v205_v18, %v205_v18  ;;  %v1383_v29 = vpack.c.bf16 %v206_v19, %v206_v19  ;;  %v1744_v12 = vld [vmem:[%s2644_s1 + $0x30] sm:$0xff]   ;;  %v1745_v13 = vld [vmem:[%s2644_s1 + $0x38] sm:$0xff]  }
  0x32   :  { %v1384_v32 = vpack.c.bf16 %v207_v20, %v207_v20  ;;  %v1385_v33 = vpack.c.bf16 %v208_v21, %v208_v21  ;;  %v1386_v34 = vpack.c.bf16 %v209_v22, %v209_v22  ;;  %v1387_v35 = vpack.c.bf16 %v210_v23, %v210_v23 }
  0x33   :  { %524 = vst.msk [vmem:[%s2643_s4 + $0xe0] sm:$0xf] %vm467_vm0, %v1380_v26  ;;  %525 = vst.msk [vmem:[%s2643_s4 + $0xe4] sm:$0xf] %vm467_vm0, %v1381_v27  ;;  %v1590_v42 = vunpack.c.l.bf16 %v1740_v30  ;;  %v1591_v43 = vunpack.c.h.bf16 %v1740_v30  ;;  %v1594_v44 = vunpack.c.l.bf16 %v1741_v31  ;;  %v1595_v45 = vunpack.c.h.bf16 %v1741_v31 }
  0x34   :  { %526 = vst.msk [vmem:[%s2643_s4 + $0xe8] sm:$0xf] %vm467_vm0, %v1382_v28  ;;  %527 = vst.msk [vmem:[%s2643_s4 + $0xec] sm:$0xf] %vm467_vm0, %v1383_v29  ;;  %v667_v46 = vmul.f32 %v1582_v37, %v2135_v36  ;;  %v668_v47 = vmul.f32 %v1583_v38, %v2135_v36  ;;  %v669_v48 = vmul.f32 %v1586_v39, %v2135_v36  ;;  %v1598_v18 = vunpack.c.l.bf16 %v1742_v6 }
  0x35   :  { %528 = vst.msk [vmem:[%s2643_s4 + $0xf0] sm:$0xf] %vm467_vm0, %v1384_v32  ;;  %529 = vst.msk [vmem:[%s2643_s4 + $0xf4] sm:$0xf] %vm467_vm0, %v1385_v33  ;;  %v670_v49 = vmul.f32 %v1587_v40, %v2135_v36  ;;  %v671_v50 = vmul.f32 %v1590_v42, %v2135_v36  ;;  %v672_v51 = vmul.f32 %v1591_v43, %v2135_v36  ;;  %v1599_v19 = vunpack.c.h.bf16 %v1742_v6 }
  0x36   :  { %530 = vst.msk [vmem:[%s2643_s4 + $0xf8] sm:$0xf] %vm467_vm0, %v1386_v34  ;;  %531 = vst.msk [vmem:[%s2643_s4 + $0xfc] sm:$0xf] %vm467_vm0, %v1387_v35  ;;  %v673_v52 = vmul.f32 %v1594_v44, %v2135_v36  ;;  %v674_v53 = vmul.f32 %v1595_v45, %v2135_v36  ;;  %v738_v54 = vadd.f32 %v2172_v41, %v667_v46  ;;  %v1602_v20 = vunpack.c.l.bf16 %v1743_v7 }
  0x37   :  { %v739_v55 = vadd.f32 %v2172_v41, %v668_v47  ;;  %v740_v56 = vadd.f32 %v2172_v41, %v669_v48  ;;  %v741_v57 = vadd.f32 %v2172_v41, %v670_v49  ;;  %v742_v58 = vadd.f32 %v2172_v41, %v671_v50 }
  0x38   :  { %v743_v59 = vadd.f32 %v2172_v41, %v672_v51  ;;  %v744_v60 = vadd.f32 %v2172_v41, %v673_v52  ;;  %v745_v61 = vadd.f32 %v2172_v41, %v674_v53  ;;  %v802_v62 = vmax.f32 %v738_v54, 0.0  ;;  %v1746_v52 = vld [vmem:[%s2644_s1 + $0x40] sm:$0xff]   ;;  %v1747_v53 = vld [vmem:[%s2644_s1 + $0x48] sm:$0xff]  }
  0x39   :  { %v803_v63 = vmax.f32 %v739_v55, 0.0  ;;  %v804_v0 = vmax.f32 %v740_v56, 0.0  ;;  %v805_v1 = vmax.f32 %v741_v57, 0.0  ;;  %v806_v2 = vmax.f32 %v742_v58, 0.0  ;;  %v1748_v58 = vld [vmem:[%s2644_s1 + $0x50] sm:$0xff]  }
  0x3a   :  { %v807_v3 = vmax.f32 %v743_v59, 0.0  ;;  %v808_v4 = vmax.f32 %v744_v60, 0.0  ;;  %v809_v5 = vmax.f32 %v745_v61, 0.0  ;;  %v1388_v8 = vpack.c.bf16 %v802_v62, %v802_v62  ;;  %v1749_v59 = vld [vmem:[%s2644_s1 + $0x58] sm:$0xff]  }
  0x3b   :  { %v1389_v9 = vpack.c.bf16 %v803_v63, %v803_v63  ;;  %v1390_v10 = vpack.c.bf16 %v804_v0, %v804_v0  ;;  %v1391_v11 = vpack.c.bf16 %v805_v1, %v805_v1  ;;  %v1392_v14 = vpack.c.bf16 %v806_v2, %v806_v2 }
  0x3c   :  { %v1393_v15 = vpack.c.bf16 %v807_v3, %v807_v3  ;;  %v1394_v16 = vpack.c.bf16 %v808_v4, %v808_v4  ;;  %v1395_v17 = vpack.c.bf16 %v809_v5, %v809_v5  ;;  %1122 = vst.msk [vmem:[%s2647_s5] sm:$0xf] %vm467_vm0, %v1388_v8  ;;  %v1603_v21 = vunpack.c.h.bf16 %v1743_v7 }
  0x3d   :  { %1123 = vst.msk [vmem:[%s2647_s5 + $0x4] sm:$0xf] %vm467_vm0, %v1389_v9  ;;  %1124 = vst.msk [vmem:[%s2647_s5 + $0x8] sm:$0xf] %vm467_vm0, %v1390_v10  ;;  %v1606_v22 = vunpack.c.l.bf16 %v1744_v12  ;;  %v1607_v23 = vunpack.c.h.bf16 %v1744_v12  ;;  %v1610_v24 = vunpack.c.l.bf16 %v1745_v13  ;;  %v1611_v25 = vunpack.c.h.bf16 %v1745_v13 }
  0x3e   :  { %1125 = vst.msk [vmem:[%s2647_s5 + $0xc] sm:$0xf] %vm467_vm0, %v1391_v11  ;;  %1126 = vst.msk [vmem:[%s2647_s5 + $0x10] sm:$0xf] %vm467_vm0, %v1392_v14  ;;  %v675_v26 = vmul.f32 %v1598_v18, %v2135_v36  ;;  %v676_v27 = vmul.f32 %v1599_v19, %v2135_v36  ;;  %v677_v28 = vmul.f32 %v1602_v20, %v2135_v36  ;;  %v1614_v0 = vunpack.c.l.bf16 %v1746_v52 }
  0x3f   :  { %1127 = vst.msk [vmem:[%s2647_s5 + $0x14] sm:$0xf] %vm467_vm0, %v1393_v15  ;;  %1128 = vst.msk [vmem:[%s2647_s5 + $0x18] sm:$0xf] %vm467_vm0, %v1394_v16  ;;  %v678_v29 = vmul.f32 %v1603_v21, %v2135_v36  ;;  %v679_v30 = vmul.f32 %v1606_v22, %v2135_v36  ;;  %v680_v31 = vmul.f32 %v1607_v23, %v2135_v36  ;;  %v1615_v1 = vunpack.c.h.bf16 %v1746_v52 }
  0x40   :  { %1129 = vst.msk [vmem:[%s2647_s5 + $0x1c] sm:$0xf] %vm467_vm0, %v1395_v17  ;;  %v681_v32 = vmul.f32 %v1610_v24, %v2135_v36  ;;  %v682_v33 = vmul.f32 %v1611_v25, %v2135_v36  ;;  %v746_v34 = vadd.f32 %v2172_v41, %v675_v26  ;;  %v747_v35 = vadd.f32 %v2172_v41, %v676_v27 }
  0x41   :  { %v748_v37 = vadd.f32 %v2172_v41, %v677_v28  ;;  %v749_v38 = vadd.f32 %v2172_v41, %v678_v29  ;;  %v750_v39 = vadd.f32 %v2172_v41, %v679_v30  ;;  %v751_v40 = vadd.f32 %v2172_v41, %v680_v31 }
  0x42   :  { %v752_v42 = vadd.f32 %v2172_v41, %v681_v32  ;;  %v753_v43 = vadd.f32 %v2172_v41, %v682_v33  ;;  %v810_v44 = vmax.f32 %v746_v34, 0.0  ;;  %v811_v45 = vmax.f32 %v747_v35, 0.0  ;;  %v1750_v32 = vld [vmem:[%s2644_s1 + $0x60] sm:$0xff]   ;;  %v1751_v33 = vld [vmem:[%s2644_s1 + $0x68] sm:$0xff]  }
  0x43   :  { %v812_v46 = vmax.f32 %v748_v37, 0.0  ;;  %v813_v47 = vmax.f32 %v749_v38, 0.0  ;;  %v814_v48 = vmax.f32 %v750_v39, 0.0  ;;  %v815_v49 = vmax.f32 %v751_v40, 0.0  ;;  %v1752_v39 = vld [vmem:[%s2644_s1 + $0x70] sm:$0xff]   ;;  %v1753_v40 = vld [vmem:[%s2644_s1 + $0x78] sm:$0xff]  }
  0x44   :  { %v816_v50 = vmax.f32 %v752_v42, 0.0  ;;  %v817_v51 = vmax.f32 %v753_v43, 0.0  ;;  %v1396_v54 = vpack.c.bf16 %v810_v44, %v810_v44  ;;  %v1397_v55 = vpack.c.bf16 %v811_v45, %v811_v45 }
  0x45   :  { %v1398_v56 = vpack.c.bf16 %v812_v46, %v812_v46  ;;  %v1399_v57 = vpack.c.bf16 %v813_v47, %v813_v47  ;;  %v1400_v60 = vpack.c.bf16 %v814_v48, %v814_v48  ;;  %v1401_v61 = vpack.c.bf16 %v815_v49, %v815_v49 }
  0x46   :  { %v1402_v62 = vpack.c.bf16 %v816_v50, %v816_v50  ;;  %v1403_v63 = vpack.c.bf16 %v817_v51, %v817_v51  ;;  %1130 = vst.msk [vmem:[%s2647_s5 + $0x20] sm:$0xf] %vm467_vm0, %v1396_v54  ;;  %1131 = vst.msk [vmem:[%s2647_s5 + $0x24] sm:$0xf] %vm467_vm0, %v1397_v55  ;;  %v1618_v2 = vunpack.c.l.bf16 %v1747_v53  ;;  %v1619_v3 = vunpack.c.h.bf16 %v1747_v53 }
  0x47   :  { %1132 = vst.msk [vmem:[%s2647_s5 + $0x28] sm:$0xf] %vm467_vm0, %v1398_v56  ;;  %1133 = vst.msk [vmem:[%s2647_s5 + $0x2c] sm:$0xf] %vm467_vm0, %v1399_v57  ;;  %v1622_v4 = vunpack.c.l.bf16 %v1748_v58  ;;  %v1623_v5 = vunpack.c.h.bf16 %v1748_v58  ;;  %v1626_v6 = vunpack.c.l.bf16 %v1749_v59  ;;  %v1627_v7 = vunpack.c.h.bf16 %v1749_v59 }
  0x48   :  { %1134 = vst.msk [vmem:[%s2647_s5 + $0x30] sm:$0xf] %vm467_vm0, %v1400_v60  ;;  %1135 = vst.msk [vmem:[%s2647_s5 + $0x34] sm:$0xf] %vm467_vm0, %v1401_v61  ;;  %v683_v8 = vmul.f32 %v1614_v0, %v2135_v36  ;;  %v684_v9 = vmul.f32 %v1615_v1, %v2135_v36  ;;  %v685_v10 = vmul.f32 %v1618_v2, %v2135_v36  ;;  %v1630_v46 = vunpack.c.l.bf16 %v1750_v32 }
  0x49   :  { %1136 = vst.msk [vmem:[%s2647_s5 + $0x38] sm:$0xf] %vm467_vm0, %v1402_v62  ;;  %1137 = vst.msk [vmem:[%s2647_s5 + $0x3c] sm:$0xf] %vm467_vm0, %v1403_v63  ;;  %v686_v11 = vmul.f32 %v1619_v3, %v2135_v36  ;;  %v687_v12 = vmul.f32 %v1622_v4, %v2135_v36  ;;  %v688_v13 = vmul.f32 %v1623_v5, %v2135_v36  ;;  %v1631_v47 = vunpack.c.h.bf16 %v1750_v32 }
  0x4a   :  { %v689_v14 = vmul.f32 %v1626_v6, %v2135_v36  ;;  %v690_v15 = vmul.f32 %v1627_v7, %v2135_v36  ;;  %v754_v16 = vadd.f32 %v2172_v41, %v683_v8  ;;  %v755_v17 = vadd.f32 %v2172_v41, %v684_v9 }
  0x4b   :  { %v756_v18 = vadd.f32 %v2172_v41, %v685_v10  ;;  %v757_v19 = vadd.f32 %v2172_v41, %v686_v11  ;;  %v758_v20 = vadd.f32 %v2172_v41, %v687_v12  ;;  %v759_v21 = vadd.f32 %v2172_v41, %v688_v13 }
  0x4c   :  { %v760_v22 = vadd.f32 %v2172_v41, %v689_v14  ;;  %v761_v23 = vadd.f32 %v2172_v41, %v690_v15  ;;  %v818_v24 = vmax.f32 %v754_v16, 0.0  ;;  %v819_v25 = vmax.f32 %v755_v17, 0.0  ;;  %v1754_v14 = vld [vmem:[%s2644_s1 + $0x80] sm:$0xff]   ;;  %v1755_v15 = vld [vmem:[%s2644_s1 + $0x88] sm:$0xff]  }
  0x4d   :  { %v820_v26 = vmax.f32 %v756_v18, 0.0  ;;  %v821_v27 = vmax.f32 %v757_v19, 0.0  ;;  %v822_v28 = vmax.f32 %v758_v20, 0.0  ;;  %v823_v29 = vmax.f32 %v759_v21, 0.0  ;;  %v1756_v20 = vld [vmem:[%s2644_s1 + $0x90] sm:$0xff]   ;;  %v1757_v21 = vld [vmem:[%s2644_s1 + $0x98] sm:$0xff]  }
  0x4e   :  { %v824_v30 = vmax.f32 %v760_v22, 0.0  ;;  %v825_v31 = vmax.f32 %v761_v23, 0.0  ;;  %v1404_v34 = vpack.c.bf16 %v818_v24, %v818_v24  ;;  %v1405_v35 = vpack.c.bf16 %v819_v25, %v819_v25 }
  0x4f   :  { %v1406_v37 = vpack.c.bf16 %v820_v26, %v820_v26  ;;  %v1407_v38 = vpack.c.bf16 %v821_v27, %v821_v27  ;;  %v1408_v42 = vpack.c.bf16 %v822_v28, %v822_v28  ;;  %v1409_v43 = vpack.c.bf16 %v823_v29, %v823_v29 }
  0x50   :  { %v1410_v44 = vpack.c.bf16 %v824_v30, %v824_v30  ;;  %v1411_v45 = vpack.c.bf16 %v825_v31, %v825_v31  ;;  %1138 = vst.msk [vmem:[%s2647_s5 + $0x40] sm:$0xf] %vm467_vm0, %v1404_v34  ;;  %1139 = vst.msk [vmem:[%s2647_s5 + $0x44] sm:$0xf] %vm467_vm0, %v1405_v35  ;;  %v1634_v48 = vunpack.c.l.bf16 %v1751_v33  ;;  %v1635_v49 = vunpack.c.h.bf16 %v1751_v33 }
  0x51   :  { %1140 = vst.msk [vmem:[%s2647_s5 + $0x48] sm:$0xf] %vm467_vm0, %v1406_v37  ;;  %1141 = vst.msk [vmem:[%s2647_s5 + $0x4c] sm:$0xf] %vm467_vm0, %v1407_v38  ;;  %v1638_v50 = vunpack.c.l.bf16 %v1752_v39  ;;  %v1639_v51 = vunpack.c.h.bf16 %v1752_v39  ;;  %v1642_v52 = vunpack.c.l.bf16 %v1753_v40  ;;  %v1643_v53 = vunpack.c.h.bf16 %v1753_v40 }
  0x52   :  { %1142 = vst.msk [vmem:[%s2647_s5 + $0x50] sm:$0xf] %vm467_vm0, %v1408_v42  ;;  %1143 = vst.msk [vmem:[%s2647_s5 + $0x54] sm:$0xf] %vm467_vm0, %v1409_v43  ;;  %v691_v54 = vmul.f32 %v1630_v46, %v2135_v36  ;;  %v692_v55 = vmul.f32 %v1631_v47, %v2135_v36  ;;  %v693_v56 = vmul.f32 %v1634_v48, %v2135_v36  ;;  %v1646_v26 = vunpack.c.l.bf16 %v1754_v14 }
  0x53   :  { %1144 = vst.msk [vmem:[%s2647_s5 + $0x58] sm:$0xf] %vm467_vm0, %v1410_v44  ;;  %1145 = vst.msk [vmem:[%s2647_s5 + $0x5c] sm:$0xf] %vm467_vm0, %v1411_v45  ;;  %v694_v57 = vmul.f32 %v1635_v49, %v2135_v36  ;;  %v695_v58 = vmul.f32 %v1638_v50, %v2135_v36  ;;  %v696_v59 = vmul.f32 %v1639_v51, %v2135_v36  ;;  %v1647_v27 = vunpack.c.h.bf16 %v1754_v14 }
  0x54   :  { %v697_v60 = vmul.f32 %v1642_v52, %v2135_v36  ;;  %v698_v61 = vmul.f32 %v1643_v53, %v2135_v36  ;;  %v762_v62 = vadd.f32 %v2172_v41, %v691_v54  ;;  %v763_v63 = vadd.f32 %v2172_v41, %v692_v55 }
  0x55   :  { %v764_v0 = vadd.f32 %v2172_v41, %v693_v56  ;;  %v765_v1 = vadd.f32 %v2172_v41, %v694_v57  ;;  %v766_v2 = vadd.f32 %v2172_v41, %v695_v58  ;;  %v767_v3 = vadd.f32 %v2172_v41, %v696_v59 }
  0x56   :  { %v768_v4 = vadd.f32 %v2172_v41, %v697_v60  ;;  %v769_v5 = vadd.f32 %v2172_v41, %v698_v61  ;;  %v826_v6 = vmax.f32 %v762_v62, 0.0  ;;  %v827_v7 = vmax.f32 %v763_v63, 0.0  ;;  %v1758_v60 = vld [vmem:[%s2644_s1 + $0xa0] sm:$0xff]   ;;  %v1759_v61 = vld [vmem:[%s2644_s1 + $0xa8] sm:$0xff]  }
  0x57   :  { %v828_v8 = vmax.f32 %v764_v0, 0.0  ;;  %v829_v9 = vmax.f32 %v765_v1, 0.0  ;;  %v830_v10 = vmax.f32 %v766_v2, 0.0  ;;  %v831_v11 = vmax.f32 %v767_v3, 0.0  ;;  %v1760_v2 = vld [vmem:[%s2644_s1 + $0xb0] sm:$0xff]   ;;  %v1761_v3 = vld [vmem:[%s2644_s1 + $0xb8] sm:$0xff]  }
  0x58   :  { %v832_v12 = vmax.f32 %v768_v4, 0.0  ;;  %v833_v13 = vmax.f32 %v769_v5, 0.0  ;;  %v1412_v16 = vpack.c.bf16 %v826_v6, %v826_v6  ;;  %v1413_v17 = vpack.c.bf16 %v827_v7, %v827_v7 }
  0x59   :  { %v1414_v18 = vpack.c.bf16 %v828_v8, %v828_v8  ;;  %v1415_v19 = vpack.c.bf16 %v829_v9, %v829_v9  ;;  %v1416_v22 = vpack.c.bf16 %v830_v10, %v830_v10  ;;  %v1417_v23 = vpack.c.bf16 %v831_v11, %v831_v11 }
  0x5a   :  { %v1418_v24 = vpack.c.bf16 %v832_v12, %v832_v12  ;;  %v1419_v25 = vpack.c.bf16 %v833_v13, %v833_v13  ;;  %1146 = vst.msk [vmem:[%s2647_s5 + $0x60] sm:$0xf] %vm467_vm0, %v1412_v16  ;;  %1147 = vst.msk [vmem:[%s2647_s5 + $0x64] sm:$0xf] %vm467_vm0, %v1413_v17  ;;  %v1650_v28 = vunpack.c.l.bf16 %v1755_v15  ;;  %v1651_v29 = vunpack.c.h.bf16 %v1755_v15 }
  0x5b   :  { %1148 = vst.msk [vmem:[%s2647_s5 + $0x68] sm:$0xf] %vm467_vm0, %v1414_v18  ;;  %1149 = vst.msk [vmem:[%s2647_s5 + $0x6c] sm:$0xf] %vm467_vm0, %v1415_v19  ;;  %v1654_v30 = vunpack.c.l.bf16 %v1756_v20  ;;  %v1655_v31 = vunpack.c.h.bf16 %v1756_v20  ;;  %v1658_v32 = vunpack.c.l.bf16 %v1757_v21  ;;  %v1659_v33 = vunpack.c.h.bf16 %v1757_v21 }
  0x5c   :  { %1150 = vst.msk [vmem:[%s2647_s5 + $0x70] sm:$0xf] %vm467_vm0, %v1416_v22  ;;  %1151 = vst.msk [vmem:[%s2647_s5 + $0x74] sm:$0xf] %vm467_vm0, %v1417_v23  ;;  %v699_v34 = vmul.f32 %v1646_v26, %v2135_v36  ;;  %v700_v35 = vmul.f32 %v1647_v27, %v2135_v36  ;;  %v701_v37 = vmul.f32 %v1650_v28, %v2135_v36  ;;  %v1662_v8 = vunpack.c.l.bf16 %v1758_v60 }
  0x5d   :  { %1152 = vst.msk [vmem:[%s2647_s5 + $0x78] sm:$0xf] %vm467_vm0, %v1418_v24  ;;  %1153 = vst.msk [vmem:[%s2647_s5 + $0x7c] sm:$0xf] %vm467_vm0, %v1419_v25  ;;  %v702_v38 = vmul.f32 %v1651_v29, %v2135_v36  ;;  %v703_v39 = vmul.f32 %v1654_v30, %v2135_v36  ;;  %v704_v40 = vmul.f32 %v1655_v31, %v2135_v36  ;;  %v1663_v9 = vunpack.c.h.bf16 %v1758_v60 }
  0x5e   :  { %v705_v42 = vmul.f32 %v1658_v32, %v2135_v36  ;;  %v706_v43 = vmul.f32 %v1659_v33, %v2135_v36  ;;  %v770_v44 = vadd.f32 %v2172_v41, %v699_v34  ;;  %v771_v45 = vadd.f32 %v2172_v41, %v700_v35 }
  0x5f   :  { %v772_v46 = vadd.f32 %v2172_v41, %v701_v37  ;;  %v773_v47 = vadd.f32 %v2172_v41, %v702_v38  ;;  %v774_v48 = vadd.f32 %v2172_v41, %v703_v39  ;;  %v775_v49 = vadd.f32 %v2172_v41, %v704_v40 }
  0x60   :  { %v776_v50 = vadd.f32 %v2172_v41, %v705_v42  ;;  %v777_v51 = vadd.f32 %v2172_v41, %v706_v43  ;;  %v834_v52 = vmax.f32 %v770_v44, 0.0  ;;  %v835_v53 = vmax.f32 %v771_v45, 0.0  ;;  %v1762_v42 = vld [vmem:[%s2644_s1 + $0xc0] sm:$0xff]   ;;  %v1763_v43 = vld [vmem:[%s2644_s1 + $0xc8] sm:$0xff]  }
  0x61   :  { %v836_v54 = vmax.f32 %v772_v46, 0.0  ;;  %v837_v55 = vmax.f32 %v773_v47, 0.0  ;;  %v838_v56 = vmax.f32 %v774_v48, 0.0  ;;  %v839_v57 = vmax.f32 %v775_v49, 0.0  ;;  %v1764_v48 = vld [vmem:[%s2644_s1 + $0xd0] sm:$0xff]   ;;  %v1765_v49 = vld [vmem:[%s2644_s1 + $0xd8] sm:$0xff]  }
  0x62   :  { %v840_v58 = vmax.f32 %v776_v50, 0.0  ;;  %v841_v59 = vmax.f32 %v777_v51, 0.0  ;;  %v1420_v62 = vpack.c.bf16 %v834_v52, %v834_v52  ;;  %v1421_v63 = vpack.c.bf16 %v835_v53, %v835_v53 }
  0x63   :  { %v1422_v0 = vpack.c.bf16 %v836_v54, %v836_v54  ;;  %v1423_v1 = vpack.c.bf16 %v837_v55, %v837_v55  ;;  %v1424_v4 = vpack.c.bf16 %v838_v56, %v838_v56  ;;  %v1425_v5 = vpack.c.bf16 %v839_v57, %v839_v57 }
  0x64   :  { %v1426_v6 = vpack.c.bf16 %v840_v58, %v840_v58  ;;  %v1427_v7 = vpack.c.bf16 %v841_v59, %v841_v59  ;;  %1154 = vst.msk [vmem:[%s2647_s5 + $0x80] sm:$0xf] %vm467_vm0, %v1420_v62  ;;  %1155 = vst.msk [vmem:[%s2647_s5 + $0x84] sm:$0xf] %vm467_vm0, %v1421_v63  ;;  %v1666_v10 = vunpack.c.l.bf16 %v1759_v61  ;;  %v1667_v11 = vunpack.c.h.bf16 %v1759_v61 }
  0x65   :  { %1156 = vst.msk [vmem:[%s2647_s5 + $0x88] sm:$0xf] %vm467_vm0, %v1422_v0  ;;  %1157 = vst.msk [vmem:[%s2647_s5 + $0x8c] sm:$0xf] %vm467_vm0, %v1423_v1  ;;  %v1670_v12 = vunpack.c.l.bf16 %v1760_v2  ;;  %v1671_v13 = vunpack.c.h.bf16 %v1760_v2  ;;  %v1674_v14 = vunpack.c.l.bf16 %v1761_v3  ;;  %v1675_v15 = vunpack.c.h.bf16 %v1761_v3 }
  0x66   :  { %1158 = vst.msk [vmem:[%s2647_s5 + $0x90] sm:$0xf] %vm467_vm0, %v1424_v4  ;;  %1159 = vst.msk [vmem:[%s2647_s5 + $0x94] sm:$0xf] %vm467_vm0, %v1425_v5  ;;  %v707_v16 = vmul.f32 %v1662_v8, %v2135_v36  ;;  %v708_v17 = vmul.f32 %v1663_v9, %v2135_v36  ;;  %v709_v18 = vmul.f32 %v1666_v10, %v2135_v36  ;;  %v1678_v54 = vunpack.c.l.bf16 %v1762_v42 }
  0x67   :  { %1160 = vst.msk [vmem:[%s2647_s5 + $0x98] sm:$0xf] %vm467_vm0, %v1426_v6  ;;  %1161 = vst.msk [vmem:[%s2647_s5 + $0x9c] sm:$0xf] %vm467_vm0, %v1427_v7  ;;  %v710_v19 = vmul.f32 %v1667_v11, %v2135_v36  ;;  %v711_v20 = vmul.f32 %v1670_v12, %v2135_v36  ;;  %v712_v21 = vmul.f32 %v1671_v13, %v2135_v36  ;;  %v1679_v55 = vunpack.c.h.bf16 %v1762_v42 }
  0x68   :  { %v713_v22 = vmul.f32 %v1674_v14, %v2135_v36  ;;  %v714_v23 = vmul.f32 %v1675_v15, %v2135_v36  ;;  %v778_v24 = vadd.f32 %v2172_v41, %v707_v16  ;;  %v779_v25 = vadd.f32 %v2172_v41, %v708_v17 }
  0x69   :  { %v780_v26 = vadd.f32 %v2172_v41, %v709_v18  ;;  %v781_v27 = vadd.f32 %v2172_v41, %v710_v19  ;;  %v782_v28 = vadd.f32 %v2172_v41, %v711_v20  ;;  %v783_v29 = vadd.f32 %v2172_v41, %v712_v21 }
  0x6a   :  { %v784_v30 = vadd.f32 %v2172_v41, %v713_v22  ;;  %v785_v31 = vadd.f32 %v2172_v41, %v714_v23  ;;  %v842_v32 = vmax.f32 %v778_v24, 0.0  ;;  %v843_v33 = vmax.f32 %v779_v25, 0.0  ;;  %v1766_v22 = vld [vmem:[%s2644_s1 + $0xe0] sm:$0xff]   ;;  %v1767_v23 = vld [vmem:[%s2644_s1 + $0xe8] sm:$0xff]  }
  0x6b   :  { %v844_v34 = vmax.f32 %v780_v26, 0.0  ;;  %v845_v35 = vmax.f32 %v781_v27, 0.0  ;;  %v846_v37 = vmax.f32 %v782_v28, 0.0  ;;  %v847_v38 = vmax.f32 %v783_v29, 0.0  ;;  %v1768_v28 = vld [vmem:[%s2644_s1 + $0xf0] sm:$0xff]   ;;  %v1769_v29 = vld [vmem:[%s2644_s1 + $0xf8] sm:$0xff]  }
  0x6c   :  { %v848_v39 = vmax.f32 %v784_v30, 0.0  ;;  %v849_v40 = vmax.f32 %v785_v31, 0.0  ;;  %v1428_v44 = vpack.c.bf16 %v842_v32, %v842_v32  ;;  %v1429_v45 = vpack.c.bf16 %v843_v33, %v843_v33 }
  0x6d   :  { %v1430_v46 = vpack.c.bf16 %v844_v34, %v844_v34  ;;  %v1431_v47 = vpack.c.bf16 %v845_v35, %v845_v35  ;;  %v1432_v50 = vpack.c.bf16 %v846_v37, %v846_v37  ;;  %v1433_v51 = vpack.c.bf16 %v847_v38, %v847_v38 }
  0x6e   :  { %v1434_v52 = vpack.c.bf16 %v848_v39, %v848_v39  ;;  %v1435_v53 = vpack.c.bf16 %v849_v40, %v849_v40  ;;  %1162 = vst.msk [vmem:[%s2647_s5 + $0xa0] sm:$0xf] %vm467_vm0, %v1428_v44  ;;  %1163 = vst.msk [vmem:[%s2647_s5 + $0xa4] sm:$0xf] %vm467_vm0, %v1429_v45  ;;  %v1682_v56 = vunpack.c.l.bf16 %v1763_v43  ;;  %v1683_v57 = vunpack.c.h.bf16 %v1763_v43 }
  0x6f   :  { %1164 = vst.msk [vmem:[%s2647_s5 + $0xa8] sm:$0xf] %vm467_vm0, %v1430_v46  ;;  %1165 = vst.msk [vmem:[%s2647_s5 + $0xac] sm:$0xf] %vm467_vm0, %v1431_v47  ;;  %v1686_v58 = vunpack.c.l.bf16 %v1764_v48  ;;  %v1687_v59 = vunpack.c.h.bf16 %v1764_v48  ;;  %v1690_v60 = vunpack.c.l.bf16 %v1765_v49  ;;  %v1691_v61 = vunpack.c.h.bf16 %v1765_v49 }
  0x70   :  { %1166 = vst.msk [vmem:[%s2647_s5 + $0xb0] sm:$0xf] %vm467_vm0, %v1432_v50  ;;  %1167 = vst.msk [vmem:[%s2647_s5 + $0xb4] sm:$0xf] %vm467_vm0, %v1433_v51  ;;  %v715_v62 = vmul.f32 %v1678_v54, %v2135_v36  ;;  %v716_v63 = vmul.f32 %v1679_v55, %v2135_v36  ;;  %v717_v0 = vmul.f32 %v1682_v56, %v2135_v36  ;;  %v1694_v34 = vunpack.c.l.bf16 %v1766_v22 }
  0x71   :  { %1168 = vst.msk [vmem:[%s2647_s5 + $0xb8] sm:$0xf] %vm467_vm0, %v1434_v52  ;;  %1169 = vst.msk [vmem:[%s2647_s5 + $0xbc] sm:$0xf] %vm467_vm0, %v1435_v53  ;;  %v718_v1 = vmul.f32 %v1683_v57, %v2135_v36  ;;  %v719_v2 = vmul.f32 %v1686_v58, %v2135_v36  ;;  %v720_v3 = vmul.f32 %v1687_v59, %v2135_v36  ;;  %v1695_v35 = vunpack.c.h.bf16 %v1766_v22 }
  0x72   :  { %v721_v4 = vmul.f32 %v1690_v60, %v2135_v36  ;;  %v722_v5 = vmul.f32 %v1691_v61, %v2135_v36  ;;  %v786_v6 = vadd.f32 %v2172_v41, %v715_v62  ;;  %v787_v7 = vadd.f32 %v2172_v41, %v716_v63 }
  0x73   :  { %v788_v8 = vadd.f32 %v2172_v41, %v717_v0  ;;  %v789_v9 = vadd.f32 %v2172_v41, %v718_v1  ;;  %v790_v10 = vadd.f32 %v2172_v41, %v719_v2  ;;  %v791_v11 = vadd.f32 %v2172_v41, %v720_v3 }
  0x74   :  { %v792_v12 = vadd.f32 %v2172_v41, %v721_v4  ;;  %v793_v13 = vadd.f32 %v2172_v41, %v722_v5  ;;  %v850_v14 = vmax.f32 %v786_v6, 0.0  ;;  %v851_v15 = vmax.f32 %v787_v7, 0.0 }
  0x75   :  { %v852_v16 = vmax.f32 %v788_v8, 0.0  ;;  %v853_v17 = vmax.f32 %v789_v9, 0.0  ;;  %v854_v18 = vmax.f32 %v790_v10, 0.0  ;;  %v855_v19 = vmax.f32 %v791_v11, 0.0 }
  0x76   :  { %v856_v20 = vmax.f32 %v792_v12, 0.0  ;;  %v857_v21 = vmax.f32 %v793_v13, 0.0  ;;  %v1436_v24 = vpack.c.bf16 %v850_v14, %v850_v14  ;;  %v1437_v25 = vpack.c.bf16 %v851_v15, %v851_v15 }
  0x77   :  { %v1438_v26 = vpack.c.bf16 %v852_v16, %v852_v16  ;;  %v1439_v27 = vpack.c.bf16 %v853_v17, %v853_v17  ;;  %v1440_v30 = vpack.c.bf16 %v854_v18, %v854_v18  ;;  %v1441_v31 = vpack.c.bf16 %v855_v19, %v855_v19 }
  0x78   :  { %v1442_v32 = vpack.c.bf16 %v856_v20, %v856_v20  ;;  %v1443_v33 = vpack.c.bf16 %v857_v21, %v857_v21  ;;  %1170 = vst.msk [vmem:[%s2647_s5 + $0xc0] sm:$0xf] %vm467_vm0, %v1436_v24  ;;  %1171 = vst.msk [vmem:[%s2647_s5 + $0xc4] sm:$0xf] %vm467_vm0, %v1437_v25  ;;  %v1698_v37 = vunpack.c.l.bf16 %v1767_v23  ;;  %v1699_v38 = vunpack.c.h.bf16 %v1767_v23 }
  0x79   :  { %1172 = vst.msk [vmem:[%s2647_s5 + $0xc8] sm:$0xf] %vm467_vm0, %v1438_v26  ;;  %1173 = vst.msk [vmem:[%s2647_s5 + $0xcc] sm:$0xf] %vm467_vm0, %v1439_v27  ;;  %v1702_v39 = vunpack.c.l.bf16 %v1768_v28  ;;  %v1703_v40 = vunpack.c.h.bf16 %v1768_v28  ;;  %v1706_v42 = vunpack.c.l.bf16 %v1769_v29  ;;  %v1707_v43 = vunpack.c.h.bf16 %v1769_v29 }
  0x7a   :  { %1174 = vst.msk [vmem:[%s2647_s5 + $0xd0] sm:$0xf] %vm467_vm0, %v1440_v30  ;;  %1175 = vst.msk [vmem:[%s2647_s5 + $0xd4] sm:$0xf] %vm467_vm0, %v1441_v31  ;;  %v723_v44 = vmul.f32 %v1694_v34, %v2135_v36  ;;  %v724_v45 = vmul.f32 %v1695_v35, %v2135_v36  ;;  %v725_v46 = vmul.f32 %v1698_v37, %v2135_v36 }
  0x7b   :  { %1176 = vst.msk [vmem:[%s2647_s5 + $0xd8] sm:$0xf] %vm467_vm0, %v1442_v32  ;;  %1177 = vst.msk [vmem:[%s2647_s5 + $0xdc] sm:$0xf] %vm467_vm0, %v1443_v33  ;;  %v726_v47 = vmul.f32 %v1699_v38, %v2135_v36  ;;  %v727_v48 = vmul.f32 %v1702_v39, %v2135_v36  ;;  %v728_v49 = vmul.f32 %v1703_v40, %v2135_v36 }
  0x7c   :  { %v729_v50 = vmul.f32 %v1706_v42, %v2135_v36  ;;  %v730_v51 = vmul.f32 %v1707_v43, %v2135_v36  ;;  %v794_v52 = vadd.f32 %v2172_v41, %v723_v44  ;;  %v795_v53 = vadd.f32 %v2172_v41, %v724_v45 }
  0x7d   :  { %v796_v54 = vadd.f32 %v2172_v41, %v725_v46  ;;  %v797_v55 = vadd.f32 %v2172_v41, %v726_v47  ;;  %v798_v56 = vadd.f32 %v2172_v41, %v727_v48  ;;  %v799_v57 = vadd.f32 %v2172_v41, %v728_v49 }
  0x7e   :  { %v800_v58 = vadd.f32 %v2172_v41, %v729_v50  ;;  %v801_v59 = vadd.f32 %v2172_v41, %v730_v51  ;;  %v858_v60 = vmax.f32 %v794_v52, 0.0  ;;  %v859_v61 = vmax.f32 %v795_v53, 0.0 }
  0x7f   :  { %v860_v62 = vmax.f32 %v796_v54, 0.0  ;;  %v861_v36 = vmax.f32 %v797_v55, 0.0  ;;  %v862_v63 = vmax.f32 %v798_v56, 0.0  ;;  %v863_v0 = vmax.f32 %v799_v57, 0.0 }
  0x80   :  { %v864_v1 = vmax.f32 %v800_v58, 0.0  ;;  %v865_v2 = vmax.f32 %v801_v59, 0.0  ;;  %v1444_v3 = vpack.c.bf16 %v858_v60, %v858_v60  ;;  %v1445_v4 = vpack.c.bf16 %v859_v61, %v859_v61 }
  0x81   :  { %v1446_v5 = vpack.c.bf16 %v860_v62, %v860_v62  ;;  %v1447_v6 = vpack.c.bf16 %v861_v36, %v861_v36  ;;  %v1448_v7 = vpack.c.bf16 %v862_v63, %v862_v63  ;;  %v1449_v8 = vpack.c.bf16 %v863_v0, %v863_v0 }
  0x82   :  { %v1450_v9 = vpack.c.bf16 %v864_v1, %v864_v1  ;;  %v1451_v10 = vpack.c.bf16 %v865_v2, %v865_v2  ;;  %1178 = vst.msk [vmem:[%s2647_s5 + $0xe0] sm:$0xf] %vm467_vm0, %v1444_v3  ;;  %1179 = vst.msk [vmem:[%s2647_s5 + $0xe4] sm:$0xf] %vm467_vm0, %v1445_v4 }
  0x83   :  { %1180 = vst.msk [vmem:[%s2647_s5 + $0xe8] sm:$0xf] %vm467_vm0, %v1446_v5  ;;  %1181 = vst.msk [vmem:[%s2647_s5 + $0xec] sm:$0xf] %vm467_vm0, %v1447_v6 }
  0x84   :  { %1182 = vst.msk [vmem:[%s2647_s5 + $0xf0] sm:$0xf] %vm467_vm0, %v1448_v7  ;;  %1183 = vst.msk [vmem:[%s2647_s5 + $0xf4] sm:$0xf] %vm467_vm0, %v1449_v8 }
  0x85   :  { %1184 = vst.msk [vmem:[%s2647_s5 + $0xf8] sm:$0xf] %vm467_vm0, %v1450_v9  ;;  %1185 = vst.msk [vmem:[%s2647_s5 + $0xfc] sm:$0xf] %vm467_vm0, %v1451_v10 }

// kernel: _lambda_.21
= control target key start
LH: loop header
LB: loop body
LE: loop exit
PB: predicated region body
PF: predicated region fallthrough
CT: control target
= control target key end

     0   :  { %v2083_v0 = vmov 0   ;;  %s2541_s1 = inlined_call_operand.vmem [shape: bf16[256,128], index: 1, kind: input, shape index: {}]   ;;  %s2542_s0 = inlined_call_operand.vmem [shape: bf16[512,256], index: 0, kind: input, shape index: {}]   ;;  %s2543_s2 = inlined_call_operand.vmem [shape: f32[1,128], index: 2, kind: input, shape index: {}]   ;;  %s2544_s3 = inlined_call_operand.vmem [shape: bf16[512,128], index: 3, kind: output, shape index: {}]  }
   0x1   :  { %659 = vmatprep.subr.bf16.mxu0 %v2083_v0  ;;  %1938 = vmatprep.subr.bf16.mxu1 %v2083_v0  ;;  %v1971_v1 = vld [vmem:[%s2541_s1 + $0x38] sm:$0xff]   ;;  %v1972_v2 = vld [vmem:[%s2541_s1 + $0x30] sm:$0xff]   ;;  %v1973_v3 = vld [vmem:[%s2541_s1 + $0x28] sm:$0xff]  }
   0x2   :  { %660 = vmatpush1.bf16.msra.mxu0 %v1971_v1  ;;  %1954 = vmatpush1.bf16.msra.mxu1 %v1971_v1  ;;  %v1974_v4 = vld [vmem:[%s2541_s1 + $0x20] sm:$0xff]   ;;  %v1975_v5 = vld [vmem:[%s2541_s1 + $0x18] sm:$0xff]   ;;  %v1976_v7 = vld [vmem:[%s2541_s1 + $0x10] sm:$0xff]  }
   0x3   :  { %661 = vmatprep.subr.bf16.mxu0 %v2083_v0  ;;  %1939 = vmatprep.subr.bf16.mxu1 %v2083_v0  ;;  %v1989_v6 = vld [vmem:[%s2542_s0 + $0x4] ss:$8 sps:$4 sm:$0xff]   ;;  %v1979_v11 = vld [vmem:[%s2541_s1 + $0x78] sm:$0xff]   ;;  %v1980_v12 = vld [vmem:[%s2541_s1 + $0x70] sm:$0xff]  }
   0x4   :  { %v1992_v8 = vld [vmem:[%s2542_s0 + $0x104] ss:$8 sps:$4 sm:$0xff]   ;;  %691 = vmatprep.mubr.bf16.mxu0 %v1989_v6  ;;  %v1983_v15 = vld [vmem:[%s2541_s1 + $0x58] sm:$0xff]   ;;  %v1984_v16 = vld [vmem:[%s2541_s1 + $0x50] sm:$0xff]  }
   0x5   :  { %819 = vmatprep.mubr.bf16.mxu1 %v1992_v8  ;;  %v1977_v9 = vld [vmem:[%s2541_s1 + $0x8] sm:$0xff]   ;;  %v1978_v10 = vld [vmem:[%s2541_s1] sm:$0xff]   ;;  %v1993_v21 = vld [vmem:[%s2542_s0 + $0x14] ss:$8 sps:$4 sm:$0xff]  }
   0x6   :  { %662 = vmatpush1.bf16.msra.mxu0 %v1972_v2  ;;  %1955 = vmatpush1.bf16.msra.mxu1 %v1972_v2  ;;  %v1981_v13 = vld [vmem:[%s2541_s1 + $0x68] sm:$0xff]   ;;  %v1982_v14 = vld [vmem:[%s2541_s1 + $0x60] sm:$0xff]   ;;  %v1995_v22 = vld [vmem:[%s2542_s0 + $0x114] ss:$8 sps:$4 sm:$0xff]  }
   0x7   :  { %663 = vmatprep.subr.bf16.mxu0 %v2083_v0  ;;  %1940 = vmatprep.subr.bf16.mxu1 %v2083_v0  ;;  %v1985_v17 = vld [vmem:[%s2541_s1 + $0x48] sm:$0xff]   ;;  %v1986_v18 = vld [vmem:[%s2541_s1 + $0x40] sm:$0xff]   ;;  %v1997_v23 = vld [vmem:[%s2542_s0 + $0x10] ss:$8 sps:$4 sm:$0xff]  }
   0x8   :  { %v1987_v19 = vld [vmem:[%s2542_s0] ss:$8 sps:$4 sm:$0xff]   ;;  %v1998_v24 = vld [vmem:[%s2542_s0 + $0x110] ss:$8 sps:$4 sm:$0xff]   ;;  %v1999_v25 = vld [vmem:[%s2542_s0 + $0x24] ss:$8 sps:$4 sm:$0xff]  }
   0x9   :  { %v1990_v20 = vld [vmem:[%s2542_s0 + $0x100] ss:$8 sps:$4 sm:$0xff]   ;;  %v2001_v26 = vld [vmem:[%s2542_s0 + $0x124] ss:$8 sps:$4 sm:$0xff]   ;;  %v2005_v29 = vld [vmem:[%s2542_s0 + $0x34] ss:$8 sps:$4 sm:$0xff]  }
   0xa   :  { %664 = vmatpush1.bf16.msra.mxu0 %v1973_v3  ;;  %1956 = vmatpush1.bf16.msra.mxu1 %v1973_v3  ;;  %v2003_v27 = vld [vmem:[%s2542_s0 + $0x20] ss:$8 sps:$4 sm:$0xff]   ;;  %v2007_v30 = vld [vmem:[%s2542_s0 + $0x134] ss:$8 sps:$4 sm:$0xff]   ;;  %v2009_v31 = vld [vmem:[%s2542_s0 + $0x30] ss:$8 sps:$4 sm:$0xff]  }
   0xb   :  { %665 = vmatprep.subr.bf16.mxu0 %v2083_v0  ;;  %1941 = vmatprep.subr.bf16.mxu1 %v2083_v0  ;;  %v2004_v28 = vld [vmem:[%s2542_s0 + $0x120] ss:$8 sps:$4 sm:$0xff]   ;;  %v2010_v32 = vld [vmem:[%s2542_s0 + $0x130] ss:$8 sps:$4 sm:$0xff]   ;;  %v2011_v33 = vld [vmem:[%s2542_s0 + $0x44] ss:$8 sps:$4 sm:$0xff]  }
   0xc   :  { %v2013_v34 = vld [vmem:[%s2542_s0 + $0x144] ss:$8 sps:$4 sm:$0xff]   ;;  %v2015_v35 = vld [vmem:[%s2542_s0 + $0x40] ss:$8 sps:$4 sm:$0xff]   ;;  %v2017_v37 = vld [vmem:[%s2542_s0 + $0x54] ss:$8 sps:$4 sm:$0xff]  }
   0xd   :  { %v2016_v36 = vld [vmem:[%s2542_s0 + $0x140] ss:$8 sps:$4 sm:$0xff]   ;;  %v2019_v38 = vld [vmem:[%s2542_s0 + $0x154] ss:$8 sps:$4 sm:$0xff]   ;;  %v2021_v39 = vld [vmem:[%s2542_s0 + $0x50] ss:$8 sps:$4 sm:$0xff]  }
   0xe   :  { %666 = vmatpush1.bf16.msra.mxu0 %v1974_v4  ;;  %1957 = vmatpush1.bf16.msra.mxu1 %v1974_v4  ;;  %v2022_v40 = vld [vmem:[%s2542_s0 + $0x150] ss:$8 sps:$4 sm:$0xff]   ;;  %v2023_v41 = vld [vmem:[%s2542_s0 + $0x64] ss:$8 sps:$4 sm:$0xff]   ;;  %v2027_v43 = vld [vmem:[%s2542_s0 + $0x60] ss:$8 sps:$4 sm:$0xff]  }
   0xf   :  { %667 = vmatprep.subr.bf16.mxu0 %v2083_v0  ;;  %1942 = vmatprep.subr.bf16.mxu1 %v2083_v0  ;;  %v2025_v42 = vld [vmem:[%s2542_s0 + $0x164] ss:$8 sps:$4 sm:$0xff]   ;;  %v2028_v44 = vld [vmem:[%s2542_s0 + $0x160] ss:$8 sps:$4 sm:$0xff]   ;;  %v2029_v45 = vld [vmem:[%s2542_s0 + $0x74] ss:$8 sps:$4 sm:$0xff]  }
  0x10   :  { %v2031_v46 = vld [vmem:[%s2542_s0 + $0x174] ss:$8 sps:$4 sm:$0xff]   ;;  %v2033_v47 = vld [vmem:[%s2542_s0 + $0x70] ss:$8 sps:$4 sm:$0xff]   ;;  %v2035_v49 = vld [vmem:[%s2542_s0 + $0x84] ss:$8 sps:$4 sm:$0xff]  }
  0x11   :  { %v2034_v48 = vld [vmem:[%s2542_s0 + $0x170] ss:$8 sps:$4 sm:$0xff]   ;;  %v2037_v50 = vld [vmem:[%s2542_s0 + $0x184] ss:$8 sps:$4 sm:$0xff]   ;;  %v2039_v51 = vld [vmem:[%s2542_s0 + $0x80] ss:$8 sps:$4 sm:$0xff]  }
  0x12   :  { %668 = vmatpush1.bf16.msra.mxu0 %v1975_v5  ;;  %1958 = vmatpush1.bf16.msra.mxu1 %v1975_v5  ;;  %v2040_v52 = vld [vmem:[%s2542_s0 + $0x180] ss:$8 sps:$4 sm:$0xff]   ;;  %v2041_v53 = vld [vmem:[%s2542_s0 + $0x94] ss:$8 sps:$4 sm:$0xff]   ;;  %v2045_v55 = vld [vmem:[%s2542_s0 + $0x90] ss:$8 sps:$4 sm:$0xff]  }
  0x13   :  { %669 = vmatprep.subr.bf16.mxu0 %v2083_v0  ;;  %1943 = vmatprep.subr.bf16.mxu1 %v2083_v0  ;;  %v2043_v54 = vld [vmem:[%s2542_s0 + $0x194] ss:$8 sps:$4 sm:$0xff]   ;;  %v2046_v56 = vld [vmem:[%s2542_s0 + $0x190] ss:$8 sps:$4 sm:$0xff]   ;;  %v2047_v57 = vld [vmem:[%s2542_s0 + $0xa4] ss:$8 sps:$4 sm:$0xff]  }
  0x14   :  { %v2049_v58 = vld [vmem:[%s2542_s0 + $0x1a4] ss:$8 sps:$4 sm:$0xff]   ;;  %v2051_v59 = vld [vmem:[%s2542_s0 + $0xa0] ss:$8 sps:$4 sm:$0xff]   ;;  %v2053_v61 = vld [vmem:[%s2542_s0 + $0xb4] ss:$8 sps:$4 sm:$0xff]  }
  0x15   :  { %v2052_v60 = vld [vmem:[%s2542_s0 + $0x1a0] ss:$8 sps:$4 sm:$0xff]   ;;  %v2055_v62 = vld [vmem:[%s2542_s0 + $0x1b4] ss:$8 sps:$4 sm:$0xff]   ;;  %v2057_v63 = vld [vmem:[%s2542_s0 + $0xb0] ss:$8 sps:$4 sm:$0xff]  }
  0x16   :  { %670 = vmatpush1.bf16.msra.mxu0 %v1976_v7  ;;  %1959 = vmatpush1.bf16.msra.mxu1 %v1976_v7  ;;  %v2059_v1 = vld [vmem:[%s2542_s0 + $0xc4] ss:$8 sps:$4 sm:$0xff]   ;;  %v2063_v3 = vld [vmem:[%s2542_s0 + $0xc0] ss:$8 sps:$4 sm:$0xff]   ;;  %v2065_v5 = vld [vmem:[%s2542_s0 + $0xd4] ss:$8 sps:$4 sm:$0xff]  }
  0x17   :  { %671 = vmatprep.subr.bf16.mxu0 %v2083_v0  ;;  %1944 = vmatprep.subr.bf16.mxu1 %v2083_v0  ;;  %v2061_v2 = vld [vmem:[%s2542_s0 + $0x1c4] ss:$8 sps:$4 sm:$0xff]   ;;  %v2064_v4 = vld [vmem:[%s2542_s0 + $0x1c0] ss:$8 sps:$4 sm:$0xff]   ;;  %v2067_v6 = vld [vmem:[%s2542_s0 + $0x1d4] ss:$8 sps:$4 sm:$0xff]  }
  0x18   :  { %v2069_v7 = vld [vmem:[%s2542_s0 + $0xd0] ss:$8 sps:$4 sm:$0xff]  }
  0x19   :  { %v2070_v8 = vld [vmem:[%s2542_s0 + $0x1d0] ss:$8 sps:$4 sm:$0xff]  }
  0x1a   :  { %672 = vmatpush1.bf16.msra.mxu0 %v1977_v9  ;;  %1960 = vmatpush1.bf16.msra.mxu1 %v1977_v9  ;;  %v2071_v9 = vld [vmem:[%s2542_s0 + $0xe4] ss:$8 sps:$4 sm:$0xff]  }
  0x1b   :  { %673 = vmatprep.subr.bf16.mxu0 %v2083_v0  ;;  %1945 = vmatprep.subr.bf16.mxu1 %v2083_v0 }
  0x1e   :  { %674 = vmatpush1.bf16.msra.mxu0 %v1978_v10  ;;  %1961 = vmatpush1.bf16.msra.mxu1 %v1978_v10  ;;  %v2073_v10 = vld [vmem:[%s2542_s0 + $0x1e4] ss:$8 sps:$4 sm:$0xff]  }
  0x1f   :  { %675 = vmatprep.subr.bf16.mxu0 %v2083_v0  ;;  %1946 = vmatprep.subr.bf16.mxu1 %v2083_v0 }
  0x22   :  { %676 = vmatpush2.bf16.msra.mxu0 %v1979_v11  ;;  %1962 = vmatpush2.bf16.msra.mxu1 %v1979_v11  ;;  %v2075_v11 = vld [vmem:[%s2542_s0 + $0xe0] ss:$8 sps:$4 sm:$0xff]  }
  0x23   :  { %677 = vmatprep.subr.bf16.mxu0 %v2083_v0  ;;  %1947 = vmatprep.subr.bf16.mxu1 %v2083_v0 }
  0x26   :  { %678 = vmatpush2.bf16.msra.mxu0 %v1980_v12  ;;  %1963 = vmatpush2.bf16.msra.mxu1 %v1980_v12  ;;  %v2076_v12 = vld [vmem:[%s2542_s0 + $0x1e0] ss:$8 sps:$4 sm:$0xff]  }
  0x27   :  { %679 = vmatprep.subr.bf16.mxu0 %v2083_v0  ;;  %1948 = vmatprep.subr.bf16.mxu1 %v2083_v0 }
  0x2a   :  { %680 = vmatpush2.bf16.msra.mxu0 %v1981_v13  ;;  %1964 = vmatpush2.bf16.msra.mxu1 %v1981_v13  ;;  %v2077_v13 = vld [vmem:[%s2542_s0 + $0xf4] ss:$8 sps:$4 sm:$0xff]  }
  0x2b   :  { %681 = vmatprep.subr.bf16.mxu0 %v2083_v0  ;;  %1949 = vmatprep.subr.bf16.mxu1 %v2083_v0 }
  0x2e   :  { %682 = vmatpush2.bf16.msra.mxu0 %v1982_v14  ;;  %1965 = vmatpush2.bf16.msra.mxu1 %v1982_v14  ;;  %v2079_v14 = vld [vmem:[%s2542_s0 + $0x1f4] ss:$8 sps:$4 sm:$0xff]  }
  0x2f   :  { %683 = vmatprep.subr.bf16.mxu0 %v2083_v0  ;;  %1950 = vmatprep.subr.bf16.mxu1 %v2083_v0 }
  0x32   :  { %684 = vmatpush2.bf16.msra.mxu0 %v1983_v15  ;;  %1966 = vmatpush2.bf16.msra.mxu1 %v1983_v15  ;;  %v2081_v15 = vld [vmem:[%s2542_s0 + $0xf0] ss:$8 sps:$4 sm:$0xff]  }
  0x33   :  { %685 = vmatprep.subr.bf16.mxu0 %v2083_v0  ;;  %1951 = vmatprep.subr.bf16.mxu1 %v2083_v0 }
  0x36   :  { %686 = vmatpush2.bf16.msra.mxu0 %v1984_v16  ;;  %1967 = vmatpush2.bf16.msra.mxu1 %v1984_v16  ;;  %v2082_v16 = vld [vmem:[%s2542_s0 + $0x1f0] ss:$8 sps:$4 sm:$0xff]  }
  0x37   :  { %687 = vmatprep.subr.bf16.mxu0 %v2083_v0  ;;  %1952 = vmatprep.subr.bf16.mxu1 %v2083_v0 }
  0x3a   :  { %688 = vmatpush2.bf16.msra.mxu0 %v1985_v17  ;;  %1968 = vmatpush2.bf16.msra.mxu1 %v1985_v17 }
  0x3b   :  { %689 = vmatprep.subr.bf16.mxu0 %v2083_v0  ;;  %1953 = vmatprep.subr.bf16.mxu1 %v2083_v0  ;;  %v2058_v0 = vld [vmem:[%s2542_s0 + $0x1b0] ss:$8 sps:$4 sm:$0xff]  }
  0x3e   :  { %690 = vmatpush2.bf16.msra.mxu0 %v1986_v18  ;;  %1969 = vmatpush2.bf16.msra.mxu1 %v1986_v18 }
  0x41   :  { %692 = vmatmul.mubr.bf16.vlgmr.msra.gmra.mxu0 %v1987_v19  ;;  %820 = vmatmul.mubr.bf16.vlgmr.msra.gmra.mxu1 %v1990_v20  ;;  %v2379_v19 = vld [vmem:[%s2543_s2] ss:$0 sm:$0xff] }
  0x42   :  { %699 = vmatprep.mubr.bf16.mxu0 %v1993_v21  ;;  %827 = vmatprep.mubr.bf16.mxu1 %v1995_v22 }
  0x49   :  { %700 = vmatmul.mubr.bf16.gmra.mxu0 %v1997_v23  ;;  %828 = vmatmul.mubr.bf16.gmra.mxu1 %v1998_v24 }
  0x4a   :  { %707 = vmatprep.mubr.bf16.mxu0 %v1999_v25  ;;  %835 = vmatprep.mubr.bf16.mxu1 %v2001_v26 }
  0x51   :  { %708 = vmatmul.mubr.bf16.gmra.mxu0 %v2003_v27  ;;  %836 = vmatmul.mubr.bf16.gmra.mxu1 %v2004_v28 }
  0x52   :  { %715 = vmatprep.mubr.bf16.mxu0 %v2005_v29  ;;  %843 = vmatprep.mubr.bf16.mxu1 %v2007_v30 }
  0x59   :  { %716 = vmatmul.mubr.bf16.gmra.mxu0 %v2009_v31  ;;  %844 = vmatmul.mubr.bf16.gmra.mxu1 %v2010_v32 }
  0x5a   :  { %723 = vmatprep.mubr.bf16.mxu0 %v2011_v33  ;;  %851 = vmatprep.mubr.bf16.mxu1 %v2013_v34 }
  0x61   :  { %724 = vmatmul.mubr.bf16.gmra.mxu0 %v2015_v35  ;;  %852 = vmatmul.mubr.bf16.gmra.mxu1 %v2016_v36 }
  0x62   :  { %731 = vmatprep.mubr.bf16.mxu0 %v2017_v37  ;;  %859 = vmatprep.mubr.bf16.mxu1 %v2019_v38 }
  0x69   :  { %732 = vmatmul.mubr.bf16.gmra.mxu0 %v2021_v39  ;;  %860 = vmatmul.mubr.bf16.gmra.mxu1 %v2022_v40 }
  0x6a   :  { %739 = vmatprep.mubr.bf16.mxu0 %v2023_v41  ;;  %867 = vmatprep.mubr.bf16.mxu1 %v2025_v42 }
  0x71   :  { %740 = vmatmul.mubr.bf16.gmra.mxu0 %v2027_v43  ;;  %868 = vmatmul.mubr.bf16.gmra.mxu1 %v2028_v44 }
  0x72   :  { %747 = vmatprep.mubr.bf16.mxu0 %v2029_v45  ;;  %875 = vmatprep.mubr.bf16.mxu1 %v2031_v46 }
  0x79   :  { %748 = vmatmul.mubr.bf16.gmra.mxu0 %v2033_v47  ;;  %876 = vmatmul.mubr.bf16.gmra.mxu1 %v2034_v48 }
  0x7a   :  { %755 = vmatprep.mubr.bf16.mxu0 %v2035_v49  ;;  %883 = vmatprep.mubr.bf16.mxu1 %v2037_v50 }
  0x81   :  { %756 = vmatmul.mubr.bf16.gmra.mxu0 %v2039_v51  ;;  %884 = vmatmul.mubr.bf16.gmra.mxu1 %v2040_v52 }
  0x82   :  { %763 = vmatprep.mubr.bf16.mxu0 %v2041_v53  ;;  %891 = vmatprep.mubr.bf16.mxu1 %v2043_v54 }
  0x89   :  { %764 = vmatmul.mubr.bf16.gmra.mxu0 %v2045_v55  ;;  %892 = vmatmul.mubr.bf16.gmra.mxu1 %v2046_v56 }
  0x8a   :  { %771 = vmatprep.mubr.bf16.mxu0 %v2047_v57  ;;  %899 = vmatprep.mubr.bf16.mxu1 %v2049_v58 }
  0x91   :  { %772 = vmatmul.mubr.bf16.gmra.mxu0 %v2051_v59  ;;  %900 = vmatmul.mubr.bf16.gmra.mxu1 %v2052_v60 }
  0x92   :  { %779 = vmatprep.mubr.bf16.mxu0 %v2053_v61  ;;  %907 = vmatprep.mubr.bf16.mxu1 %v2055_v62 }
  0x99   :  { %780 = vmatmul.mubr.bf16.gmra.mxu0 %v2057_v63  ;;  %908 = vmatmul.mubr.bf16.gmra.mxu1 %v2058_v0 }
  0x9a   :  { %787 = vmatprep.mubr.bf16.mxu0 %v2059_v1  ;;  %915 = vmatprep.mubr.bf16.mxu1 %v2061_v2 }
  0xa1   :  { %788 = vmatmul.mubr.bf16.gmra.mxu0 %v2063_v3  ;;  %916 = vmatmul.mubr.bf16.gmra.mxu1 %v2064_v4 }
  0xa2   :  { %795 = vmatprep.mubr.bf16.mxu0 %v2065_v5  ;;  %923 = vmatprep.mubr.bf16.mxu1 %v2067_v6 }
  0xa9   :  { %796 = vmatmul.mubr.bf16.gmra.mxu0 %v2069_v7  ;;  %924 = vmatmul.mubr.bf16.gmra.mxu1 %v2070_v8 }
  0xaa   :  { %803 = vmatprep.mubr.bf16.mxu0 %v2071_v9  ;;  %931 = vmatprep.mubr.bf16.mxu1 %v2073_v10 }
  0xb1   :  { %804 = vmatmul.mubr.bf16.gmra.mxu0 %v2075_v11  ;;  %932 = vmatmul.mubr.bf16.gmra.mxu1 %v2076_v12 }
  0xb2   :  { %811 = vmatprep.mubr.bf16.mxu0 %v2077_v13  ;;  %939 = vmatprep.mubr.bf16.mxu1 %v2079_v14 }
  0xb9   :  { %812 = vmatmul.mubr.bf16.gmra.mxu0 %v2081_v15  ;;  %940 = vmatmul.mubr.bf16.gmra.mxu1 %v2082_v16 }
 0x101   :  { %v693_v17 = vpop.f32.mrf.mxu0  ;;  %v821_v18 = vpop.f32.mrf.mxu1 }
 0x102   :  { %v1150_v24 = vadd.f32 %v2379_v19, %v693_v17  ;;  %v1182_v25 = vadd.f32 %v2379_v19, %v821_v18 }
 0x103   :  { %v695_v20 = vpop.f32.mrf.mxu0  ;;  %v823_v21 = vpop.f32.mrf.mxu1 }
 0x105   :  { %v696_v22 = vpop.f32.mrf.mxu0  ;;  %v824_v23 = vpop.f32.mrf.mxu1 }
 0x106   :  { %v1151_v26 = vadd.f32 %v2379_v19, %v696_v22  ;;  %v1183_v27 = vadd.f32 %v2379_v19, %v824_v23 }
 0x107   :  { %v698_v28 = vpop.f32.mrf.mxu0  ;;  %v826_v29 = vpop.f32.mrf.mxu1 }
 0x108   :  { %v1750_v30 = vpack.c.bf16 %v1151_v26, %v1150_v24  ;;  %v1830_v31 = vpack.c.bf16 %v1183_v27, %v1182_v25 }
 0x109   :  { %v701_v32 = vpop.f32.mrf.mxu0  ;;  %v829_v33 = vpop.f32.mrf.mxu1 }
 0x10a   :  { %1751 = vst [vmem:[%s2544_s3] sm:$0xff] %v1750_v30   ;;  %1922 = vst [vmem:[%s2544_s3 + $0x80] sm:$0xff] %v1830_v31   ;;  %v1152_v38 = vadd.f32 %v2379_v19, %v701_v32  ;;  %v1184_v39 = vadd.f32 %v2379_v19, %v829_v33 }
 0x10b   :  { %v703_v34 = vpop.f32.mrf.mxu0  ;;  %v831_v35 = vpop.f32.mrf.mxu1 }
 0x10d   :  { %v704_v36 = vpop.f32.mrf.mxu0  ;;  %v832_v37 = vpop.f32.mrf.mxu1 }
 0x10e   :  { %v1153_v40 = vadd.f32 %v2379_v19, %v704_v36  ;;  %v1185_v41 = vadd.f32 %v2379_v19, %v832_v37 }
 0x10f   :  { %v706_v42 = vpop.f32.mrf.mxu0  ;;  %v834_v43 = vpop.f32.mrf.mxu1 }
 0x110   :  { %v1755_v44 = vpack.c.bf16 %v1153_v40, %v1152_v38  ;;  %v1835_v45 = vpack.c.bf16 %v1185_v41, %v1184_v39 }
 0x111   :  { %v709_v46 = vpop.f32.mrf.mxu0  ;;  %v837_v47 = vpop.f32.mrf.mxu1 }
 0x112   :  { %1907 = vst [vmem:[%s2544_s3 + $0x8] sm:$0xff] %v1755_v44   ;;  %1923 = vst [vmem:[%s2544_s3 + $0x88] sm:$0xff] %v1835_v45   ;;  %v1154_v52 = vadd.f32 %v2379_v19, %v709_v46  ;;  %v1186_v53 = vadd.f32 %v2379_v19, %v837_v47 }
 0x113   :  { %v711_v48 = vpop.f32.mrf.mxu0  ;;  %v839_v49 = vpop.f32.mrf.mxu1 }
 0x115   :  { %v712_v50 = vpop.f32.mrf.mxu0  ;;  %v840_v51 = vpop.f32.mrf.mxu1 }
 0x116   :  { %v1155_v54 = vadd.f32 %v2379_v19, %v712_v50  ;;  %v1187_v55 = vadd.f32 %v2379_v19, %v840_v51 }
 0x117   :  { %v714_v56 = vpop.f32.mrf.mxu0  ;;  %v842_v57 = vpop.f32.mrf.mxu1 }
 0x118   :  { %v1760_v58 = vpack.c.bf16 %v1155_v54, %v1154_v52  ;;  %v1840_v59 = vpack.c.bf16 %v1187_v55, %v1186_v53 }
 0x119   :  { %v717_v60 = vpop.f32.mrf.mxu0  ;;  %v845_v61 = vpop.f32.mrf.mxu1 }
 0x11a   :  { %1908 = vst [vmem:[%s2544_s3 + $0x10] sm:$0xff] %v1760_v58   ;;  %1924 = vst [vmem:[%s2544_s3 + $0x90] sm:$0xff] %v1840_v59   ;;  %v1156_v2 = vadd.f32 %v2379_v19, %v717_v60  ;;  %v1188_v3 = vadd.f32 %v2379_v19, %v845_v61 }
 0x11b   :  { %v719_v62 = vpop.f32.mrf.mxu0  ;;  %v847_v63 = vpop.f32.mrf.mxu1 }
 0x11d   :  { %v720_v0 = vpop.f32.mrf.mxu0  ;;  %v848_v1 = vpop.f32.mrf.mxu1 }
 0x11e   :  { %v1157_v4 = vadd.f32 %v2379_v19, %v720_v0  ;;  %v1189_v5 = vadd.f32 %v2379_v19, %v848_v1 }
 0x11f   :  { %v722_v6 = vpop.f32.mrf.mxu0  ;;  %v850_v7 = vpop.f32.mrf.mxu1 }
 0x120   :  { %v1765_v8 = vpack.c.bf16 %v1157_v4, %v1156_v2  ;;  %v1845_v9 = vpack.c.bf16 %v1189_v5, %v1188_v3 }
 0x121   :  { %v725_v10 = vpop.f32.mrf.mxu0  ;;  %v853_v11 = vpop.f32.mrf.mxu1 }
 0x122   :  { %1909 = vst [vmem:[%s2544_s3 + $0x18] sm:$0xff] %v1765_v8   ;;  %1925 = vst [vmem:[%s2544_s3 + $0x98] sm:$0xff] %v1845_v9   ;;  %v1158_v16 = vadd.f32 %v2379_v19, %v725_v10  ;;  %v1190_v17 = vadd.f32 %v2379_v19, %v853_v11 }
 0x123   :  { %v727_v12 = vpop.f32.mrf.mxu0  ;;  %v855_v13 = vpop.f32.mrf.mxu1 }
 0x125   :  { %v728_v14 = vpop.f32.mrf.mxu0  ;;  %v856_v15 = vpop.f32.mrf.mxu1 }
 0x126   :  { %v1159_v18 = vadd.f32 %v2379_v19, %v728_v14  ;;  %v1191_v20 = vadd.f32 %v2379_v19, %v856_v15 }
 0x127   :  { %v730_v21 = vpop.f32.mrf.mxu0  ;;  %v858_v22 = vpop.f32.mrf.mxu1 }
 0x128   :  { %v1770_v23 = vpack.c.bf16 %v1159_v18, %v1158_v16  ;;  %v1850_v24 = vpack.c.bf16 %v1191_v20, %v1190_v17 }
 0x129   :  { %v733_v25 = vpop.f32.mrf.mxu0  ;;  %v861_v26 = vpop.f32.mrf.mxu1 }
 0x12a   :  { %1910 = vst [vmem:[%s2544_s3 + $0x20] sm:$0xff] %v1770_v23   ;;  %1926 = vst [vmem:[%s2544_s3 + $0xa0] sm:$0xff] %v1850_v24   ;;  %v1160_v31 = vadd.f32 %v2379_v19, %v733_v25  ;;  %v1192_v32 = vadd.f32 %v2379_v19, %v861_v26 }
 0x12b   :  { %v735_v27 = vpop.f32.mrf.mxu0  ;;  %v863_v28 = vpop.f32.mrf.mxu1 }
 0x12d   :  { %v736_v29 = vpop.f32.mrf.mxu0  ;;  %v864_v30 = vpop.f32.mrf.mxu1 }
 0x12e   :  { %v1161_v33 = vadd.f32 %v2379_v19, %v736_v29  ;;  %v1193_v34 = vadd.f32 %v2379_v19, %v864_v30 }
 0x12f   :  { %v738_v35 = vpop.f32.mrf.mxu0  ;;  %v866_v36 = vpop.f32.mrf.mxu1 }
 0x130   :  { %v1775_v37 = vpack.c.bf16 %v1161_v33, %v1160_v31  ;;  %v1855_v38 = vpack.c.bf16 %v1193_v34, %v1192_v32 }
 0x131   :  { %v741_v39 = vpop.f32.mrf.mxu0  ;;  %v869_v40 = vpop.f32.mrf.mxu1 }
 0x132   :  { %1911 = vst [vmem:[%s2544_s3 + $0x28] sm:$0xff] %v1775_v37   ;;  %1927 = vst [vmem:[%s2544_s3 + $0xa8] sm:$0xff] %v1855_v38   ;;  %v1162_v45 = vadd.f32 %v2379_v19, %v741_v39  ;;  %v1194_v46 = vadd.f32 %v2379_v19, %v869_v40 }
 0x133   :  { %v743_v41 = vpop.f32.mrf.mxu0  ;;  %v871_v42 = vpop.f32.mrf.mxu1 }
 0x135   :  { %v744_v43 = vpop.f32.mrf.mxu0  ;;  %v872_v44 = vpop.f32.mrf.mxu1 }
 0x136   :  { %v1163_v47 = vadd.f32 %v2379_v19, %v744_v43  ;;  %v1195_v48 = vadd.f32 %v2379_v19, %v872_v44 }
 0x137   :  { %v746_v49 = vpop.f32.mrf.mxu0  ;;  %v874_v50 = vpop.f32.mrf.mxu1 }
 0x138   :  { %v1780_v51 = vpack.c.bf16 %v1163_v47, %v1162_v45  ;;  %v1860_v52 = vpack.c.bf16 %v1195_v48, %v1194_v46 }
 0x139   :  { %v749_v53 = vpop.f32.mrf.mxu0  ;;  %v877_v54 = vpop.f32.mrf.mxu1 }
 0x13a   :  { %1912 = vst [vmem:[%s2544_s3 + $0x30] sm:$0xff] %v1780_v51   ;;  %1928 = vst [vmem:[%s2544_s3 + $0xb0] sm:$0xff] %v1860_v52   ;;  %v1164_v59 = vadd.f32 %v2379_v19, %v749_v53  ;;  %v1196_v60 = vadd.f32 %v2379_v19, %v877_v54 }
 0x13b   :  { %v751_v55 = vpop.f32.mrf.mxu0  ;;  %v879_v56 = vpop.f32.mrf.mxu1 }
 0x13d   :  { %v752_v57 = vpop.f32.mrf.mxu0  ;;  %v880_v58 = vpop.f32.mrf.mxu1 }
 0x13e   :  { %v1165_v61 = vadd.f32 %v2379_v19, %v752_v57  ;;  %v1197_v62 = vadd.f32 %v2379_v19, %v880_v58 }
 0x13f   :  { %v754_v63 = vpop.f32.mrf.mxu0  ;;  %v882_v0 = vpop.f32.mrf.mxu1 }
 0x140   :  { %v1785_v1 = vpack.c.bf16 %v1165_v61, %v1164_v59  ;;  %v1865_v2 = vpack.c.bf16 %v1197_v62, %v1196_v60 }
 0x141   :  { %v757_v3 = vpop.f32.mrf.mxu0  ;;  %v885_v4 = vpop.f32.mrf.mxu1 }
 0x142   :  { %1913 = vst [vmem:[%s2544_s3 + $0x38] sm:$0xff] %v1785_v1   ;;  %1929 = vst [vmem:[%s2544_s3 + $0xb8] sm:$0xff] %v1865_v2   ;;  %v1166_v9 = vadd.f32 %v2379_v19, %v757_v3  ;;  %v1198_v10 = vadd.f32 %v2379_v19, %v885_v4 }
 0x143   :  { %v759_v5 = vpop.f32.mrf.mxu0  ;;  %v887_v6 = vpop.f32.mrf.mxu1 }
 0x145   :  { %v760_v7 = vpop.f32.mrf.mxu0  ;;  %v888_v8 = vpop.f32.mrf.mxu1 }
 0x146   :  { %v1167_v11 = vadd.f32 %v2379_v19, %v760_v7  ;;  %v1199_v12 = vadd.f32 %v2379_v19, %v888_v8 }
 0x147   :  { %v762_v13 = vpop.f32.mrf.mxu0  ;;  %v890_v14 = vpop.f32.mrf.mxu1 }
 0x148   :  { %v1790_v15 = vpack.c.bf16 %v1167_v11, %v1166_v9  ;;  %v1870_v16 = vpack.c.bf16 %v1199_v12, %v1198_v10 }
 0x149   :  { %v765_v17 = vpop.f32.mrf.mxu0  ;;  %v893_v18 = vpop.f32.mrf.mxu1 }
 0x14a   :  { %1914 = vst [vmem:[%s2544_s3 + $0x40] sm:$0xff] %v1790_v15   ;;  %1930 = vst [vmem:[%s2544_s3 + $0xc0] sm:$0xff] %v1870_v16   ;;  %v1168_v24 = vadd.f32 %v2379_v19, %v765_v17  ;;  %v1200_v25 = vadd.f32 %v2379_v19, %v893_v18 }
 0x14b   :  { %v767_v20 = vpop.f32.mrf.mxu0  ;;  %v895_v21 = vpop.f32.mrf.mxu1 }
 0x14d   :  { %v768_v22 = vpop.f32.mrf.mxu0  ;;  %v896_v23 = vpop.f32.mrf.mxu1 }
 0x14e   :  { %v1169_v26 = vadd.f32 %v2379_v19, %v768_v22  ;;  %v1201_v27 = vadd.f32 %v2379_v19, %v896_v23 }
 0x14f   :  { %v770_v28 = vpop.f32.mrf.mxu0  ;;  %v898_v29 = vpop.f32.mrf.mxu1 }
 0x150   :  { %v1795_v30 = vpack.c.bf16 %v1169_v26, %v1168_v24  ;;  %v1875_v31 = vpack.c.bf16 %v1201_v27, %v1200_v25 }
 0x151   :  { %v773_v32 = vpop.f32.mrf.mxu0  ;;  %v901_v33 = vpop.f32.mrf.mxu1 }
 0x152   :  { %1915 = vst [vmem:[%s2544_s3 + $0x48] sm:$0xff] %v1795_v30   ;;  %1931 = vst [vmem:[%s2544_s3 + $0xc8] sm:$0xff] %v1875_v31   ;;  %v1170_v38 = vadd.f32 %v2379_v19, %v773_v32  ;;  %v1202_v39 = vadd.f32 %v2379_v19, %v901_v33 }
 0x153   :  { %v775_v34 = vpop.f32.mrf.mxu0  ;;  %v903_v35 = vpop.f32.mrf.mxu1 }
 0x155   :  { %v776_v36 = vpop.f32.mrf.mxu0  ;;  %v904_v37 = vpop.f32.mrf.mxu1 }
 0x156   :  { %v1171_v40 = vadd.f32 %v2379_v19, %v776_v36  ;;  %v1203_v41 = vadd.f32 %v2379_v19, %v904_v37 }
 0x157   :  { %v778_v42 = vpop.f32.mrf.mxu0  ;;  %v906_v43 = vpop.f32.mrf.mxu1 }
 0x158   :  { %v1800_v44 = vpack.c.bf16 %v1171_v40, %v1170_v38  ;;  %v1880_v45 = vpack.c.bf16 %v1203_v41, %v1202_v39 }
 0x159   :  { %v781_v46 = vpop.f32.mrf.mxu0  ;;  %v909_v47 = vpop.f32.mrf.mxu1 }
 0x15a   :  { %1916 = vst [vmem:[%s2544_s3 + $0x50] sm:$0xff] %v1800_v44   ;;  %1932 = vst [vmem:[%s2544_s3 + $0xd0] sm:$0xff] %v1880_v45   ;;  %v1172_v52 = vadd.f32 %v2379_v19, %v781_v46  ;;  %v1204_v53 = vadd.f32 %v2379_v19, %v909_v47 }
 0x15b   :  { %v783_v48 = vpop.f32.mrf.mxu0  ;;  %v911_v49 = vpop.f32.mrf.mxu1 }
 0x15d   :  { %v784_v50 = vpop.f32.mrf.mxu0  ;;  %v912_v51 = vpop.f32.mrf.mxu1 }
 0x15e   :  { %v1173_v54 = vadd.f32 %v2379_v19, %v784_v50  ;;  %v1205_v55 = vadd.f32 %v2379_v19, %v912_v51 }
 0x15f   :  { %v786_v56 = vpop.f32.mrf.mxu0  ;;  %v914_v57 = vpop.f32.mrf.mxu1 }
 0x160   :  { %v1805_v58 = vpack.c.bf16 %v1173_v54, %v1172_v52  ;;  %v1885_v59 = vpack.c.bf16 %v1205_v55, %v1204_v53 }
 0x161   :  { %v789_v60 = vpop.f32.mrf.mxu0  ;;  %v917_v61 = vpop.f32.mrf.mxu1 }
 0x162   :  { %1917 = vst [vmem:[%s2544_s3 + $0x58] sm:$0xff] %v1805_v58   ;;  %1933 = vst [vmem:[%s2544_s3 + $0xd8] sm:$0xff] %v1885_v59   ;;  %v1174_v2 = vadd.f32 %v2379_v19, %v789_v60  ;;  %v1206_v3 = vadd.f32 %v2379_v19, %v917_v61 }
 0x163   :  { %v791_v62 = vpop.f32.mrf.mxu0  ;;  %v919_v63 = vpop.f32.mrf.mxu1 }
 0x165   :  { %v792_v0 = vpop.f32.mrf.mxu0  ;;  %v920_v1 = vpop.f32.mrf.mxu1 }
 0x166   :  { %v1175_v4 = vadd.f32 %v2379_v19, %v792_v0  ;;  %v1207_v5 = vadd.f32 %v2379_v19, %v920_v1 }
 0x167   :  { %v794_v6 = vpop.f32.mrf.mxu0  ;;  %v922_v7 = vpop.f32.mrf.mxu1 }
 0x168   :  { %v1810_v8 = vpack.c.bf16 %v1175_v4, %v1174_v2  ;;  %v1890_v9 = vpack.c.bf16 %v1207_v5, %v1206_v3 }
 0x169   :  { %v797_v10 = vpop.f32.mrf.mxu0  ;;  %v925_v11 = vpop.f32.mrf.mxu1 }
 0x16a   :  { %1918 = vst [vmem:[%s2544_s3 + $0x60] sm:$0xff] %v1810_v8   ;;  %1934 = vst [vmem:[%s2544_s3 + $0xe0] sm:$0xff] %v1890_v9   ;;  %v1176_v16 = vadd.f32 %v2379_v19, %v797_v10  ;;  %v1208_v17 = vadd.f32 %v2379_v19, %v925_v11 }
 0x16b   :  { %v799_v12 = vpop.f32.mrf.mxu0  ;;  %v927_v13 = vpop.f32.mrf.mxu1 }
 0x16d   :  { %v800_v14 = vpop.f32.mrf.mxu0  ;;  %v928_v15 = vpop.f32.mrf.mxu1 }
 0x16e   :  { %v1177_v18 = vadd.f32 %v2379_v19, %v800_v14  ;;  %v1209_v20 = vadd.f32 %v2379_v19, %v928_v15 }
 0x16f   :  { %v802_v21 = vpop.f32.mrf.mxu0  ;;  %v930_v22 = vpop.f32.mrf.mxu1 }
 0x170   :  { %v1815_v23 = vpack.c.bf16 %v1177_v18, %v1176_v16  ;;  %v1895_v24 = vpack.c.bf16 %v1209_v20, %v1208_v17 }
 0x171   :  { %v805_v25 = vpop.f32.mrf.mxu0  ;;  %v933_v26 = vpop.f32.mrf.mxu1 }
 0x172   :  { %1919 = vst [vmem:[%s2544_s3 + $0x68] sm:$0xff] %v1815_v23   ;;  %1935 = vst [vmem:[%s2544_s3 + $0xe8] sm:$0xff] %v1895_v24   ;;  %v1178_v31 = vadd.f32 %v2379_v19, %v805_v25  ;;  %v1210_v32 = vadd.f32 %v2379_v19, %v933_v26 }
 0x173   :  { %v807_v27 = vpop.f32.mrf.mxu0  ;;  %v935_v28 = vpop.f32.mrf.mxu1 }
 0x175   :  { %v808_v29 = vpop.f32.mrf.mxu0  ;;  %v936_v30 = vpop.f32.mrf.mxu1 }
 0x176   :  { %v1179_v33 = vadd.f32 %v2379_v19, %v808_v29  ;;  %v1211_v34 = vadd.f32 %v2379_v19, %v936_v30 }
 0x177   :  { %v810_v35 = vpop.f32.mrf.mxu0  ;;  %v938_v36 = vpop.f32.mrf.mxu1 }
 0x178   :  { %v1820_v37 = vpack.c.bf16 %v1179_v33, %v1178_v31  ;;  %v1900_v38 = vpack.c.bf16 %v1211_v34, %v1210_v32 }
 0x179   :  { %v813_v39 = vpop.f32.mrf.mxu0  ;;  %v941_v40 = vpop.f32.mrf.mxu1 }
 0x17a   :  { %1920 = vst [vmem:[%s2544_s3 + $0x70] sm:$0xff] %v1820_v37   ;;  %1936 = vst [vmem:[%s2544_s3 + $0xf0] sm:$0xff] %v1900_v38   ;;  %v1180_v45 = vadd.f32 %v2379_v19, %v813_v39  ;;  %v1212_v46 = vadd.f32 %v2379_v19, %v941_v40 }
 0x17b   :  { %v815_v41 = vpop.f32.mrf.mxu0  ;;  %v943_v42 = vpop.f32.mrf.mxu1 }
 0x17d   :  { %v816_v43 = vpop.f32.mrf.mxu0  ;;  %v944_v44 = vpop.f32.mrf.mxu1 }
 0x17e   :  { %v1181_v47 = vadd.f32 %v2379_v19, %v816_v43  ;;  %v1213_v48 = vadd.f32 %v2379_v19, %v944_v44 }
 0x17f   :  { %v818_v49 = vpop.f32.mrf.mxu0  ;;  %v946_v50 = vpop.f32.mrf.mxu1 }
 0x180   :  { %v1825_v51 = vpack.c.bf16 %v1181_v47, %v1180_v45  ;;  %v1905_v52 = vpack.c.bf16 %v1213_v48, %v1212_v46 }
 0x182   :  { %1921 = vst [vmem:[%s2544_s3 + $0x78] sm:$0xff] %v1825_v51   ;;  %1937 = vst [vmem:[%s2544_s3 + $0xf8] sm:$0xff] %v1905_v52  }

</bundles_post_ra>
